<compile_context>
chip_gen: v6e
topology: v6e:2x2x1
jax: 0.10.0
libtpu: 0.0.40
codegen_flags: <defaults>
</compile_context>

<pallas_src>
import functools
import math

import jax
import jax.numpy as jnp
from jax.experimental import pallas as pl
from jax.experimental.pallas import tpu as pltpu

NUM_FTRS = 2048     # resnet50 fc.in_features
STEM_DIM = 128      # hidden width of the stand-in backbone stem (lane-aligned)
HEAD_PAD = 128      # fused head output padded up to one full lane tile

NUM_CLASSES_ACTION = 9
NUM_CLASSES_OFFENCE = 3
NUM_CLASSES_SEVERITY = 5
NUM_CLASSES_BODYPART = 2
NUM_CLASSES_OFFENCE_SEVERITY = 4
HEAD_SIZES = (NUM_CLASSES_ACTION, NUM_CLASSES_OFFENCE, NUM_CLASSES_SEVERITY,
              NUM_CLASSES_BODYPART, NUM_CLASSES_OFFENCE_SEVERITY)


def _round_up(x, m):
    return (x + m - 1) // m * m


def _choose_batch_block(B, T, bytes_per_batch_elem,
                        budget=4 << 20, max_rows=256):
    """Batch elements per grid step: (bb*T) % 8 == 0, VMEM-bounded."""
    bb0 = 8 // math.gcd(T, 8)            # smallest bb with (bb*T) % 8 == 0
    B0 = _round_up(B, bb0)
    # If one block covers the whole (lightly padded) batch, use grid == 1.
    if B0 * T <= max_rows and B0 * bytes_per_batch_elem <= budget:
        return B0
    # grid > 1: keep the output block sublane-aligned (bb multiple of 8).
    bb = 8
    while ((bb + 8) * T <= max_rows
           and (bb + 8) * bytes_per_batch_elem <= budget
           and (bb + 8) <= _round_up(B, 8)):
        bb += 8
    return bb


# -----------------------------------------------------------------------------
# Fully fused kernel: stem -> temporal mean -> projection -> concat -> 5 heads
# -----------------------------------------------------------------------------
def _fused_kernel(inv_t,
                  rgb_ref, flow_ref, sum_ref,
                  w1r_ref, b1r_ref, w1f_ref, b1f_ref,
                  w2r_ref, b2r_ref, w2f_ref, b2f_ref,
                  whr_ref, whf_ref, bh_ref, out_ref):
    # --- stand-in backbone stem: per-frame Linear + ReLU (MXU + VPU) ---------
    rgb_h = jnp.maximum(
        jnp.dot(rgb_ref[...], w1r_ref[...],
                preferred_element_type=jnp.float32) + b1r_ref[...], 0.0)
    flow_h = jnp.maximum(
        jnp.dot(flow_ref[...], w1f_ref[...],
                preferred_element_type=jnp.float32) + b1f_ref[...], 0.0)

    # --- temporal mean over frames: block-diagonal frame-sum matmul (no
    #     reshape / sublane relayout), exact 1/T scale applied in f32 ---------
    rgb_m = jnp.dot(sum_ref[...], rgb_h.astype(jnp.bfloat16),
                    preferred_element_type=jnp.float32) * inv_t
    flow_m = jnp.dot(sum_ref[...], flow_h.astype(jnp.bfloat16),
                     preferred_element_type=jnp.float32) * inv_t

    # --- per-stream projection to num_ftrs == 2048 ---------------------------
    rgb_feat = jnp.dot(rgb_m.astype(jnp.bfloat16), w2r_ref[...],
                       preferred_element_type=jnp.float32) + b2r_ref[...]
    flow_feat = jnp.dot(flow_m.astype(jnp.bfloat16), w2f_ref[...],
                        preferred_element_type=jnp.float32) + b2f_ref[...]

    # --- concat + 5 heads fused: concat(r, f) @ [Wr; Wf] == r@Wr + f@Wf ------
    out_ref[...] = (
        jnp.dot(rgb_feat.astype(jnp.bfloat16), whr_ref[...],
                preferred_element_type=jnp.float32)
        + jnp.dot(flow_feat.astype(jnp.bfloat16), whf_ref[...],
                  preferred_element_type=jnp.float32)
        + bh_ref[...])                                        # (bb, 128) f32


def two_stream_forward(rgb_input, flow_input, params):
    """rgb_input: (B, T, 3, H, W), flow_input: (B, T, 1, H, W) — NCHW like torch."""
    B, T, C, H, W = rgb_input.shape
    HW = H * W
    CHW = C * HW

    # Flatten each frame to a feature vector (pure view, no transpose / repeat).
    rgb_x = rgb_input.reshape(B * T, CHW).astype(jnp.bfloat16)
    flow_x = flow_input.reshape(B * T, HW).astype(jnp.bfloat16)

    w1r, b1r, w2r, b2r = params["rgb_backbone"]
    w1f, b1f, w2f, b2f = params["flow_backbone"]
    # Fold flow's .repeat(1, 3, 1, 1) into the first-layer weights:
    # [f, f, f] @ W1 == f @ (W1_c0 + W1_c1 + W1_c2)   (exact for a linear layer)
    w1f_eff = w1f.reshape(C, HW, STEM_DIM).sum(axis=0)

    # Batch-block size (bb batch elements == bb*T frame rows per grid step).
    bytes_per_batch_elem = T * (CHW + HW) * 2            # bf16 rgb + flow rows
    bb = _choose_batch_block(B, T, bytes_per_batch_elem)
    B_pad = _round_up(B, bb)
    if B_pad != B:
        rgb_x = jnp.pad(rgb_x, ((0, (B_pad - B) * T), (0, 0)))
        flow_x = jnp.pad(flow_x, ((0, (B_pad - B) * T), (0, 0)))

    # Block-diagonal frame-sum matrix (entries exactly 1.0 in bf16).
    sum_mat = jnp.repeat(jnp.eye(bb, dtype=jnp.float32), T,
                         axis=1).astype(jnp.bfloat16)    # (bb, bb*T)

    # Fuse the five head weight matrices into one lane-dense (2F, 128) slab.
    heads = params["heads"]                 # list of (w (2F, n), b (1, n))
    w_all = jnp.concatenate([w for w, _ in heads], axis=1)       # (2F, 23)
    b_all = jnp.concatenate([b for _, b in heads], axis=1)       # (1, 23)
    n_total = w_all.shape[1]
    w_all = jnp.pad(w_all, ((0, 0), (0, HEAD_PAD - n_total)))
    b_all = jnp.pad(b_all, ((0, 0), (0, HEAD_PAD - n_total)))
    whr = w_all[:NUM_FTRS].astype(jnp.bfloat16)   # multiplies rgb features
    whf = w_all[NUM_FTRS:].astype(jnp.bfloat16)   # multiplies flow features

    def const(shape):
        return pl.BlockSpec(shape, lambda i: (0, 0))   # VMEM-resident weights

    logits = pl.pallas_call(
        functools.partial(_fused_kernel, float(1.0 / T)),
        out_shape=jax.ShapeDtypeStruct((B_pad, HEAD_PAD), jnp.float32),
        grid_spec=pltpu.PrefetchScalarGridSpec(
            num_scalar_prefetch=0,
            grid=(B_pad // bb,),
            in_specs=[
                pl.BlockSpec((bb * T, CHW), lambda i: (i, 0)),   # rgb frames
                pl.BlockSpec((bb * T, HW), lambda i: (i, 0)),    # flow frames
                const((bb, bb * T)),                             # frame-sum mat
                const((CHW, STEM_DIM)), const((1, STEM_DIM)),    # rgb stem
                const((HW, STEM_DIM)), const((1, STEM_DIM)),     # flow stem
                const((STEM_DIM, NUM_FTRS)), const((1, NUM_FTRS)),   # rgb proj
                const((STEM_DIM, NUM_FTRS)), const((1, NUM_FTRS)),   # flow proj
                const((NUM_FTRS, HEAD_PAD)),                     # heads (rgb half)
                const((NUM_FTRS, HEAD_PAD)),                     # heads (flow half)
                const((1, HEAD_PAD)),                            # head bias
            ],
            out_specs=pl.BlockSpec((bb, HEAD_PAD), lambda i: (i, 0)),
        ),
        compiler_params=pltpu.CompilerParams(
            dimension_semantics=("parallel",)),
    )(rgb_x, flow_x, sum_mat,
      w1r.astype(jnp.bfloat16), b1r, w1f_eff.astype(jnp.bfloat16), b1f,
      w2r.astype(jnp.bfloat16), b2r, w2f.astype(jnp.bfloat16), b2f,
      whr, whf, b_all)

    logits = logits[:B]
    outs = []
    off = 0
    for n in HEAD_SIZES:
        outs.append(logits[:, off:off + n])
        off += n
    return tuple(outs)  # (action, offence, severity, bodypart, offence_severity)


# -----------------------------------------------------------------------------
# Deterministic synthetic parameter init
# -----------------------------------------------------------------------------
def _linear_init(key, fin, fout):
    scale = 1.0 / jnp.sqrt(jnp.float32(fin))
    w = jax.random.uniform(key, (fin, fout), jnp.float32, -scale, scale)
    b = jnp.zeros((1, fout), jnp.float32)
    return w, b


def _backbone_init(key, chw):
    k1, k2 = jax.random.split(key)
    w1, b1 = _linear_init(k1, chw, STEM_DIM)         # stand-in stem
    w2, b2 = _linear_init(k2, STEM_DIM, NUM_FTRS)    # projection to 2048
    return (w1, b1, w2, b2)


def init_params(key, height, width):
    k_rgb, k_flow, k_a, k_o, k_s, k_b, k_os = jax.random.split(key, 7)
    chw = 3 * height * width                         # both backbones see 3 channels
    head_keys = [k_a, k_o, k_s, k_b, k_os]
    return {
        "rgb_backbone": _backbone_init(k_rgb, chw),
        "flow_backbone": _backbone_init(k_flow, chw),
        "heads": [_linear_init(k, 2 * NUM_FTRS, n)
                  for k, n in zip(head_keys, HEAD_SIZES)],
    }


if __name__ == "__main__":
    key = jax.random.PRNGKey(0)
    k_params, k_rgb, k_flow = jax.random.split(key, 3)

    B, T, C, H, W = 2, 4, 3, 16, 16
    params = init_params(k_params, H, W)
    rgb_input = jax.random.normal(k_rgb, (B, T, C, H, W), jnp.float32)
    flow_input = jax.random.normal(k_flow, (B, T, 1, H, W), jnp.float32)

    fwd = jax.jit(two_stream_forward)
    outs = fwd(rgb_input, flow_input, params)
    outs = jax.block_until_ready(outs)

    expected = [(B, NUM_CLASSES_ACTION), (B, NUM_CLASSES_OFFENCE),
                (B, NUM_CLASSES_SEVERITY), (B, NUM_CLASSES_BODYPART),
                (B, NUM_CLASSES_OFFENCE_SEVERITY)]
    assert [o.shape for o in outs] == expected, [o.shape for o in outs]
    assert all(bool(jnp.all(jnp.isfinite(o))) for o in outs)

    print("KERNEL_OK")
</pallas_src>

<mosaic_0001>
module attributes {stable_mosaic.version = 11 : i64} {
  func.func @_fused_kernel(%arg0: i32, %arg1: memref<8x768xbf16, #tpu.memory_space<vmem>>, %arg2: memref<8x256xbf16, #tpu.memory_space<vmem>>, %arg3: memref<2x8xbf16, #tpu.memory_space<vmem>>, %arg4: memref<768x128xbf16, #tpu.memory_space<vmem>>, %arg5: memref<1x128xf32, #tpu.memory_space<vmem>>, %arg6: memref<256x128xbf16, #tpu.memory_space<vmem>>, %arg7: memref<1x128xf32, #tpu.memory_space<vmem>>, %arg8: memref<128x2048xbf16, #tpu.memory_space<vmem>>, %arg9: memref<1x2048xf32, #tpu.memory_space<vmem>>, %arg10: memref<128x2048xbf16, #tpu.memory_space<vmem>>, %arg11: memref<1x2048xf32, #tpu.memory_space<vmem>>, %arg12: memref<2048x128xbf16, #tpu.memory_space<vmem>>, %arg13: memref<2048x128xbf16, #tpu.memory_space<vmem>>, %arg14: memref<1x128xf32, #tpu.memory_space<vmem>>, %arg15: memref<2x128xf32, #tpu.memory_space<vmem>>) attributes {dimension_semantics = [#tpu.dimension_semantics<parallel>], iteration_bounds = array<i64: 1>, scalar_prefetch = 0 : i64, scratch_operands = 0 : i64, tpu.core_type = #tpu.core_type<tc>, window_params = [{transform_indices = @transform_0, window_bounds = array<i64: 8, 768>}, {transform_indices = @transform_1, window_bounds = array<i64: 8, 256>}, {pipeline_mode = #tpu.pipeline_mode<synchronous>, transform_indices = @transform_2, window_bounds = array<i64: 2, 8>}, {pipeline_mode = #tpu.pipeline_mode<synchronous>, transform_indices = @transform_3, window_bounds = array<i64: 768, 128>}, {pipeline_mode = #tpu.pipeline_mode<synchronous>, transform_indices = @transform_4, window_bounds = array<i64: 1, 128>}, {pipeline_mode = #tpu.pipeline_mode<synchronous>, transform_indices = @transform_5, window_bounds = array<i64: 256, 128>}, {pipeline_mode = #tpu.pipeline_mode<synchronous>, transform_indices = @transform_6, window_bounds = array<i64: 1, 128>}, {pipeline_mode = #tpu.pipeline_mode<synchronous>, transform_indices = @transform_7, window_bounds = array<i64: 128, 2048>}, {pipeline_mode = #tpu.pipeline_mode<synchronous>, transform_indices = @transform_8, window_bounds = array<i64: 1, 2048>}, {pipeline_mode = #tpu.pipeline_mode<synchronous>, transform_indices = @transform_9, window_bounds = array<i64: 128, 2048>}, {pipeline_mode = #tpu.pipeline_mode<synchronous>, transform_indices = @transform_10, window_bounds = array<i64: 1, 2048>}, {pipeline_mode = #tpu.pipeline_mode<synchronous>, transform_indices = @transform_11, window_bounds = array<i64: 2048, 128>}, {pipeline_mode = #tpu.pipeline_mode<synchronous>, transform_indices = @transform_12, window_bounds = array<i64: 2048, 128>}, {pipeline_mode = #tpu.pipeline_mode<synchronous>, transform_indices = @transform_13, window_bounds = array<i64: 1, 128>}, {transform_indices = @transform_14, window_bounds = array<i64: 2, 128>}]} {
    %c0 = arith.constant 0 : index
    %c0_0 = arith.constant 0 : index
    %0 = vector.load %arg1[%c0, %c0_0] : memref<8x768xbf16, #tpu.memory_space<vmem>>, vector<8x768xbf16>
    %c0_1 = arith.constant 0 : index
    %c0_2 = arith.constant 0 : index
    %1 = vector.load %arg4[%c0_1, %c0_2] : memref<768x128xbf16, #tpu.memory_space<vmem>>, vector<768x128xbf16>
    %cst = arith.constant dense<0.000000e+00> : vector<8x128xf32>
    %2 = tpu.matmul %0, %1, %cst {dimension_numbers = #tpu.dot_dimension_numbers<[1], [0], [0], [1], [0, 0, 1, 1], [], []>} : vector<8x768xbf16>, vector<768x128xbf16>, vector<8x128xf32> -> vector<8x128xf32>
    %c0_3 = arith.constant 0 : index
    %c0_4 = arith.constant 0 : index
    %3 = vector.load %arg5[%c0_3, %c0_4] : memref<1x128xf32, #tpu.memory_space<vmem>>, vector<1x128xf32>
    %4 = vector.broadcast %3 : vector<1x128xf32> to vector<8x128xf32>
    %5 = arith.addf %2, %4 : vector<8x128xf32>
    %cst_5 = arith.constant 0.000000e+00 : f32
    %6 = vector.broadcast %cst_5 : f32 to vector<8x128xf32>
    %7 = arith.maximumf %5, %6 : vector<8x128xf32>
    %c0_6 = arith.constant 0 : index
    %c0_7 = arith.constant 0 : index
    %8 = vector.load %arg2[%c0_6, %c0_7] : memref<8x256xbf16, #tpu.memory_space<vmem>>, vector<8x256xbf16>
    %c0_8 = arith.constant 0 : index
    %c0_9 = arith.constant 0 : index
    %9 = vector.load %arg6[%c0_8, %c0_9] : memref<256x128xbf16, #tpu.memory_space<vmem>>, vector<256x128xbf16>
    %cst_10 = arith.constant dense<0.000000e+00> : vector<8x128xf32>
    %10 = tpu.matmul %8, %9, %cst_10 {dimension_numbers = #tpu.dot_dimension_numbers<[1], [0], [0], [1], [0, 0, 1, 1], [], []>} : vector<8x256xbf16>, vector<256x128xbf16>, vector<8x128xf32> -> vector<8x128xf32>
    %c0_11 = arith.constant 0 : index
    %c0_12 = arith.constant 0 : index
    %11 = vector.load %arg7[%c0_11, %c0_12] : memref<1x128xf32, #tpu.memory_space<vmem>>, vector<1x128xf32>
    %12 = vector.broadcast %11 : vector<1x128xf32> to vector<8x128xf32>
    %13 = arith.addf %10, %12 : vector<8x128xf32>
    %cst_13 = arith.constant 0.000000e+00 : f32
    %14 = vector.broadcast %cst_13 : f32 to vector<8x128xf32>
    %15 = arith.maximumf %13, %14 : vector<8x128xf32>
    %c0_14 = arith.constant 0 : index
    %c0_15 = arith.constant 0 : index
    %16 = vector.load %arg3[%c0_14, %c0_15] : memref<2x8xbf16, #tpu.memory_space<vmem>>, vector<2x8xbf16>
    %17 = arith.truncf %7 : vector<8x128xf32> to vector<8x128xbf16>
    %cst_16 = arith.constant dense<0.000000e+00> : vector<2x128xf32>
    %18 = tpu.matmul %16, %17, %cst_16 {dimension_numbers = #tpu.dot_dimension_numbers<[1], [0], [0], [1], [0, 0, 1, 1], [], []>} : vector<2x8xbf16>, vector<8x128xbf16>, vector<2x128xf32> -> vector<2x128xf32>
    %cst_17 = arith.constant 2.500000e-01 : f32
    %19 = vector.broadcast %cst_17 : f32 to vector<2x128xf32>
    %20 = arith.mulf %18, %19 : vector<2x128xf32>
    %c0_18 = arith.constant 0 : index
    %c0_19 = arith.constant 0 : index
    %21 = vector.load %arg3[%c0_18, %c0_19] : memref<2x8xbf16, #tpu.memory_space<vmem>>, vector<2x8xbf16>
    %22 = arith.truncf %15 : vector<8x128xf32> to vector<8x128xbf16>
    %cst_20 = arith.constant dense<0.000000e+00> : vector<2x128xf32>
    %23 = tpu.matmul %21, %22, %cst_20 {dimension_numbers = #tpu.dot_dimension_numbers<[1], [0], [0], [1], [0, 0, 1, 1], [], []>} : vector<2x8xbf16>, vector<8x128xbf16>, vector<2x128xf32> -> vector<2x128xf32>
    %cst_21 = arith.constant 2.500000e-01 : f32
    %24 = vector.broadcast %cst_21 : f32 to vector<2x128xf32>
    %25 = arith.mulf %23, %24 : vector<2x128xf32>
    %26 = arith.truncf %20 : vector<2x128xf32> to vector<2x128xbf16>
    %c0_22 = arith.constant 0 : index
    %c0_23 = arith.constant 0 : index
    %27 = vector.load %arg8[%c0_22, %c0_23] : memref<128x2048xbf16, #tpu.memory_space<vmem>>, vector<128x2048xbf16>
    %cst_24 = arith.constant dense<0.000000e+00> : vector<2x2048xf32>
    %28 = tpu.matmul %26, %27, %cst_24 {dimension_numbers = #tpu.dot_dimension_numbers<[1], [0], [0], [1], [0, 0, 1, 1], [], []>} : vector<2x128xbf16>, vector<128x2048xbf16>, vector<2x2048xf32> -> vector<2x2048xf32>
    %c0_25 = arith.constant 0 : index
    %c0_26 = arith.constant 0 : index
    %29 = vector.load %arg9[%c0_25, %c0_26] : memref<1x2048xf32, #tpu.memory_space<vmem>>, vector<1x2048xf32>
    %30 = vector.broadcast %29 : vector<1x2048xf32> to vector<2x2048xf32>
    %31 = arith.addf %28, %30 : vector<2x2048xf32>
    %32 = arith.truncf %25 : vector<2x128xf32> to vector<2x128xbf16>
    %c0_27 = arith.constant 0 : index
    %c0_28 = arith.constant 0 : index
    %33 = vector.load %arg10[%c0_27, %c0_28] : memref<128x2048xbf16, #tpu.memory_space<vmem>>, vector<128x2048xbf16>
    %cst_29 = arith.constant dense<0.000000e+00> : vector<2x2048xf32>
    %34 = tpu.matmul %32, %33, %cst_29 {dimension_numbers = #tpu.dot_dimension_numbers<[1], [0], [0], [1], [0, 0, 1, 1], [], []>} : vector<2x128xbf16>, vector<128x2048xbf16>, vector<2x2048xf32> -> vector<2x2048xf32>
    %c0_30 = arith.constant 0 : index
    %c0_31 = arith.constant 0 : index
    %35 = vector.load %arg11[%c0_30, %c0_31] : memref<1x2048xf32, #tpu.memory_space<vmem>>, vector<1x2048xf32>
    %36 = vector.broadcast %35 : vector<1x2048xf32> to vector<2x2048xf32>
    %37 = arith.addf %34, %36 : vector<2x2048xf32>
    %38 = arith.truncf %31 : vector<2x2048xf32> to vector<2x2048xbf16>
    %c0_32 = arith.constant 0 : index
    %c0_33 = arith.constant 0 : index
    %39 = vector.load %arg12[%c0_32, %c0_33] : memref<2048x128xbf16, #tpu.memory_space<vmem>>, vector<2048x128xbf16>
    %cst_34 = arith.constant dense<0.000000e+00> : vector<2x128xf32>
    %40 = tpu.matmul %38, %39, %cst_34 {dimension_numbers = #tpu.dot_dimension_numbers<[1], [0], [0], [1], [0, 0, 1, 1], [], []>} : vector<2x2048xbf16>, vector<2048x128xbf16>, vector<2x128xf32> -> vector<2x128xf32>
    %41 = arith.truncf %37 : vector<2x2048xf32> to vector<2x2048xbf16>
    %c0_35 = arith.constant 0 : index
    %c0_36 = arith.constant 0 : index
    %42 = vector.load %arg13[%c0_35, %c0_36] : memref<2048x128xbf16, #tpu.memory_space<vmem>>, vector<2048x128xbf16>
    %cst_37 = arith.constant dense<0.000000e+00> : vector<2x128xf32>
    %43 = tpu.matmul %41, %42, %cst_37 {dimension_numbers = #tpu.dot_dimension_numbers<[1], [0], [0], [1], [0, 0, 1, 1], [], []>} : vector<2x2048xbf16>, vector<2048x128xbf16>, vector<2x128xf32> -> vector<2x128xf32>
    %44 = arith.addf %40, %43 : vector<2x128xf32>
    %c0_38 = arith.constant 0 : index
    %c0_39 = arith.constant 0 : index
    %45 = vector.load %arg14[%c0_38, %c0_39] : memref<1x128xf32, #tpu.memory_space<vmem>>, vector<1x128xf32>
    %46 = vector.broadcast %45 : vector<1x128xf32> to vector<2x128xf32>
    %47 = arith.addf %44, %46 : vector<2x128xf32>
    %c0_40 = arith.constant 0 : index
    %c0_41 = arith.constant 0 : index
    %48 = vector.load %arg15[%c0_40, %c0_41] : memref<2x128xf32, #tpu.memory_space<vmem>>, vector<2x128xf32>
    tpu.vector_store %arg15[%c0_40, %c0_41], %47 {strides = array<i32>} : memref<2x128xf32, #tpu.memory_space<vmem>>, vector<2x128xf32>,
    return
  }
  func.func @transform_0(%arg0: i32) -> (i32, i32) {
    %c0_i32 = arith.constant 0 : i32
    %c0_i32_0 = arith.constant 0 : i32
    return %arg0, %c0_i32 : i32, i32
  }
  func.func @transform_1(%arg0: i32) -> (i32, i32) {
    %c0_i32 = arith.constant 0 : i32
    %c0_i32_0 = arith.constant 0 : i32
    return %arg0, %c0_i32 : i32, i32
  }
  func.func @transform_2(%arg0: i32) -> (i32, i32) {
    %c0_i32 = arith.constant 0 : i32
    %c0_i32_0 = arith.constant 0 : i32
    %c0_i32_1 = arith.constant 0 : i32
    return %c0_i32, %c0_i32_0 : i32, i32
  }
  func.func @transform_3(%arg0: i32) -> (i32, i32) {
    %c0_i32 = arith.constant 0 : i32
    %c0_i32_0 = arith.constant 0 : i32
    %c0_i32_1 = arith.constant 0 : i32
    return %c0_i32, %c0_i32_0 : i32, i32
  }
  func.func @transform_4(%arg0: i32) -> (i32, i32) {
    %c0_i32 = arith.constant 0 : i32
    %c0_i32_0 = arith.constant 0 : i32
    %c0_i32_1 = arith.constant 0 : i32
    return %c0_i32, %c0_i32_0 : i32, i32
  }
  func.func @transform_5(%arg0: i32) -> (i32, i32) {
    %c0_i32 = arith.constant 0 : i32
    %c0_i32_0 = arith.constant 0 : i32
    %c0_i32_1 = arith.constant 0 : i32
    return %c0_i32, %c0_i32_0 : i32, i32
  }
  func.func @transform_6(%arg0: i32) -> (i32, i32) {
    %c0_i32 = arith.constant 0 : i32
    %c0_i32_0 = arith.constant 0 : i32
    %c0_i32_1 = arith.constant 0 : i32
    return %c0_i32, %c0_i32_0 : i32, i32
  }
  func.func @transform_7(%arg0: i32) -> (i32, i32) {
    %c0_i32 = arith.constant 0 : i32
    %c0_i32_0 = arith.constant 0 : i32
    %c0_i32_1 = arith.constant 0 : i32
    return %c0_i32, %c0_i32_0 : i32, i32
  }
  func.func @transform_8(%arg0: i32) -> (i32, i32) {
    %c0_i32 = arith.constant 0 : i32
    %c0_i32_0 = arith.constant 0 : i32
    %c0_i32_1 = arith.constant 0 : i32
    return %c0_i32, %c0_i32_0 : i32, i32
  }
  func.func @transform_9(%arg0: i32) -> (i32, i32) {
    %c0_i32 = arith.constant 0 : i32
    %c0_i32_0 = arith.constant 0 : i32
    %c0_i32_1 = arith.constant 0 : i32
    return %c0_i32, %c0_i32_0 : i32, i32
  }
  func.func @transform_10(%arg0: i32) -> (i32, i32) {
    %c0_i32 = arith.constant 0 : i32
    %c0_i32_0 = arith.constant 0 : i32
    %c0_i32_1 = arith.constant 0 : i32
    return %c0_i32, %c0_i32_0 : i32, i32
  }
  func.func @transform_11(%arg0: i32) -> (i32, i32) {
    %c0_i32 = arith.constant 0 : i32
    %c0_i32_0 = arith.constant 0 : i32
    %c0_i32_1 = arith.constant 0 : i32
    return %c0_i32, %c0_i32_0 : i32, i32
  }
  func.func @transform_12(%arg0: i32) -> (i32, i32) {
    %c0_i32 = arith.constant 0 : i32
    %c0_i32_0 = arith.constant 0 : i32
    %c0_i32_1 = arith.constant 0 : i32
    return %c0_i32, %c0_i32_0 : i32, i32
  }
  func.func @transform_13(%arg0: i32) -> (i32, i32) {
    %c0_i32 = arith.constant 0 : i32
    %c0_i32_0 = arith.constant 0 : i32
    %c0_i32_1 = arith.constant 0 : i32
    return %c0_i32, %c0_i32_0 : i32, i32
  }
  func.func @transform_14(%arg0: i32) -> (i32, i32) {
    %c0_i32 = arith.constant 0 : i32
    %c0_i32_0 = arith.constant 0 : i32
    return %arg0, %c0_i32 : i32, i32
  }
}

</mosaic_0001>

<bundles_post_ra>
// kernel: two_stream_forward.1
= control target key start
LH: loop header
LB: loop body
LE: loop exit
PB: predicated region body
PF: predicated region fallthrough
CT: control target
= control target key end

     0   :  { %vm7336_vm0 = vmmov 0   ;;  %vm774_vm1 = vcmask 1043456   ;;  %vm770_vm2 = vcmask 64512   ;;  %s9360_s3 = inlined_call_operand.vmem [shape: bf16[768,128], index: 3, kind: input, shape index: {}]   ;;  %s9361_s0 = inlined_call_operand.vmem [shape: bf16[8,768], index: 0, kind: input, shape index: {}]   ;;  %s9362_s5 = inlined_call_operand.vmem [shape: bf16[256,128], index: 5, kind: input, shape index: {}]   ;;  %s9363_s1 = inlined_call_operand.vmem [shape: bf16[8,256], index: 1, kind: input, shape index: {}]   ;;  %s9364_s4 = inlined_call_operand.vmem [shape: f32[1,128], index: 4, kind: input, shape index: {}]   ;;  %s9365_s7 = inlined_call_operand.vmem [shape: bf16[128,2048], index: 7, kind: input, shape index: {}]   ;;  %s9366_s2 = inlined_call_operand.vmem [shape: bf16[2,8], index: 2, kind: input, shape index: {}]   ;;  %s9367_s6 = inlined_call_operand.vmem [shape: f32[1,128], index: 6, kind: input, shape index: {}]   ;;  %s9368_s9 = inlined_call_operand.vmem [shape: bf16[128,2048], index: 9, kind: input, shape index: {}]   ;;  %s9369_s12 = inlined_call_operand.vmem [shape: bf16[2048,128], index: 12, kind: input, shape index: {}]   ;;  %s9370_s8 = inlined_call_operand.vmem [shape: f32[1,2048], index: 8, kind: input, shape index: {}]   ;;  %s9371_s11 = inlined_call_operand.vmem [shape: bf16[2048,128], index: 11, kind: input, shape index: {}]   ;;  %s9372_s10 = inlined_call_operand.vmem [shape: f32[1,2048], index: 10, kind: input, shape index: {}]   ;;  %s9373_s13 = inlined_call_operand.vmem [shape: f32[1,128], index: 13, kind: input, shape index: {}]   ;;  %s9374_s14 = inlined_call_operand.vmem [shape: f32[2,128], index: 14, kind: output, shape index: {}]  }
   0x1   :  { %v7007_v0 = vld [vmem:[%s9360_s3 + $0x78] sm:$0xff]   ;;  %v7011_v4 = vld [vmem:[%s9360_s3 + $0x70] sm:$0xff]   ;;  %v7015_v8 = vld [vmem:[%s9360_s3 + $0x68] sm:$0xff]  }
   0x2   :  { %v7008_v1 = vld [vmem:[%s9360_s3 + $0x38] sm:$0xff]   ;;  %6548 = vmatprep.subr.bf16.mxu0 %v7007_v0  ;;  %v7012_v5 = vld [vmem:[%s9360_s3 + $0x30] sm:$0xff]   ;;  %v7016_v9 = vld [vmem:[%s9360_s3 + $0x28] sm:$0xff]  }
   0x3   :  { %v7009_v2 = vld [vmem:[%s9360_s3 + $0xf8] sm:$0xff]   ;;  %6549 = vmatpush3.bf16.msra.mxu0 %v7008_v1  ;;  %v7013_v6 = vld [vmem:[%s9360_s3 + $0xf0] sm:$0xff]   ;;  %v7017_v10 = vld [vmem:[%s9360_s3 + $0xe8] sm:$0xff]  }
   0x4   :  { %v7010_v3 = vld [vmem:[%s9360_s3 + $0xb8] sm:$0xff]   ;;  %6570 = vmatprep.subr.bf16.mxu1 %v7009_v2  ;;  %6550 = vmatprep.subr.bf16.mxu0 %v7011_v4  ;;  %v7014_v7 = vld [vmem:[%s9360_s3 + $0xb0] sm:$0xff]   ;;  %v7018_v11 = vld [vmem:[%s9360_s3 + $0xa8] sm:$0xff]  }
   0x5   :  { %6571 = vmatpush3.bf16.msra.mxu1 %v7010_v3  ;;  %v7019_v12 = vld [vmem:[%s9360_s3 + $0x60] sm:$0xff]   ;;  %v7023_v16 = vld [vmem:[%s9360_s3 + $0x58] sm:$0xff]   ;;  %v7027_v20 = vld [vmem:[%s9360_s3 + $0x50] sm:$0xff]  }
   0x6   :  { %6572 = vmatprep.subr.bf16.mxu1 %v7013_v6  ;;  %v7020_v13 = vld [vmem:[%s9360_s3 + $0x20] sm:$0xff]   ;;  %v7024_v17 = vld [vmem:[%s9360_s3 + $0x18] sm:$0xff]   ;;  %v7028_v21 = vld [vmem:[%s9360_s3 + $0x10] sm:$0xff]  }
   0x7   :  { %6551 = vmatpush3.bf16.msra.mxu0 %v7012_v5  ;;  %v7021_v14 = vld [vmem:[%s9360_s3 + $0xe0] sm:$0xff]   ;;  %v7025_v18 = vld [vmem:[%s9360_s3 + $0xd8] sm:$0xff]   ;;  %v7029_v22 = vld [vmem:[%s9360_s3 + $0xd0] sm:$0xff]  }
   0x8   :  { %6552 = vmatprep.subr.bf16.mxu0 %v7015_v8  ;;  %v7022_v15 = vld [vmem:[%s9360_s3 + $0xa0] sm:$0xff]   ;;  %v7026_v19 = vld [vmem:[%s9360_s3 + $0x98] sm:$0xff]   ;;  %v7030_v23 = vld [vmem:[%s9360_s3 + $0x90] sm:$0xff]  }
   0x9   :  { %6573 = vmatpush3.bf16.msra.mxu1 %v7014_v7  ;;  %v7031_v24 = vld [vmem:[%s9360_s3 + $0x48] sm:$0xff]   ;;  %v7035_v28 = vld [vmem:[%s9360_s3 + $0x40] sm:$0xff]   ;;  %v7041_v35 = vld [vmem:[%s9360_s3 + $0x178] sm:$0xff]  }
   0xa   :  { %6574 = vmatprep.subr.bf16.mxu1 %v7017_v10  ;;  %v7032_v25 = vld [vmem:[%s9360_s3 + $0x8] sm:$0xff]   ;;  %v7036_v29 = vld [vmem:[%s9360_s3] sm:$0xff]   ;;  %v7044_v39 = vld [vmem:[%s9360_s3 + $0x138] sm:$0xff]  }
   0xb   :  { %6553 = vmatpush3.bf16.msra.mxu0 %v7016_v9  ;;  %v7033_v26 = vld [vmem:[%s9360_s3 + $0xc8] sm:$0xff]   ;;  %v7037_v30 = vld [vmem:[%s9360_s3 + $0xc0] sm:$0xff]   ;;  %v7045_v40 = vld [vmem:[%s9360_s3 + $0x170] sm:$0xff]  }
   0xc   :  { %6554 = vmatprep.subr.bf16.mxu0 %v7019_v12  ;;  %v7034_v27 = vld [vmem:[%s9360_s3 + $0x88] sm:$0xff]   ;;  %v48_v31 = vld [vmem:[%s9361_s0] sm:$0xff]  ;;  %v7046_v41 = vld [vmem:[%s9360_s3 + $0x130] sm:$0xff]   ;;  %v7335_v12 = vmov 0.0  }
   0xd   :  { %6575 = vmatpush3.bf16.msra.mxu1 %v7018_v11  ;;  %v5960_v32 = vcombine.low %v48_v31, %v48_v31  ;;  %v5961_v33 = vcombine.high %v48_v31, %v48_v31  ;;  %v7040_v34 = vld [vmem:[%s9360_s3 + $0x80] sm:$0xff]   ;;  %v49_v36 = vld [vmem:[%s9361_s0 + $0x8] sm:$0xff]  ;;  %v7051_v46 = vld [vmem:[%s9360_s3 + $0x158] sm:$0xff]  }
   0xe   :  { %6576 = vmatprep.subr.bf16.mxu1 %v7021_v14  ;;  %v5962_v37 = vcombine.low %v49_v36, %v49_v36  ;;  %v5963_v38 = vcombine.high %v49_v36, %v49_v36  ;;  %v7047_v42 = vld [vmem:[%s9360_s3 + $0x168] sm:$0xff]   ;;  %v7049_v44 = vld [vmem:[%s9360_s3 + $0x160] sm:$0xff]   ;;  %v7052_v47 = vld [vmem:[%s9360_s3 + $0x118] sm:$0xff]  }
   0xf   :  { %6555 = vmatpush3.bf16.msra.mxu0 %v7020_v13  ;;  %495 = vmatprep.mubr.bf16.mxu0 %v5961_v33  ;;  %v7048_v43 = vld [vmem:[%s9360_s3 + $0x128] sm:$0xff]   ;;  %v7050_v45 = vld [vmem:[%s9360_s3 + $0x120] sm:$0xff]   ;;  %v7053_v48 = vld [vmem:[%s9360_s3 + $0x150] sm:$0xff]  }
  0x10   :  { %6556 = vmatprep.subr.bf16.mxu0 %v7023_v16  ;;  %535 = vmatprep.mubr.bf16.mxu1 %v5963_v38  ;;  %v50_v49 = vld [vmem:[%s9361_s0 + $0x10] sm:$0xff]  ;;  %v7061_v51 = vld [vmem:[%s9362_s5 + $0x78] sm:$0xff]   ;;  %v7055_v54 = vld [vmem:[%s9360_s3 + $0x148] sm:$0xff]  }
  0x11   :  { %6577 = vmatpush3.bf16.msra.mxu1 %v7022_v15  ;;  %v5965_v50 = vcombine.high %v50_v49, %v50_v49  ;;  %v7054_v52 = vld [vmem:[%s9360_s3 + $0x110] sm:$0xff]   ;;  %v7062_v53 = vld [vmem:[%s9362_s5 + $0x38] sm:$0xff]   ;;  %v7065_v57 = vld [vmem:[%s9362_s5 + $0x68] sm:$0xff]   ;;  %v5964_v1 = vcombine.low %v50_v49, %v50_v49 }
  0x12   :  { %6578 = vmatprep.subr.bf16.mxu1 %v7025_v18  ;;  %v7063_v55 = vld [vmem:[%s9362_s5 + $0x70] sm:$0xff]   ;;  %v7056_v58 = vld [vmem:[%s9360_s3 + $0x108] sm:$0xff]   ;;  %v7057_v59 = vld [vmem:[%s9360_s3 + $0x140] sm:$0xff]  }
  0x13   :  { %6557 = vmatpush3.bf16.msra.mxu0 %v7024_v17  ;;  %v7064_v56 = vld [vmem:[%s9362_s5 + $0x30] sm:$0xff]   ;;  %v7066_v60 = vld [vmem:[%s9362_s5 + $0x28] sm:$0xff]   ;;  %v7067_v61 = vld [vmem:[%s9362_s5 + $0x60] sm:$0xff]  }
  0x14   :  { %6558 = vmatprep.subr.bf16.mxu0 %v7027_v20  ;;  %v7058_v62 = vld [vmem:[%s9360_s3 + $0x100] sm:$0xff]   ;;  %v7069_v0 = vld [vmem:[%s9362_s5 + $0x58] sm:$0xff]   ;;  %v7071_v3 = vld [vmem:[%s9362_s5 + $0x50] sm:$0xff]  }
  0x15   :  { %6579 = vmatpush3.bf16.msra.mxu1 %v7026_v19  ;;  %v7068_v63 = vld [vmem:[%s9362_s5 + $0x20] sm:$0xff]   ;;  %v7070_v2 = vld [vmem:[%s9362_s5 + $0x18] sm:$0xff]   ;;  %v7072_v6 = vld [vmem:[%s9362_s5 + $0x10] sm:$0xff]  }
  0x16   :  { %6580 = vmatprep.subr.bf16.mxu1 %v7029_v22  ;;  %v584_v4 = vld [vmem:[%s9363_s1] sm:$0xff]  ;;  %v7073_v7 = vld [vmem:[%s9362_s5 + $0x48] sm:$0xff]  }
  0x17   :  { %6559 = vmatpush3.bf16.msra.mxu0 %v7028_v21  ;;  %v6016_v5 = vcombine.high %v584_v4, %v584_v4  ;;  %v7074_v8 = vld [vmem:[%s9362_s5 + $0x8] sm:$0xff]   ;;  %v7075_v9 = vld [vmem:[%s9362_s5 + $0x40] sm:$0xff]   ;;  %v6015_v11 = vcombine.low %v584_v4, %v584_v4 }
  0x18   :  { %6560 = vmatprep.subr.bf16.mxu0 %v7031_v24  ;;  %v7076_v10 = vld [vmem:[%s9362_s5] sm:$0xff]   ;;  %v970_v4 = vld [vmem:[%s9365_s7 + $0x348] sm:$0xff] }
  0x19   :  { %6581 = vmatpush3.bf16.msra.mxu1 %v7030_v23  ;;  %v5959_v22 = vld [vmem:[%s9364_s4] ss:$0 sm:$0xff] }
  0x1a   :  { %6582 = vmatprep.subr.bf16.mxu1 %v7033_v26  ;;  %v985_v33 = vld [vmem:[%s9365_s7 + $0x3c0] sm:$0xff] }
  0x1b   :  { %6561 = vmatpush3.bf16.msra.mxu0 %v7032_v25  ;;  %v969_v38 = vld [vmem:[%s9365_s7 + $0x340] sm:$0xff] }
  0x1c   :  { %6562 = vmatprep.subr.bf16.mxu0 %v7035_v28 }
  0x1d   :  { %6583 = vmatpush3.bf16.msra.mxu1 %v7034_v27 }
  0x1e   :  { %6584 = vmatprep.subr.bf16.mxu1 %v7037_v30 }
  0x1f   :  { %6563 = vmatpush3.bf16.msra.mxu0 %v7036_v29 }
  0x20   :  { %6592 = vmatprep.subr.bf16.mxu0 %v7041_v35 }
  0x21   :  { %6585 = vmatpush3.bf16.msra.mxu1 %v7040_v34 }
  0x22   :  { %496 = vmatmul.mubr.bf16.vlgmr.msra.gmra.mxu0 %v5960_v32  ;;  %6614 = vmatprep.subr.bf16.mxu1 %v7061_v51  ;;  %v977_v32 = vld [vmem:[%s9365_s7 + $0x380] sm:$0xff] }
  0x23   :  { %6593 = vmatpush3.bf16.msra.mxu0 %v7044_v39  ;;  %575 = vmatprep.mubr.bf16.mxu0 %v5965_v50  ;;  %v6148_v36 = vcombine.high %v977_v32, %v985_v33  ;;  %v929_v50 = vld [vmem:[%s9365_s7 + $0x200] sm:$0xff] }
  0x24   :  { %536 = vmatmul.mubr.bf16.vlgmr.msra.gmra.mxu1 %v5962_v37  ;;  %6594 = vmatprep.subr.bf16.mxu0 %v7045_v40  ;;  %v961_v37 = vld [vmem:[%s9365_s7 + $0x300] sm:$0xff] }
  0x25   :  { %6615 = vmatpush3.bf16.msra.mxu1 %v7062_v53  ;;  %759 = vmatprep.mubr.bf16.mxu1 %v6016_v5  ;;  %v768_v40 = vld [vmem:[%s9366_s2] sm:$0x1] }
  0x26   :  { %6616 = vmatprep.subr.bf16.mxu1 %v7063_v55  ;;  %v937_v51 = vld [vmem:[%s9365_s7 + $0x240] sm:$0xff] }
  0x27   :  { %6595 = vmatpush3.bf16.msra.mxu0 %v7046_v41  ;;  %v6147_v41 = vcombine.low %v977_v32, %v985_v33  ;;  %v897_v5 = vld [vmem:[%s9365_s7 + $0x100] sm:$0xff]  ;;  %v882_v33 = vld [vmem:[%s9365_s7 + $0x88] sm:$0xff] }
  0x28   :  { %6596 = vmatprep.subr.bf16.mxu0 %v7047_v42  ;;  %v6132_v42 = vcombine.high %v961_v37, %v969_v38 }
  0x29   :  { %6617 = vmatpush3.bf16.msra.mxu1 %v7064_v56  ;;  %v978_v56 = vld [vmem:[%s9365_s7 + $0x388] sm:$0xff] }
  0x2a   :  { %6618 = vmatprep.subr.bf16.mxu1 %v7065_v57  ;;  %v6100_v57 = vcombine.high %v929_v50, %v937_v51 }
  0x2b   :  { %6597 = vmatpush3.bf16.msra.mxu0 %v7048_v43  ;;  %v945_v43 = vld [vmem:[%s9365_s7 + $0x280] sm:$0xff] }
  0x2c   :  { %6598 = vmatprep.subr.bf16.mxu0 %v7049_v44  ;;  %v953_v44 = vld [vmem:[%s9365_s7 + $0x2c0] sm:$0xff] }
  0x2d   :  { %6619 = vmatpush3.bf16.msra.mxu1 %v7066_v60  ;;  %v913_v60 = vld [vmem:[%s9365_s7 + $0x180] sm:$0xff] }
  0x2e   :  { %6620 = vmatprep.subr.bf16.mxu1 %v7067_v61  ;;  %v921_v61 = vld [vmem:[%s9365_s7 + $0x1c0] sm:$0xff] }
  0x2f   :  { %6599 = vmatpush3.bf16.msra.mxu0 %v7050_v45 }
  0x30   :  { %6600 = vmatprep.subr.bf16.mxu0 %v7051_v46  ;;  %v6131_v46 = vcombine.low %v961_v37, %v969_v38  ;;  %v865_v38 = vld [vmem:[%s9365_s7] sm:$0xff] }
  0x31   :  { %6621 = vmatpush3.bf16.msra.mxu1 %v7068_v63  ;;  %v6099_v63 = vcombine.low %v929_v50, %v937_v51  ;;  %v988_v50 = vld [vmem:[%s9365_s7 + $0x3d8] sm:$0xff] }
  0x32   :  { %6622 = vmatprep.subr.bf16.mxu1 %v7069_v0 }
  0x33   :  { %6601 = vmatpush3.bf16.msra.mxu0 %v7052_v47  ;;  %v6116_v47 = vcombine.high %v945_v43, %v953_v44 }
  0x34   :  { %6602 = vmatprep.subr.bf16.mxu0 %v7053_v48  ;;  %v6014_v48 = vld [vmem:[%s9367_s6] ss:$0 sm:$0xff] }
  0x35   :  { %6623 = vmatpush3.bf16.msra.mxu1 %v7070_v2  ;;  %v962_v2 = vld [vmem:[%s9365_s7 + $0x308] sm:$0xff] }
  0x36   :  { %6624 = vmatprep.subr.bf16.mxu1 %v7071_v3  ;;  %v6084_v3 = vcombine.high %v913_v60, %v921_v61 }
  0x37   :  { %6603 = vmatpush3.bf16.msra.mxu0 %v7054_v52 }
  0x38   :  { %6604 = vmatprep.subr.bf16.mxu0 %v7055_v54  ;;  %v6115_v54 = vcombine.low %v945_v43, %v953_v44 }
  0x39   :  { %6625 = vmatpush3.bf16.msra.mxu1 %v7072_v6  ;;  %v905_v6 = vld [vmem:[%s9365_s7 + $0x140] sm:$0xff] }
  0x3a   :  { %6626 = vmatprep.subr.bf16.mxu1 %v7073_v7 }
  0x3b   :  { %6605 = vmatpush3.bf16.msra.mxu0 %v7056_v58 }
  0x3c   :  { %6606 = vmatprep.subr.bf16.mxu0 %v7057_v59  ;;  %v986_v59 = vld [vmem:[%s9365_s7 + $0x3c8] sm:$0xff] }
  0x3d   :  { %6627 = vmatpush3.bf16.msra.mxu1 %v7074_v8  ;;  %v6149_v8 = vcombine.low %v978_v56, %v986_v59 }
  0x3e   :  { %6628 = vmatprep.subr.bf16.mxu1 %v7075_v9  ;;  %v6083_v9 = vcombine.low %v913_v60, %v921_v61 }
  0x3f   :  { %6607 = vmatpush3.bf16.msra.mxu0 %v7058_v62 }
  0x40   :  { %6992 = vmatprep.subr.bf16.mxu0 %v7335_v12 }
  0x41   :  { %6629 = vmatpush3.bf16.msra.mxu1 %v7076_v10  ;;  %v6134_v10 = vcombine.high %v962_v2, %v970_v4 }
  0x42   :  { %576 = vmatmul.mubr.bf16.vlgmr.msra.gmra.mxu0 %v5964_v1  ;;  %6998 = vmatprep.subr.bf16.mxu1 %v7335_v12  ;;  %v6150_v1 = vcombine.high %v978_v56, %v986_v59  ;;  %v972_v59 = vld [vmem:[%s9365_s7 + $0x358] sm:$0xff] }
  0x43   :  { %6994 = vmatprep.mubr.msk.bf16.mxu0 %vm7336_vm0, %v7335_v12 }
  0x44   :  { %760 = vmatmul.mubr.bf16.vlgmr.msra.gmra.mxu1 %v6015_v11  ;;  %v946_v11 = vld [vmem:[%s9365_s7 + $0x288] sm:$0xff] }
  0x45   :  { %7000 = vmatprep.mubr.msk.bf16.mxu1 %vm7336_vm0, %v7335_v12  ;;  %v6068_v12 = vcombine.high %v897_v5, %v905_v6 }
  0xe2   :  { %v6564_v13 = vpop.f32.mrf.mxu0 }
  0xe4   :  { %v6565_v14 = vpop.f32.mrf.mxu0  ;;  %v6586_v15 = vpop.f32.mrf.mxu1 }
  0xe5   :  { %v6566_v21 = vadd.f32 %v6565_v14, %v6564_v13  ;;  %v954_v13 = vld [vmem:[%s9365_s7 + $0x2c8] sm:$0xff]  ;;  %v881_v14 = vld [vmem:[%s9365_s7 + $0x80] sm:$0xff] }
  0xe6   :  { %v6567_v16 = vpop.f32.mrf.mxu0  ;;  %v6587_v17 = vpop.f32.mrf.mxu1 }
  0xe7   :  { %v498_v23 = vadd.f32 %v6566_v21, %v5959_v22  ;;  %v6588_v24 = vadd.f32 %v6587_v17, %v6586_v15  ;;  %v889_v15 = vld [vmem:[%s9365_s7 + $0xc0] sm:$0xff]  ;;  %v6133_v16 = vcombine.low %v962_v2, %v970_v4  ;;  %v6067_v17 = vcombine.low %v897_v5, %v905_v6  ;;  %v938_v21 = vld [vmem:[%s9365_s7 + $0x248] sm:$0xff]  ;;  %v948_v4 = vld [vmem:[%s9365_s7 + $0x298] sm:$0xff] }
  0xe8   :  { %v6568_v18 = vpop.f32.mrf.mxu0  ;;  %v6589_v19 = vpop.f32.mrf.mxu1  ;;  %v6117_v22 = vcombine.low %v946_v11, %v954_v13  ;;  %v956_v5 = vld [vmem:[%s9365_s7 + $0x2d8] sm:$0xff] }
  0xe9   :  { %v538_v27 = vadd.f32 %v6588_v24, %v498_v23  ;;  %v6118_v18 = vcombine.high %v946_v11, %v954_v13  ;;  %v6052_v19 = vcombine.high %v881_v14, %v889_v15  ;;  %v6051_v23 = vcombine.low %v881_v14, %v889_v15  ;;  %v931_v11 = vld [vmem:[%s9365_s7 + $0x210] sm:$0xff]  ;;  %v932_v13 = vld [vmem:[%s9365_s7 + $0x218] sm:$0xff] }
  0xea   :  { %v6590_v20 = vpop.f32.mrf.mxu1  ;;  %v940_v14 = vld [vmem:[%s9365_s7 + $0x258] sm:$0xff] }
  0xeb   :  { %v930_v20 = vld [vmem:[%s9365_s7 + $0x208] sm:$0xff] }
  0xec   :  { %v6102_v24 = vcombine.high %v930_v20, %v938_v21 }
 0x102   :  { %v6608_v25 = vpop.f32.mrf.mxu0 }
 0x104   :  { %v6609_v26 = vpop.f32.mrf.mxu0  ;;  %v6630_v45 = vpop.f32.mrf.mxu1 }
 0x105   :  { %v6610_v28 = vadd.f32 %v6609_v26, %v6608_v25  ;;  %v914_v25 = vld [vmem:[%s9365_s7 + $0x188] sm:$0xff] }
 0x106   :  { %v6611_v29 = vpop.f32.mrf.mxu0  ;;  %v6631_v49 = vpop.f32.mrf.mxu1  ;;  %v922_v26 = vld [vmem:[%s9365_s7 + $0x1c8] sm:$0xff] }
 0x107   :  { %v578_v30 = vadd.f32 %v6610_v28, %v538_v27  ;;  %v6632_v52 = vadd.f32 %v6631_v49, %v6630_v45  ;;  %v6101_v27 = vcombine.low %v930_v20, %v938_v21  ;;  %v6086_v28 = vcombine.high %v914_v25, %v922_v26  ;;  %v898_v29 = vld [vmem:[%s9365_s7 + $0x108] sm:$0xff]  ;;  %v923_v20 = vld [vmem:[%s9365_s7 + $0x1d0] sm:$0xff]  ;;  %v916_v21 = vld [vmem:[%s9365_s7 + $0x198] sm:$0xff] }
 0x108   :  { %v6612_v31 = vpop.f32.mrf.mxu0  ;;  %v6633_v53 = vpop.f32.mrf.mxu1 }
 0x109   :  { %v583_v34 = vmax.f32 %v578_v30, 0.0  ;;  %v762_v55 = vadd.f32 %v6632_v52, %v6014_v48  ;;  %v906_v30 = vld [vmem:[%s9365_s7 + $0x148] sm:$0xff]  ;;  %v6085_v31 = vcombine.low %v914_v25, %v922_v26  ;;  %v980_v48 = vld [vmem:[%s9365_s7 + $0x398] sm:$0xff] }
 0x10a   :  { %v6634_v58 = vpop.f32.mrf.mxu1  ;;  %v6070_v32 = vcombine.high %v898_v29, %v906_v30  ;;  %v6153_v52 = vcombine.low %v980_v48, %v988_v50  ;;  %v6154_v53 = vcombine.high %v980_v48, %v988_v50  ;;  %v875_v48 = vld [vmem:[%s9365_s7 + $0x50] sm:$0xff]  ;;  %v876_v50 = vld [vmem:[%s9365_s7 + $0x58] sm:$0xff] }
 0x10b   :  { %v769_v35 = vpack.c.bf16 %v583_v34, %v583_v34  ;;  %v767_v62 = vmax.f32 %v762_v55, 0.0  ;;  %v890_v34 = vld [vmem:[%s9365_s7 + $0xc8] sm:$0xff]  ;;  %v963_v55 = vld [vmem:[%s9365_s7 + $0x310] sm:$0xff]  ;;  %v964_v58 = vld [vmem:[%s9365_s7 + $0x318] sm:$0xff] }
 0x10c   :  { %v6053_v37 = vcombine.low %v882_v33, %v890_v34 }
 0x10d   :  { %v776_v39 = vsel %vm774_vm1, %v769_v35, 0  ;;  %v819_v0 = vpack.c.bf16 %v767_v62, %v767_v62  ;;  %v6069_v35 = vcombine.low %v898_v29, %v906_v30  ;;  %v900_v29 = vld [vmem:[%s9365_s7 + $0x118] sm:$0xff] }
 0x10e   :  { %6993 = vmatpush3.bf16.msra.mxu0 %v776_v39  ;;  %v873_v39 = vld [vmem:[%s9365_s7 + $0x40] sm:$0xff]  ;;  %v908_v30 = vld [vmem:[%s9365_s7 + $0x158] sm:$0xff] }
 0x10f   :  { %1717 = vmatprep.subr.bf16.mxu0 %v6148_v36  ;;  %v821_v7 = vsel %vm774_vm1, %v819_v0, 0  ;;  %v6054_v36 = vcombine.high %v882_v33, %v890_v34  ;;  %v6035_v43 = vcombine.low %v865_v38, %v873_v39  ;;  %v6138_v0 = vcombine.high %v964_v58, %v972_v59 }
 0x110   :  { %6999 = vmatpush3.bf16.msra.mxu1 %v821_v7 }
 0x111   :  { %6995 = vmatmul.mubr.msk.bf16.vlgmr.msra.gmra.mxu0 %vm770_vm2, %v768_v40  ;;  %1758 = vmatprep.subr.bf16.mxu1 %v6150_v1  ;;  %v947_v1 = vld [vmem:[%s9365_s7 + $0x290] sm:$0xff] }
 0x112   :  { %1718 = vmatpush1.bf16.msra.mxu0 %v6147_v41  ;;  %v6036_v41 = vcombine.high %v865_v38, %v873_v39  ;;  %v891_v38 = vld [vmem:[%s9365_s7 + $0xd0] sm:$0xff]  ;;  %v884_v39 = vld [vmem:[%s9365_s7 + $0x98] sm:$0xff] }
 0x113   :  { %1719 = vmatprep.subr.bf16.mxu0 %v6132_v42  ;;  %7001 = vmatmul.mubr.msk.bf16.vlgmr.msra.gmra.mxu1 %vm770_vm2, %v768_v40  ;;  %v866_v40 = vld [vmem:[%s9365_s7 + $0x8] sm:$0xff] }
 0x114   :  { %1759 = vmatpush1.bf16.msra.mxu1 %v6149_v8  ;;  %v874_v42 = vld [vmem:[%s9365_s7 + $0x48] sm:$0xff]  ;;  %v6137_v8 = vcombine.low %v964_v58, %v972_v59 }
 0x115   :  { %1760 = vmatprep.subr.bf16.mxu1 %v6134_v10  ;;  %v6037_v44 = vcombine.low %v866_v40, %v874_v42  ;;  %v6038_v45 = vcombine.high %v866_v40, %v874_v42  ;;  %v6122_v10 = vcombine.high %v948_v4, %v956_v5  ;;  %v892_v40 = vld [vmem:[%s9365_s7 + $0xd8] sm:$0xff]  ;;  %v982_v58 = vld [vmem:[%s9365_s7 + $0x3a8] sm:$0xff] }
 0x116   :  { %1720 = vmatpush1.bf16.msra.mxu0 %v6131_v46  ;;  %v979_v46 = vld [vmem:[%s9365_s7 + $0x390] sm:$0xff]  ;;  %v990_v59 = vld [vmem:[%s9365_s7 + $0x3e8] sm:$0xff] }
 0x117   :  { %1721 = vmatprep.subr.bf16.mxu0 %v6116_v47  ;;  %v987_v47 = vld [vmem:[%s9365_s7 + $0x3d0] sm:$0xff] }
 0x118   :  { %1761 = vmatpush1.bf16.msra.mxu1 %v6133_v16  ;;  %v6152_v49 = vcombine.high %v979_v46, %v987_v47  ;;  %v6151_v51 = vcombine.low %v979_v46, %v987_v47  ;;  %v6121_v16 = vcombine.low %v948_v4, %v956_v5  ;;  %v6058_v46 = vcombine.high %v884_v39, %v892_v40  ;;  %v867_v47 = vld [vmem:[%s9365_s7 + $0x10] sm:$0xff]  ;;  %v974_v4 = vld [vmem:[%s9365_s7 + $0x368] sm:$0xff] }
 0x119   :  { %1762 = vmatprep.subr.bf16.mxu1 %v6118_v18  ;;  %v6106_v18 = vcombine.high %v932_v13, %v940_v14 }
 0x11a   :  { %1722 = vmatpush1.bf16.msra.mxu0 %v6115_v54  ;;  %v7337_v54 = vmov 0  }
 0x11b   :  { %1723 = vmatprep.subr.bf16.mxu0 %v6100_v57  ;;  %1749 = vmatprep.mubr.bf16.mxu0 %v7337_v54  ;;  %v971_v57 = vld [vmem:[%s9365_s7 + $0x350] sm:$0xff] }
 0x11c   :  { %1763 = vmatpush1.bf16.msra.mxu1 %v6117_v22  ;;  %1790 = vmatprep.mubr.bf16.mxu1 %v7337_v54  ;;  %v6135_v7 = vcombine.low %v963_v55, %v971_v57  ;;  %v924_v22 = vld [vmem:[%s9365_s7 + $0x1d8] sm:$0xff] }
 0x11d   :  { %1764 = vmatprep.subr.bf16.mxu1 %v6102_v24  ;;  %v6105_v24 = vcombine.low %v932_v13, %v940_v14  ;;  %v6090_v26 = vcombine.high %v916_v21, %v924_v22  ;;  %v6089_v33 = vcombine.low %v916_v21, %v924_v22 }
 0x11e   :  { %1724 = vmatpush1.bf16.msra.mxu0 %v6099_v63  ;;  %v6136_v63 = vcombine.high %v963_v55, %v971_v57  ;;  %v989_v57 = vld [vmem:[%s9365_s7 + $0x3e0] sm:$0xff] }
 0x11f   :  { %1725 = vmatprep.subr.bf16.mxu0 %v6084_v3  ;;  %v955_v3 = vld [vmem:[%s9365_s7 + $0x2d0] sm:$0xff] }
 0x120   :  { %1765 = vmatpush1.bf16.msra.mxu1 %v6101_v27  ;;  %v6119_v15 = vcombine.low %v947_v1, %v955_v3  ;;  %v899_v27 = vld [vmem:[%s9365_s7 + $0x110] sm:$0xff] }
 0x121   :  { %1766 = vmatprep.subr.bf16.mxu1 %v6086_v28  ;;  %v907_v28 = vld [vmem:[%s9365_s7 + $0x150] sm:$0xff] }
 0x122   :  { %1726 = vmatpush1.bf16.msra.mxu0 %v6083_v9  ;;  %v6120_v9 = vcombine.high %v947_v1, %v955_v3  ;;  %v6071_v42 = vcombine.low %v899_v27, %v907_v28  ;;  %v965_v1 = vld [vmem:[%s9365_s7 + $0x320] sm:$0xff]  ;;  %v966_v3 = vld [vmem:[%s9365_s7 + $0x328] sm:$0xff] }
 0x123   :  { %1727 = vmatprep.subr.bf16.mxu0 %v6068_v12  ;;  %v939_v12 = vld [vmem:[%s9365_s7 + $0x250] sm:$0xff]  ;;  %v6141_v14 = vcombine.low %v966_v3, %v974_v4 }
 0x124   :  { %1767 = vmatpush1.bf16.msra.mxu1 %v6085_v31 }
 0x125   :  { %1768 = vmatprep.subr.bf16.mxu1 %v6070_v32 }
 0x126   :  { %1728 = vmatpush1.bf16.msra.mxu0 %v6067_v17  ;;  %v6104_v17 = vcombine.high %v931_v11, %v939_v12 }
 0x127   :  { %1729 = vmatprep.subr.bf16.mxu0 %v6052_v19  ;;  %v915_v19 = vld [vmem:[%s9365_s7 + $0x190] sm:$0xff] }
 0x128   :  { %1769 = vmatpush1.bf16.msra.mxu1 %v6069_v35  ;;  %v6088_v25 = vcombine.high %v915_v19, %v923_v20  ;;  %v6087_v32 = vcombine.low %v915_v19, %v923_v20  ;;  %v6072_v35 = vcombine.high %v899_v27, %v907_v28  ;;  %v934_v19 = vld [vmem:[%s9365_s7 + $0x228] sm:$0xff] }
 0x129   :  { %1770 = vmatprep.subr.bf16.mxu1 %v6054_v36  ;;  %v6074_v36 = vcombine.high %v900_v29, %v908_v30  ;;  %v942_v20 = vld [vmem:[%s9365_s7 + $0x268] sm:$0xff] }
 0x12a   :  { %1730 = vmatpush1.bf16.msra.mxu0 %v6051_v23  ;;  %v6103_v23 = vcombine.low %v931_v11, %v939_v12  ;;  %v950_v11 = vld [vmem:[%s9365_s7 + $0x2a8] sm:$0xff] }
 0x12b   :  { %1731 = vmatprep.subr.bf16.mxu0 %v6036_v41  ;;  %v958_v12 = vld [vmem:[%s9365_s7 + $0x2e8] sm:$0xff] }
 0x12c   :  { %1771 = vmatpush1.bf16.msra.mxu1 %v6053_v37  ;;  %v883_v37 = vld [vmem:[%s9365_s7 + $0x90] sm:$0xff]  ;;  %v6125_v22 = vcombine.low %v950_v11, %v958_v12  ;;  %v918_v27 = vld [vmem:[%s9365_s7 + $0x1a8] sm:$0xff] }
 0x12d   :  { %1772 = vmatprep.subr.bf16.mxu1 %v6038_v45  ;;  %v6056_v45 = vcombine.high %v883_v37, %v891_v38  ;;  %v926_v28 = vld [vmem:[%s9365_s7 + $0x1e8] sm:$0xff] }
 0x12e   :  { %1732 = vmatpush1.bf16.msra.mxu0 %v6035_v43  ;;  %v6073_v43 = vcombine.low %v900_v29, %v908_v30  ;;  %v6109_v30 = vcombine.low %v934_v19, %v942_v20 }
 0x12f   :  { %1799 = vmatprep.subr.bf16.mxu0 %v6152_v49  ;;  %v868_v49 = vld [vmem:[%s9365_s7 + $0x18] sm:$0xff] }
 0x130   :  { %1773 = vmatpush1.bf16.msra.mxu1 %v6037_v44  ;;  %v6042_v55 = vcombine.high %v868_v49, %v876_v50 }
 0x131   :  { %1840 = vmatprep.subr.bf16.mxu1 %v6154_v53  ;;  %v6040_v53 = vcombine.high %v867_v47, %v875_v48 }
 0x1d1   :  { %v812_v56 = vpop.f32.mrf.mxu0 }
 0x1d2   :  { %v818_v60 = vmul.f32 0.25, %v812_v56  ;;  %v981_v56 = vld [vmem:[%s9365_s7 + $0x3a0] sm:$0xff] }
 0x1d3   :  { %v6996_v61 = vpop.f32.mrf.mxu0  ;;  %v7806_v31 = vpop.f32.mrf.mxu1  ;;  %v6155_v5 = vcombine.low %v981_v56, %v989_v57 }
 0x1d4   :  { %v7752_v62 = vpack.c.bf16 %v818_v60, %v818_v60  ;;  %v6039_v60 = vcombine.low %v867_v47, %v875_v48  ;;  %v6041_v61 = vcombine.low %v868_v49, %v876_v50  ;;  %v869_v50 = vld [vmem:[%s9365_s7 + $0x20] sm:$0xff] }
 0x1d5   :  { %v815_v2 = vpop.f32.mrf.mxu0  ;;  %v7002_v34 = vpop.f32.mrf.mxu1 }
 0x1d6   :  { %1750 = vmatmul.mubr.bf16.vlgmr.msra.gmra.mxu0 %v7752_v62  ;;  %1791 = vmatmul.mubr.bf16.vlgmr.msra.gmra.mxu1 %v7752_v62  ;;  %v973_v2 = vld [vmem:[%s9365_s7 + $0x360] sm:$0xff] }
 0x1d7   :  { %1800 = vmatpush1.bf16.msra.mxu0 %v6151_v51  ;;  %1841 = vmatpush1.bf16.msra.mxu1 %v6153_v52  ;;  %v6997_v6 = vpop.f32.mrf.mxu0  ;;  %v860_v41 = vpop.f32.mrf.mxu1  ;;  %v6055_v51 = vcombine.low %v883_v37, %v891_v38  ;;  %v6057_v52 = vcombine.low %v884_v39, %v892_v40  ;;  %v6139_v13 = vcombine.low %v965_v1, %v973_v2  ;;  %v901_v34 = vld [vmem:[%s9365_s7 + $0x120] sm:$0xff]  ;;  %v910_v37 = vld [vmem:[%s9365_s7 + $0x168] sm:$0xff] }
 0x1d8   :  { %1801 = vmatprep.subr.bf16.mxu0 %v6136_v63  ;;  %1842 = vmatprep.subr.bf16.mxu1 %v6138_v0  ;;  %v6156_v63 = vcombine.high %v981_v56, %v989_v57  ;;  %v6158_v0 = vcombine.high %v982_v58, %v990_v59  ;;  %v6157_v6 = vcombine.low %v982_v58, %v990_v59  ;;  %v983_v59 = vld [vmem:[%s9365_s7 + $0x3b0] sm:$0xff] }
 0x1d9   :  { %1831 = vmatprep.mubr.bf16.mxu0 %v7337_v54  ;;  %1872 = vmatprep.mubr.bf16.mxu1 %v7337_v54  ;;  %v7003_v44 = vpop.f32.mrf.mxu1  ;;  %v6093_v39 = vcombine.low %v918_v27, %v926_v28 }
 0x1da   :  { %v886_v44 = vld [vmem:[%s9365_s7 + $0xa8] sm:$0xff] }
 0x1db   :  { %1802 = vmatpush1.bf16.msra.mxu0 %v6135_v7  ;;  %1843 = vmatpush1.bf16.msra.mxu1 %v6137_v8  ;;  %v6140_v7 = vcombine.high %v965_v1, %v973_v2  ;;  %v6142_v8 = vcombine.high %v966_v3, %v974_v4  ;;  %v967_v4 = vld [vmem:[%s9365_s7 + $0x330] sm:$0xff] }
 0x1dc   :  { %1803 = vmatprep.subr.bf16.mxu0 %v6120_v9  ;;  %1844 = vmatprep.subr.bf16.mxu1 %v6122_v10  ;;  %v949_v9 = vld [vmem:[%s9365_s7 + $0x2a0] sm:$0xff] }
 0x1dd   :  { %v957_v10 = vld [vmem:[%s9365_s7 + $0x2e0] sm:$0xff] }
 0x1de   :  { %v6123_v21 = vcombine.low %v949_v9, %v957_v10 }
 0x1df   :  { %1804 = vmatpush1.bf16.msra.mxu0 %v6119_v15  ;;  %1845 = vmatpush1.bf16.msra.mxu1 %v6121_v16  ;;  %v6124_v15 = vcombine.high %v949_v9, %v957_v10  ;;  %v6126_v16 = vcombine.high %v950_v11, %v958_v12  ;;  %v951_v12 = vld [vmem:[%s9365_s7 + $0x2b0] sm:$0xff] }
 0x1e0   :  { %1805 = vmatprep.subr.bf16.mxu0 %v6104_v17  ;;  %1846 = vmatprep.subr.bf16.mxu1 %v6106_v18  ;;  %v933_v17 = vld [vmem:[%s9365_s7 + $0x220] sm:$0xff] }
 0x1e1   :  { %v941_v18 = vld [vmem:[%s9365_s7 + $0x260] sm:$0xff] }
 0x1e2   :  { %v6107_v29 = vcombine.low %v933_v17, %v941_v18 }
 0x1e3   :  { %1806 = vmatpush1.bf16.msra.mxu0 %v6103_v23  ;;  %1847 = vmatpush1.bf16.msra.mxu1 %v6105_v24  ;;  %v6108_v23 = vcombine.high %v933_v17, %v941_v18  ;;  %v6110_v24 = vcombine.high %v934_v19, %v942_v20  ;;  %v935_v20 = vld [vmem:[%s9365_s7 + $0x230] sm:$0xff] }
 0x1e4   :  { %1807 = vmatprep.subr.bf16.mxu0 %v6088_v25  ;;  %1848 = vmatprep.subr.bf16.mxu1 %v6090_v26  ;;  %v917_v25 = vld [vmem:[%s9365_s7 + $0x1a0] sm:$0xff] }
 0x1e5   :  { %v925_v26 = vld [vmem:[%s9365_s7 + $0x1e0] sm:$0xff] }
 0x1e6   :  { %v6091_v38 = vcombine.low %v917_v25, %v925_v26 }
 0x1e7   :  { %1808 = vmatpush1.bf16.msra.mxu0 %v6087_v32  ;;  %1849 = vmatpush1.bf16.msra.mxu1 %v6089_v33  ;;  %v6092_v32 = vcombine.high %v917_v25, %v925_v26  ;;  %v6094_v33 = vcombine.high %v918_v27, %v926_v28  ;;  %v919_v28 = vld [vmem:[%s9365_s7 + $0x1b0] sm:$0xff] }
 0x1e8   :  { %1809 = vmatprep.subr.bf16.mxu0 %v6072_v35  ;;  %1850 = vmatprep.subr.bf16.mxu1 %v6074_v36  ;;  %v909_v35 = vld [vmem:[%s9365_s7 + $0x160] sm:$0xff]  ;;  %v902_v36 = vld [vmem:[%s9365_s7 + $0x128] sm:$0xff] }
 0x1e9   :  { %v6076_v40 = vcombine.high %v901_v34, %v909_v35  ;;  %v6078_v41 = vcombine.high %v902_v36, %v910_v37  ;;  %v6077_v47 = vcombine.low %v902_v36, %v910_v37  ;;  %v903_v37 = vld [vmem:[%s9365_s7 + $0x130] sm:$0xff] }
 0x1eb   :  { %1810 = vmatpush1.bf16.msra.mxu0 %v6071_v42  ;;  %1851 = vmatpush1.bf16.msra.mxu1 %v6073_v43  ;;  %v885_v42 = vld [vmem:[%s9365_s7 + $0xa0] sm:$0xff] }
 0x1ec   :  { %1811 = vmatprep.subr.bf16.mxu0 %v6056_v45  ;;  %1852 = vmatprep.subr.bf16.mxu1 %v6058_v46  ;;  %v893_v43 = vld [vmem:[%s9365_s7 + $0xe0] sm:$0xff]  ;;  %v894_v45 = vld [vmem:[%s9365_s7 + $0xe8] sm:$0xff]  ;;  %v6075_v46 = vcombine.low %v901_v34, %v909_v35 }
 0x1ed   :  { %v6060_v48 = vcombine.high %v885_v42, %v893_v43  ;;  %v6062_v49 = vcombine.high %v886_v44, %v894_v45  ;;  %v6061_v56 = vcombine.low %v886_v44, %v894_v45  ;;  %v887_v45 = vld [vmem:[%s9365_s7 + $0xb0] sm:$0xff] }
 0x1ef   :  { %1812 = vmatpush1.bf16.msra.mxu0 %v6055_v51  ;;  %1853 = vmatpush1.bf16.msra.mxu1 %v6057_v52  ;;  %v877_v51 = vld [vmem:[%s9365_s7 + $0x60] sm:$0xff]  ;;  %v870_v52 = vld [vmem:[%s9365_s7 + $0x28] sm:$0xff] }
 0x1f0   :  { %1813 = vmatprep.subr.bf16.mxu0 %v6040_v53  ;;  %1854 = vmatprep.subr.bf16.mxu1 %v6042_v55  ;;  %v878_v53 = vld [vmem:[%s9365_s7 + $0x68] sm:$0xff]  ;;  %v6059_v55 = vcombine.low %v885_v42, %v893_v43  ;;  %v6044_v57 = vcombine.high %v869_v50, %v877_v51 }
 0x1f1   :  { %v6046_v58 = vcombine.high %v870_v52, %v878_v53  ;;  %v6045_v1 = vcombine.low %v870_v52, %v878_v53  ;;  %v871_v53 = vld [vmem:[%s9365_s7 + $0x30] sm:$0xff] }
 0x1f3   :  { %1814 = vmatpush1.bf16.msra.mxu0 %v6039_v60  ;;  %1855 = vmatpush1.bf16.msra.mxu1 %v6041_v61  ;;  %v991_v60 = vld [vmem:[%s9365_s7 + $0x3f0] sm:$0xff]  ;;  %v984_v61 = vld [vmem:[%s9365_s7 + $0x3b8] sm:$0xff] }
 0x1f4   :  { %1881 = vmatprep.subr.bf16.mxu0 %v6156_v63  ;;  %1922 = vmatprep.subr.bf16.mxu1 %v6158_v0  ;;  %v992_v63 = vld [vmem:[%s9365_s7 + $0x3f8] sm:$0xff]  ;;  %v6043_v0 = vcombine.low %v869_v50, %v877_v51  ;;  %v6160_v2 = vcombine.high %v983_v59, %v991_v60 }
 0x1f5   :  { %v6162_v3 = vcombine.high %v984_v61, %v992_v63  ;;  %v6161_v9 = vcombine.low %v984_v61, %v992_v63  ;;  %v2158_v63 = vld [vmem:[%s9368_s9 + $0x380] sm:$0xff] }
 0x1f6   :  { %1832 = vmatmul.mubr.bf16.vlgmr.msra.gmra.mxu0 %v7752_v62  ;;  %1873 = vmatmul.mubr.bf16.vlgmr.msra.gmra.mxu1 %v7752_v62 }
 0x1f7   :  { %1882 = vmatpush1.bf16.msra.mxu0 %v6155_v5  ;;  %1923 = vmatpush1.bf16.msra.mxu1 %v6157_v6  ;;  %v975_v5 = vld [vmem:[%s9365_s7 + $0x370] sm:$0xff]  ;;  %v968_v6 = vld [vmem:[%s9365_s7 + $0x338] sm:$0xff] }
 0x1f8   :  { %1883 = vmatprep.subr.bf16.mxu0 %v6140_v7  ;;  %1924 = vmatprep.subr.bf16.mxu1 %v6142_v8  ;;  %v976_v7 = vld [vmem:[%s9365_s7 + $0x378] sm:$0xff]  ;;  %v6159_v8 = vcombine.low %v983_v59, %v991_v60  ;;  %v6144_v10 = vcombine.high %v967_v4, %v975_v5 }
 0x1f9   :  { %1913 = vmatprep.mubr.bf16.mxu0 %v7337_v54  ;;  %1954 = vmatprep.mubr.bf16.mxu1 %v7337_v54  ;;  %v6146_v11 = vcombine.high %v968_v6, %v976_v7  ;;  %v6145_v17 = vcombine.low %v968_v6, %v976_v7  ;;  %v2142_v7 = vld [vmem:[%s9368_s9 + $0x300] sm:$0xff] }
 0x1fb   :  { %1884 = vmatpush1.bf16.msra.mxu0 %v6139_v13  ;;  %1925 = vmatpush1.bf16.msra.mxu1 %v6141_v14  ;;  %v959_v13 = vld [vmem:[%s9365_s7 + $0x2f0] sm:$0xff]  ;;  %v952_v14 = vld [vmem:[%s9365_s7 + $0x2b8] sm:$0xff] }
 0x1fc   :  { %1885 = vmatprep.subr.bf16.mxu0 %v6124_v15  ;;  %1926 = vmatprep.subr.bf16.mxu1 %v6126_v16  ;;  %v960_v15 = vld [vmem:[%s9365_s7 + $0x2f8] sm:$0xff]  ;;  %v6143_v16 = vcombine.low %v967_v4, %v975_v5  ;;  %v6128_v18 = vcombine.high %v951_v12, %v959_v13 }
 0x1fd   :  { %v6130_v19 = vcombine.high %v952_v14, %v960_v15  ;;  %v6129_v25 = vcombine.low %v952_v14, %v960_v15  ;;  %v2126_v15 = vld [vmem:[%s9368_s9 + $0x280] sm:$0xff] }
 0x1ff   :  { %1886 = vmatpush1.bf16.msra.mxu0 %v6123_v21  ;;  %1927 = vmatpush1.bf16.msra.mxu1 %v6125_v22  ;;  %v943_v21 = vld [vmem:[%s9365_s7 + $0x270] sm:$0xff]  ;;  %v936_v22 = vld [vmem:[%s9365_s7 + $0x238] sm:$0xff] }
 0x200   :  { %1887 = vmatprep.subr.bf16.mxu0 %v6108_v23  ;;  %1928 = vmatprep.subr.bf16.mxu1 %v6110_v24  ;;  %v944_v23 = vld [vmem:[%s9365_s7 + $0x278] sm:$0xff]  ;;  %v6127_v24 = vcombine.low %v951_v12, %v959_v13  ;;  %v6112_v26 = vcombine.high %v935_v20, %v943_v21 }
 0x201   :  { %v6114_v27 = vcombine.high %v936_v22, %v944_v23  ;;  %v6113_v34 = vcombine.low %v936_v22, %v944_v23  ;;  %v2110_v23 = vld [vmem:[%s9368_s9 + $0x200] sm:$0xff] }
 0x203   :  { %1888 = vmatpush1.bf16.msra.mxu0 %v6107_v29  ;;  %1929 = vmatpush1.bf16.msra.mxu1 %v6109_v30  ;;  %v927_v29 = vld [vmem:[%s9365_s7 + $0x1f0] sm:$0xff]  ;;  %v920_v30 = vld [vmem:[%s9365_s7 + $0x1b8] sm:$0xff] }
 0x204   :  { %1889 = vmatprep.subr.bf16.mxu0 %v6092_v32  ;;  %1930 = vmatprep.subr.bf16.mxu1 %v6094_v33  ;;  %v928_v32 = vld [vmem:[%s9365_s7 + $0x1f8] sm:$0xff]  ;;  %v6111_v33 = vcombine.low %v935_v20, %v943_v21  ;;  %v6096_v35 = vcombine.high %v919_v28, %v927_v29 }
 0x205   :  { %v6098_v36 = vcombine.high %v920_v30, %v928_v32  ;;  %v6097_v42 = vcombine.low %v920_v30, %v928_v32  ;;  %v2094_v30 = vld [vmem:[%s9368_s9 + $0x180] sm:$0xff] }
 0x206   :  { %v2102_v32 = vld [vmem:[%s9368_s9 + $0x1c0] sm:$0xff] }
 0x207   :  { %1890 = vmatpush1.bf16.msra.mxu0 %v6091_v38  ;;  %1931 = vmatpush1.bf16.msra.mxu1 %v6093_v39  ;;  %v911_v38 = vld [vmem:[%s9365_s7 + $0x170] sm:$0xff]  ;;  %v904_v39 = vld [vmem:[%s9365_s7 + $0x138] sm:$0xff] }
 0x208   :  { %1891 = vmatprep.subr.bf16.mxu0 %v6076_v40  ;;  %1932 = vmatprep.subr.bf16.mxu1 %v6078_v41  ;;  %v912_v40 = vld [vmem:[%s9365_s7 + $0x178] sm:$0xff]  ;;  %v6095_v41 = vcombine.low %v919_v28, %v927_v29  ;;  %v6080_v43 = vcombine.high %v903_v37, %v911_v38 }
 0x209   :  { %v6082_v44 = vcombine.high %v904_v39, %v912_v40  ;;  %v6081_v50 = vcombine.low %v904_v39, %v912_v40  ;;  %v2078_v39 = vld [vmem:[%s9368_s9 + $0x100] sm:$0xff] }
 0x20a   :  { %v2086_v40 = vld [vmem:[%s9368_s9 + $0x140] sm:$0xff] }
 0x20b   :  { %1892 = vmatpush1.bf16.msra.mxu0 %v6075_v46  ;;  %1933 = vmatpush1.bf16.msra.mxu1 %v6077_v47  ;;  %v895_v46 = vld [vmem:[%s9365_s7 + $0xf0] sm:$0xff]  ;;  %v888_v47 = vld [vmem:[%s9365_s7 + $0xb8] sm:$0xff] }
 0x20c   :  { %1893 = vmatprep.subr.bf16.mxu0 %v6060_v48  ;;  %1934 = vmatprep.subr.bf16.mxu1 %v6062_v49  ;;  %v896_v48 = vld [vmem:[%s9365_s7 + $0xf8] sm:$0xff]  ;;  %v6079_v49 = vcombine.low %v903_v37, %v911_v38  ;;  %v6064_v51 = vcombine.high %v887_v45, %v895_v46  ;;  %v6212_v37 = vcombine.high %v2094_v30, %v2102_v32 }
 0x20d   :  { %v6066_v52 = vcombine.high %v888_v47, %v896_v48  ;;  %v6065_v59 = vcombine.low %v888_v47, %v896_v48  ;;  %v2062_v47 = vld [vmem:[%s9368_s9 + $0x80] sm:$0xff] }
 0x20e   :  { %v2070_v48 = vld [vmem:[%s9368_s9 + $0xc0] sm:$0xff] }
 0x20f   :  { %1894 = vmatpush1.bf16.msra.mxu0 %v6059_v55  ;;  %1935 = vmatpush1.bf16.msra.mxu1 %v6061_v56  ;;  %v879_v55 = vld [vmem:[%s9365_s7 + $0x70] sm:$0xff]  ;;  %v872_v56 = vld [vmem:[%s9365_s7 + $0x38] sm:$0xff] }
 0x210   :  { %1895 = vmatprep.subr.bf16.mxu0 %v6044_v57  ;;  %1936 = vmatprep.subr.bf16.mxu1 %v6046_v58  ;;  %v880_v57 = vld [vmem:[%s9365_s7 + $0x78] sm:$0xff]  ;;  %v6063_v58 = vcombine.low %v887_v45, %v895_v46  ;;  %v6048_v60 = vcombine.high %v871_v53, %v879_v55  ;;  %v6196_v45 = vcombine.high %v2078_v39, %v2086_v40 }
 0x211   :  { %v6050_v61 = vcombine.high %v872_v56, %v880_v57  ;;  %v6049_v4 = vcombine.low %v872_v56, %v880_v57  ;;  %v2046_v56 = vld [vmem:[%s9368_s9] sm:$0xff] }
 0x212   :  { %v2054_v57 = vld [vmem:[%s9368_s9 + $0x40] sm:$0xff] }
 0x213   :  { %1896 = vmatpush1.bf16.msra.mxu0 %v6043_v0  ;;  %1937 = vmatpush1.bf16.msra.mxu1 %v6045_v1  ;;  %v2166_v0 = vld [vmem:[%s9368_s9 + $0x3c0] sm:$0xff]  ;;  %v2159_v1 = vld [vmem:[%s9368_s9 + $0x388] sm:$0xff] }
 0x214   :  { %1963 = vmatprep.subr.bf16.mxu0 %v6160_v2  ;;  %2004 = vmatprep.subr.bf16.mxu1 %v6162_v3  ;;  %v2167_v2 = vld [vmem:[%s9368_s9 + $0x3c8] sm:$0xff]  ;;  %v6047_v3 = vcombine.low %v871_v53, %v879_v55  ;;  %v6276_v5 = vcombine.high %v2158_v63, %v2166_v0  ;;  %v6180_v53 = vcombine.high %v2062_v47, %v2070_v48 }
 0x215   :  { %v6278_v6 = vcombine.high %v2159_v1, %v2167_v2  ;;  %v6277_v12 = vcombine.low %v2159_v1, %v2167_v2  ;;  %v2160_v1 = vld [vmem:[%s9368_s9 + $0x390] sm:$0xff] }
 0x216   :  { %1914 = vmatmul.mubr.bf16.vlgmr.msra.gmra.mxu0 %v7752_v62  ;;  %1955 = vmatmul.mubr.bf16.vlgmr.msra.gmra.mxu1 %v7752_v62  ;;  %v2168_v2 = vld [vmem:[%s9368_s9 + $0x3d0] sm:$0xff] }
 0x217   :  { %1964 = vmatpush1.bf16.msra.mxu0 %v6159_v8  ;;  %2005 = vmatpush1.bf16.msra.mxu1 %v6161_v9  ;;  %v2150_v8 = vld [vmem:[%s9368_s9 + $0x340] sm:$0xff]  ;;  %v2143_v9 = vld [vmem:[%s9368_s9 + $0x308] sm:$0xff] }
 0x218   :  { %1965 = vmatprep.subr.bf16.mxu0 %v6144_v10  ;;  %2006 = vmatprep.subr.bf16.mxu1 %v6146_v11  ;;  %v2151_v10 = vld [vmem:[%s9368_s9 + $0x348] sm:$0xff]  ;;  %v6275_v11 = vcombine.low %v2158_v63, %v2166_v0  ;;  %v6260_v13 = vcombine.high %v2142_v7, %v2150_v8  ;;  %v6164_v63 = vcombine.high %v2046_v56, %v2054_v57 }
 0x219   :  { %1995 = vmatprep.mubr.bf16.mxu0 %v7337_v54  ;;  %2036 = vmatprep.mubr.bf16.mxu1 %v7337_v54  ;;  %v6262_v14 = vcombine.high %v2143_v9, %v2151_v10  ;;  %v6261_v20 = vcombine.low %v2143_v9, %v2151_v10  ;;  %v2144_v10 = vld [vmem:[%s9368_s9 + $0x310] sm:$0xff] }
 0x21b   :  { %1966 = vmatpush1.bf16.msra.mxu0 %v6143_v16  ;;  %2007 = vmatpush1.bf16.msra.mxu1 %v6145_v17  ;;  %v2134_v16 = vld [vmem:[%s9368_s9 + $0x2c0] sm:$0xff]  ;;  %v2127_v17 = vld [vmem:[%s9368_s9 + $0x288] sm:$0xff] }
 0x21c   :  { %1967 = vmatprep.subr.bf16.mxu0 %v6128_v18  ;;  %2008 = vmatprep.subr.bf16.mxu1 %v6130_v19  ;;  %v2135_v18 = vld [vmem:[%s9368_s9 + $0x2c8] sm:$0xff]  ;;  %v6259_v19 = vcombine.low %v2142_v7, %v2150_v8  ;;  %v6244_v21 = vcombine.high %v2126_v15, %v2134_v16  ;;  %v6280_v8 = vcombine.high %v2160_v1, %v2168_v2 }
 0x21d   :  { %v6246_v22 = vcombine.high %v2127_v17, %v2135_v18 }
 0x21f   :  { %1968 = vmatpush1.bf16.msra.mxu0 %v6127_v24  ;;  %2009 = vmatpush1.bf16.msra.mxu1 %v6129_v25  ;;  %v2118_v24 = vld [vmem:[%s9368_s9 + $0x240] sm:$0xff]  ;;  %v2119_v25 = vld [vmem:[%s9368_s9 + $0x248] sm:$0xff] }
 0x220   :  { %1969 = vmatprep.subr.bf16.mxu0 %v6112_v26  ;;  %2010 = vmatprep.subr.bf16.mxu1 %v6114_v27  ;;  %v6243_v26 = vcombine.low %v2126_v15, %v2134_v16  ;;  %v6245_v27 = vcombine.low %v2127_v17, %v2135_v18  ;;  %v6228_v28 = vcombine.high %v2110_v23, %v2118_v24  ;;  %v2128_v18 = vld [vmem:[%s9368_s9 + $0x290] sm:$0xff] }
 0x223   :  { %1970 = vmatpush1.bf16.msra.mxu0 %v6111_v33  ;;  %2011 = vmatpush1.bf16.msra.mxu1 %v6113_v34  ;;  %v2095_v33 = vld [vmem:[%s9368_s9 + $0x188] sm:$0xff] }
 0x224   :  { %1971 = vmatprep.subr.bf16.mxu0 %v6096_v35  ;;  %2012 = vmatprep.subr.bf16.mxu1 %v6098_v36  ;;  %v2103_v34 = vld [vmem:[%s9368_s9 + $0x1c8] sm:$0xff]  ;;  %v6227_v35 = vcombine.low %v2110_v23, %v2118_v24 }
 0x225   :  { %v6214_v38 = vcombine.high %v2095_v33, %v2103_v34 }
 0x227   :  { %1972 = vmatpush1.bf16.msra.mxu0 %v6095_v41  ;;  %2013 = vmatpush1.bf16.msra.mxu1 %v6097_v42  ;;  %v2079_v41 = vld [vmem:[%s9368_s9 + $0x108] sm:$0xff] }
 0x228   :  { %1973 = vmatprep.subr.bf16.mxu0 %v6080_v43  ;;  %2014 = vmatprep.subr.bf16.mxu1 %v6082_v44  ;;  %v2087_v42 = vld [vmem:[%s9368_s9 + $0x148] sm:$0xff]  ;;  %v6211_v43 = vcombine.low %v2094_v30, %v2102_v32  ;;  %v6213_v44 = vcombine.low %v2095_v33, %v2103_v34  ;;  %v2096_v34 = vld [vmem:[%s9368_s9 + $0x190] sm:$0xff] }
 0x229   :  { %v6198_v46 = vcombine.high %v2079_v41, %v2087_v42 }
 0x22b   :  { %1974 = vmatpush1.bf16.msra.mxu0 %v6079_v49  ;;  %2015 = vmatpush1.bf16.msra.mxu1 %v6081_v50  ;;  %v2063_v49 = vld [vmem:[%s9368_s9 + $0x88] sm:$0xff] }
 0x22c   :  { %1975 = vmatprep.subr.bf16.mxu0 %v6064_v51  ;;  %2016 = vmatprep.subr.bf16.mxu1 %v6066_v52  ;;  %v2071_v50 = vld [vmem:[%s9368_s9 + $0xc8] sm:$0xff]  ;;  %v6195_v51 = vcombine.low %v2078_v39, %v2086_v40  ;;  %v6197_v52 = vcombine.low %v2079_v41, %v2087_v42  ;;  %v2080_v42 = vld [vmem:[%s9368_s9 + $0x110] sm:$0xff] }
 0x22d   :  { %v6182_v55 = vcombine.high %v2063_v49, %v2071_v50 }
 0x22f   :  { %1976 = vmatpush1.bf16.msra.mxu0 %v6063_v58  ;;  %2017 = vmatpush1.bf16.msra.mxu1 %v6065_v59  ;;  %v2047_v58 = vld [vmem:[%s9368_s9 + $0x8] sm:$0xff] }
 0x230   :  { %1977 = vmatprep.subr.bf16.mxu0 %v6048_v60  ;;  %2018 = vmatprep.subr.bf16.mxu1 %v6050_v61  ;;  %v2055_v59 = vld [vmem:[%s9368_s9 + $0x48] sm:$0xff]  ;;  %v6179_v60 = vcombine.low %v2062_v47, %v2070_v48  ;;  %v6181_v61 = vcombine.low %v2063_v49, %v2071_v50  ;;  %v2064_v50 = vld [vmem:[%s9368_s9 + $0x90] sm:$0xff] }
 0x231   :  { %v6166_v0 = vcombine.high %v2047_v58, %v2055_v59  ;;  %v6165_v7 = vcombine.low %v2047_v58, %v2055_v59  ;;  %v2048_v59 = vld [vmem:[%s9368_s9 + $0x10] sm:$0xff] }
 0x233   :  { %1978 = vmatpush1.bf16.msra.mxu0 %v6047_v3  ;;  %2019 = vmatpush1.bf16.msra.mxu1 %v6049_v4  ;;  %v2161_v3 = vld [vmem:[%s9368_s9 + $0x398] sm:$0xff] }
 0x234   :  { %2898 = vmatprep.subr.bf16.mxu0 %v6276_v5  ;;  %2939 = vmatprep.subr.bf16.mxu1 %v6278_v6  ;;  %v2169_v4 = vld [vmem:[%s9368_s9 + $0x3d8] sm:$0xff]  ;;  %v863_v5 = vmul.f32 0.25, %v7806_v31  ;;  %v6163_v6 = vcombine.low %v2046_v56, %v2054_v57 }
 0x235   :  { %v6282_v9 = vcombine.high %v2161_v3, %v2169_v4  ;;  %v2145_v31 = vld [vmem:[%s9368_s9 + $0x318] sm:$0xff]  ;;  %v6281_v15 = vcombine.low %v2161_v3, %v2169_v4  ;;  %v2162_v4 = vld [vmem:[%s9368_s9 + $0x3a0] sm:$0xff] }
 0x236   :  { %1996 = vmatmul.mubr.bf16.vlgmr.msra.gmra.mxu0 %v7752_v62  ;;  %2037 = vmatmul.mubr.bf16.vlgmr.msra.gmra.mxu1 %v7752_v62  ;;  %v2111_v62 = vld [vmem:[%s9368_s9 + $0x208] sm:$0xff] }
 0x237   :  { %2899 = vmatpush1.bf16.msra.mxu0 %v6275_v11  ;;  %2940 = vmatpush1.bf16.msra.mxu1 %v6277_v12  ;;  %v6230_v29 = vcombine.high %v2111_v62, %v2119_v25  ;;  %v6229_v36 = vcombine.low %v2111_v62, %v2119_v25  ;;  %v2152_v11 = vld [vmem:[%s9368_s9 + $0x350] sm:$0xff]  ;;  %v2153_v12 = vld [vmem:[%s9368_s9 + $0x358] sm:$0xff] }
 0x238   :  { %2900 = vmatprep.subr.bf16.mxu0 %v6260_v13  ;;  %2941 = vmatprep.subr.bf16.mxu1 %v6262_v14  ;;  %v8157_v13 = vpack.c.bf16 %v863_v5, %v863_v5  ;;  %v6279_v14 = vcombine.low %v2160_v1, %v2168_v2  ;;  %v6264_v16 = vcombine.high %v2144_v10, %v2152_v11  ;;  %v2112_v25 = vld [vmem:[%s9368_s9 + $0x210] sm:$0xff]  ;;  %v2170_v5 = vld [vmem:[%s9368_s9 + $0x3e0] sm:$0xff] }
 0x239   :  { %2930 = vmatprep.mubr.bf16.mxu0 %v7337_v54  ;;  %2971 = vmatprep.mubr.bf16.mxu1 %v7337_v54  ;;  %v6266_v17 = vcombine.high %v2145_v31, %v2153_v12  ;;  %v6265_v23 = vcombine.low %v2145_v31, %v2153_v12  ;;  %v2146_v31 = vld [vmem:[%s9368_s9 + $0x320] sm:$0xff] }
 0x23a   :  { %v2154_v12 = vld [vmem:[%s9368_s9 + $0x360] sm:$0xff] }
 0x23b   :  { %2901 = vmatpush1.bf16.msra.mxu0 %v6259_v19  ;;  %2942 = vmatpush1.bf16.msra.mxu1 %v6261_v20  ;;  %v2136_v19 = vld [vmem:[%s9368_s9 + $0x2d0] sm:$0xff]  ;;  %v2129_v20 = vld [vmem:[%s9368_s9 + $0x298] sm:$0xff] }
 0x23c   :  { %2902 = vmatprep.subr.bf16.mxu0 %v6244_v21  ;;  %2943 = vmatprep.subr.bf16.mxu1 %v6246_v22  ;;  %v2137_v21 = vld [vmem:[%s9368_s9 + $0x2d8] sm:$0xff]  ;;  %v6263_v22 = vcombine.low %v2144_v10, %v2152_v11  ;;  %v6248_v24 = vcombine.high %v2128_v18, %v2136_v19  ;;  %v6284_v10 = vcombine.high %v2162_v4, %v2170_v5 }
 0x23d   :  { %v6250_v62 = vcombine.high %v2129_v20, %v2137_v21  ;;  %v6249_v30 = vcombine.low %v2129_v20, %v2137_v21  ;;  %v2130_v20 = vld [vmem:[%s9368_s9 + $0x2a0] sm:$0xff] }
 0x23e   :  { %v2138_v21 = vld [vmem:[%s9368_s9 + $0x2e0] sm:$0xff] }
 0x23f   :  { %2903 = vmatpush1.bf16.msra.mxu0 %v6243_v26  ;;  %2944 = vmatpush1.bf16.msra.mxu1 %v6245_v27  ;;  %v2120_v26 = vld [vmem:[%s9368_s9 + $0x250] sm:$0xff]  ;;  %v2113_v27 = vld [vmem:[%s9368_s9 + $0x218] sm:$0xff] }
 0x240   :  { %2904 = vmatprep.subr.bf16.mxu0 %v6228_v28  ;;  %2945 = vmatprep.subr.bf16.mxu1 %v6230_v29  ;;  %v2121_v28 = vld [vmem:[%s9368_s9 + $0x258] sm:$0xff]  ;;  %v6247_v29 = vcombine.low %v2128_v18, %v2136_v19  ;;  %v6232_v32 = vcombine.high %v2112_v25, %v2120_v26  ;;  %v6268_v18 = vcombine.high %v2146_v31, %v2154_v12 }
 0x241   :  { %v6234_v33 = vcombine.high %v2113_v27, %v2121_v28  ;;  %v6233_v39 = vcombine.low %v2113_v27, %v2121_v28  ;;  %v2114_v27 = vld [vmem:[%s9368_s9 + $0x220] sm:$0xff] }
 0x242   :  { %v2122_v28 = vld [vmem:[%s9368_s9 + $0x260] sm:$0xff] }
 0x243   :  { %2905 = vmatpush1.bf16.msra.mxu0 %v6227_v35  ;;  %2946 = vmatpush1.bf16.msra.mxu1 %v6229_v36  ;;  %v2104_v35 = vld [vmem:[%s9368_s9 + $0x1d0] sm:$0xff]  ;;  %v2097_v36 = vld [vmem:[%s9368_s9 + $0x198] sm:$0xff] }
 0x244   :  { %2906 = vmatprep.subr.bf16.mxu0 %v6212_v37  ;;  %2947 = vmatprep.subr.bf16.mxu1 %v6214_v38  ;;  %v2105_v37 = vld [vmem:[%s9368_s9 + $0x1d8] sm:$0xff]  ;;  %v6231_v38 = vcombine.low %v2112_v25, %v2120_v26  ;;  %v6216_v40 = vcombine.high %v2096_v34, %v2104_v35  ;;  %v6252_v25 = vcombine.high %v2130_v20, %v2138_v21 }
 0x245   :  { %v6218_v41 = vcombine.high %v2097_v36, %v2105_v37  ;;  %v6217_v47 = vcombine.low %v2097_v36, %v2105_v37  ;;  %v6236_v36 = vcombine.high %v2114_v27, %v2122_v28 }
 0x247   :  { %2907 = vmatpush1.bf16.msra.mxu0 %v6211_v43  ;;  %2948 = vmatpush1.bf16.msra.mxu1 %v6213_v44  ;;  %v2088_v43 = vld [vmem:[%s9368_s9 + $0x150] sm:$0xff]  ;;  %v2081_v44 = vld [vmem:[%s9368_s9 + $0x118] sm:$0xff] }
 0x248   :  { %2908 = vmatprep.subr.bf16.mxu0 %v6196_v45  ;;  %2949 = vmatprep.subr.bf16.mxu1 %v6198_v46  ;;  %v2089_v45 = vld [vmem:[%s9368_s9 + $0x158] sm:$0xff]  ;;  %v6215_v46 = vcombine.low %v2096_v34, %v2104_v35  ;;  %v6200_v48 = vcombine.high %v2080_v42, %v2088_v43  ;;  %v2098_v34 = vld [vmem:[%s9368_s9 + $0x1a0] sm:$0xff] }
 0x249   :  { %v6202_v49 = vcombine.high %v2081_v44, %v2089_v45  ;;  %v6201_v56 = vcombine.low %v2081_v44, %v2089_v45  ;;  %v2106_v35 = vld [vmem:[%s9368_s9 + $0x1e0] sm:$0xff] }
 0x24a   :  { %v6220_v44 = vcombine.high %v2098_v34, %v2106_v35 }
 0x24b   :  { %2909 = vmatpush1.bf16.msra.mxu0 %v6195_v51  ;;  %2950 = vmatpush1.bf16.msra.mxu1 %v6197_v52  ;;  %v2072_v51 = vld [vmem:[%s9368_s9 + $0xd0] sm:$0xff]  ;;  %v2065_v52 = vld [vmem:[%s9368_s9 + $0x98] sm:$0xff] }
 0x24c   :  { %2910 = vmatprep.subr.bf16.mxu0 %v6180_v53  ;;  %2951 = vmatprep.subr.bf16.mxu1 %v6182_v55  ;;  %v2073_v53 = vld [vmem:[%s9368_s9 + $0xd8] sm:$0xff]  ;;  %v6199_v55 = vcombine.low %v2080_v42, %v2088_v43  ;;  %v6184_v57 = vcombine.high %v2064_v50, %v2072_v51  ;;  %v2082_v42 = vld [vmem:[%s9368_s9 + $0x120] sm:$0xff] }
 0x24d   :  { %v6186_v58 = vcombine.high %v2065_v52, %v2073_v53  ;;  %v6185_v1 = vcombine.low %v2065_v52, %v2073_v53  ;;  %v2090_v43 = vld [vmem:[%s9368_s9 + $0x160] sm:$0xff] }
 0x24e   :  { %v6204_v52 = vcombine.high %v2082_v42, %v2090_v43 }
 0x24f   :  { %2911 = vmatpush1.bf16.msra.mxu0 %v6179_v60  ;;  %2952 = vmatpush1.bf16.msra.mxu1 %v6181_v61  ;;  %v2056_v60 = vld [vmem:[%s9368_s9 + $0x50] sm:$0xff]  ;;  %v2049_v61 = vld [vmem:[%s9368_s9 + $0x18] sm:$0xff] }
 0x250   :  { %2912 = vmatprep.subr.bf16.mxu0 %v6164_v63  ;;  %2953 = vmatprep.subr.bf16.mxu1 %v6166_v0  ;;  %v2057_v63 = vld [vmem:[%s9368_s9 + $0x58] sm:$0xff]  ;;  %v6183_v0 = vcombine.low %v2064_v50, %v2072_v51  ;;  %v6168_v2 = vcombine.high %v2048_v59, %v2056_v60  ;;  %v2066_v50 = vld [vmem:[%s9368_s9 + $0xa0] sm:$0xff] }
 0x251   :  { %v6170_v3 = vcombine.high %v2049_v61, %v2057_v63  ;;  %v2074_v51 = vld [vmem:[%s9368_s9 + $0xe0] sm:$0xff] }
 0x253   :  { %2913 = vmatpush1.bf16.msra.mxu0 %v6163_v6  ;;  %2954 = vmatpush1.bf16.msra.mxu1 %v6165_v7  ;;  %v2163_v6 = vld [vmem:[%s9368_s9 + $0x3a8] sm:$0xff] }
 0x254   :  { %2980 = vmatprep.subr.bf16.mxu0 %v6280_v8  ;;  %3021 = vmatprep.subr.bf16.mxu1 %v6282_v9  ;;  %v2171_v7 = vld [vmem:[%s9368_s9 + $0x3e8] sm:$0xff]  ;;  %v6167_v8 = vcombine.low %v2048_v59, %v2056_v60  ;;  %v6169_v9 = vcombine.low %v2049_v61, %v2057_v63  ;;  %v2050_v59 = vld [vmem:[%s9368_s9 + $0x20] sm:$0xff]  ;;  %v6188_v61 = vcombine.high %v2066_v50, %v2074_v51 }
 0x255   :  { %v6286_v11 = vcombine.high %v2163_v6, %v2171_v7  ;;  %v2058_v60 = vld [vmem:[%s9368_s9 + $0x60] sm:$0xff] }
 0x256   :  { %2931 = vmatmul.mubr.bf16.vlgmr.msra.gmra.mxu0 %v8157_v13  ;;  %2972 = vmatmul.mubr.bf16.vlgmr.msra.gmra.mxu1 %v8157_v13 }
 0x257   :  { %2981 = vmatpush1.bf16.msra.mxu0 %v6279_v14  ;;  %3022 = vmatpush1.bf16.msra.mxu1 %v6281_v15  ;;  %v2147_v14 = vld [vmem:[%s9368_s9 + $0x328] sm:$0xff] }
 0x258   :  { %2982 = vmatprep.subr.bf16.mxu0 %v6264_v16  ;;  %3023 = vmatprep.subr.bf16.mxu1 %v6266_v17  ;;  %v2155_v15 = vld [vmem:[%s9368_s9 + $0x368] sm:$0xff]  ;;  %v6283_v16 = vcombine.low %v2162_v4, %v2170_v5  ;;  %v6285_v17 = vcombine.low %v2163_v6, %v2171_v7  ;;  %v2164_v4 = vld [vmem:[%s9368_s9 + $0x3b0] sm:$0xff]  ;;  %v6172_v6 = vcombine.high %v2050_v59, %v2058_v60 }
 0x259   :  { %3012 = vmatprep.mubr.bf16.mxu0 %v7337_v54  ;;  %3053 = vmatprep.mubr.bf16.mxu1 %v7337_v54  ;;  %v6270_v19 = vcombine.high %v2147_v14, %v2155_v15  ;;  %v2172_v5 = vld [vmem:[%s9368_s9 + $0x3f0] sm:$0xff] }
 0x25b   :  { %2983 = vmatpush1.bf16.msra.mxu0 %v6263_v22  ;;  %3024 = vmatpush1.bf16.msra.mxu1 %v6265_v23  ;;  %v2131_v22 = vld [vmem:[%s9368_s9 + $0x2a8] sm:$0xff] }
 0x25c   :  { %2984 = vmatprep.subr.bf16.mxu0 %v6248_v24  ;;  %3025 = vmatprep.subr.bf16.mxu1 %v6250_v62  ;;  %v2139_v23 = vld [vmem:[%s9368_s9 + $0x2e8] sm:$0xff]  ;;  %v6267_v24 = vcombine.low %v2146_v31, %v2154_v12  ;;  %v6269_v62 = vcombine.low %v2147_v14, %v2155_v15  ;;  %v2148_v31 = vld [vmem:[%s9368_s9 + $0x330] sm:$0xff]  ;;  %v6288_v14 = vcombine.high %v2164_v4, %v2172_v5 }
 0x25d   :  { %v6254_v26 = vcombine.high %v2131_v22, %v2139_v23  ;;  %v2156_v12 = vld [vmem:[%s9368_s9 + $0x370] sm:$0xff] }
 0x25f   :  { %2985 = vmatpush1.bf16.msra.mxu0 %v6247_v29  ;;  %3026 = vmatpush1.bf16.msra.mxu1 %v6249_v30  ;;  %v2115_v29 = vld [vmem:[%s9368_s9 + $0x228] sm:$0xff] }
 0x260   :  { %2986 = vmatprep.subr.bf16.mxu0 %v6232_v32  ;;  %3027 = vmatprep.subr.bf16.mxu1 %v6234_v33  ;;  %v2123_v30 = vld [vmem:[%s9368_s9 + $0x268] sm:$0xff]  ;;  %v6251_v32 = vcombine.low %v2130_v20, %v2138_v21  ;;  %v6253_v33 = vcombine.low %v2131_v22, %v2139_v23  ;;  %v2132_v20 = vld [vmem:[%s9368_s9 + $0x2b0] sm:$0xff]  ;;  %v6272_v22 = vcombine.high %v2148_v31, %v2156_v12 }
 0x261   :  { %v6238_v37 = vcombine.high %v2115_v29, %v2123_v30  ;;  %v2140_v21 = vld [vmem:[%s9368_s9 + $0x2f0] sm:$0xff] }
 0x263   :  { %2987 = vmatpush1.bf16.msra.mxu0 %v6231_v38  ;;  %3028 = vmatpush1.bf16.msra.mxu1 %v6233_v39  ;;  %v2099_v38 = vld [vmem:[%s9368_s9 + $0x1a8] sm:$0xff] }
 0x264   :  { %2988 = vmatprep.subr.bf16.mxu0 %v6216_v40  ;;  %3029 = vmatprep.subr.bf16.mxu1 %v6218_v41  ;;  %v2107_v39 = vld [vmem:[%s9368_s9 + $0x1e8] sm:$0xff]  ;;  %v6235_v40 = vcombine.low %v2114_v27, %v2122_v28  ;;  %v6237_v41 = vcombine.low %v2115_v29, %v2123_v30  ;;  %v6271_v27 = vcombine.low %v2148_v31, %v2156_v12  ;;  %v2116_v29 = vld [vmem:[%s9368_s9 + $0x230] sm:$0xff] }
 0x265   :  { %v6222_v45 = vcombine.high %v2099_v38, %v2107_v39  ;;  %v2124_v30 = vld [vmem:[%s9368_s9 + $0x270] sm:$0xff] }
 0x267   :  { %2989 = vmatpush1.bf16.msra.mxu0 %v6215_v46  ;;  %3030 = vmatpush1.bf16.msra.mxu1 %v6217_v47  ;;  %v2083_v46 = vld [vmem:[%s9368_s9 + $0x128] sm:$0xff] }
 0x268   :  { %2990 = vmatprep.subr.bf16.mxu0 %v6200_v48  ;;  %3031 = vmatprep.subr.bf16.mxu1 %v6202_v49  ;;  %v2091_v47 = vld [vmem:[%s9368_s9 + $0x168] sm:$0xff]  ;;  %v6219_v48 = vcombine.low %v2098_v34, %v2106_v35  ;;  %v6221_v49 = vcombine.low %v2099_v38, %v2107_v39  ;;  %v6256_v34 = vcombine.high %v2132_v20, %v2140_v21 }
 0x269   :  { %v6206_v53 = vcombine.high %v2083_v46, %v2091_v47 }
 0x26b   :  { %2991 = vmatpush1.bf16.msra.mxu0 %v6199_v55  ;;  %3032 = vmatpush1.bf16.msra.mxu1 %v6201_v56  ;;  %v2067_v55 = vld [vmem:[%s9368_s9 + $0xa8] sm:$0xff] }
 0x26c   :  { %2992 = vmatprep.subr.bf16.mxu0 %v6184_v57  ;;  %3033 = vmatprep.subr.bf16.mxu1 %v6186_v58  ;;  %v2075_v56 = vld [vmem:[%s9368_s9 + $0xe8] sm:$0xff]  ;;  %v6203_v57 = vcombine.low %v2082_v42, %v2090_v43  ;;  %v6205_v58 = vcombine.low %v2083_v46, %v2091_v47  ;;  %v2100_v42 = vld [vmem:[%s9368_s9 + $0x1b0] sm:$0xff]  ;;  %v6240_v46 = vcombine.high %v2116_v29, %v2124_v30 }
 0x26d   :  { %v6190_v63 = vcombine.high %v2067_v55, %v2075_v56  ;;  %v2108_v43 = vld [vmem:[%s9368_s9 + $0x1f0] sm:$0xff] }
 0x26f   :  { %2993 = vmatpush1.bf16.msra.mxu0 %v6183_v0  ;;  %3034 = vmatpush1.bf16.msra.mxu1 %v6185_v1  ;;  %v2051_v0 = vld [vmem:[%s9368_s9 + $0x28] sm:$0xff] }
 0x270   :  { %2994 = vmatprep.subr.bf16.mxu0 %v6168_v2  ;;  %3035 = vmatprep.subr.bf16.mxu1 %v6170_v3  ;;  %v2059_v1 = vld [vmem:[%s9368_s9 + $0x68] sm:$0xff]  ;;  %v6187_v2 = vcombine.low %v2066_v50, %v2074_v51  ;;  %v6189_v3 = vcombine.low %v2067_v55, %v2075_v56  ;;  %v2084_v51 = vld [vmem:[%s9368_s9 + $0x130] sm:$0xff]  ;;  %v2085_v56 = vld [vmem:[%s9368_s9 + $0x138] sm:$0xff] }
 0x271   :  { %v6174_v7 = vcombine.high %v2051_v0, %v2059_v1 }
 0x273   :  { %2995 = vmatpush1.bf16.msra.mxu0 %v6167_v8  ;;  %3036 = vmatpush1.bf16.msra.mxu1 %v6169_v9  ;;  %v2165_v8 = vld [vmem:[%s9368_s9 + $0x3b8] sm:$0xff] }
 0x274   :  { %3062 = vmatprep.subr.bf16.mxu0 %v6284_v10  ;;  %3103 = vmatprep.subr.bf16.mxu1 %v6286_v11  ;;  %v2173_v9 = vld [vmem:[%s9368_s9 + $0x3f8] sm:$0xff]  ;;  %v6171_v10 = vcombine.low %v2050_v59, %v2058_v60  ;;  %v6173_v11 = vcombine.low %v2051_v0, %v2059_v1  ;;  %v2068_v60 = vld [vmem:[%s9368_s9 + $0xb0] sm:$0xff] }
 0x275   :  { %v6290_v15 = vcombine.high %v2165_v8, %v2173_v9  ;;  %v2069_v1 = vld [vmem:[%s9368_s9 + $0xb8] sm:$0xff] }
 0x276   :  { %3013 = vmatmul.mubr.bf16.vlgmr.msra.gmra.mxu0 %v8157_v13  ;;  %3054 = vmatmul.mubr.bf16.vlgmr.msra.gmra.mxu1 %v8157_v13 }
 0x277   :  { %3063 = vmatpush1.bf16.msra.mxu0 %v6283_v16  ;;  %3104 = vmatpush1.bf16.msra.mxu1 %v6285_v17  ;;  %v2149_v16 = vld [vmem:[%s9368_s9 + $0x338] sm:$0xff] }
 0x278   :  { %3064 = vmatprep.subr.bf16.mxu0 %v6268_v18  ;;  %3105 = vmatprep.subr.bf16.mxu1 %v6270_v19  ;;  %v2157_v17 = vld [vmem:[%s9368_s9 + $0x378] sm:$0xff]  ;;  %v6287_v18 = vcombine.low %v2164_v4, %v2172_v5  ;;  %v6289_v19 = vcombine.low %v2165_v8, %v2173_v9  ;;  %v2052_v5 = vld [vmem:[%s9368_s9 + $0x30] sm:$0xff] }
 0x279   :  { %3094 = vmatprep.mubr.bf16.mxu0 %v7337_v54  ;;  %3135 = vmatprep.mubr.bf16.mxu1 %v7337_v54  ;;  %v6274_v23 = vcombine.high %v2149_v16, %v2157_v17  ;;  %v6273_v28 = vcombine.low %v2149_v16, %v2157_v17  ;;  %v2053_v9 = vld [vmem:[%s9368_s9 + $0x38] sm:$0xff] }
 0x27a   :  { %v7079_v17 = vld [vmem:[%s9369_s12 + $0x78] sm:$0xff]  }
 0x27b   :  { %3065 = vmatpush1.bf16.msra.mxu0 %v6267_v24  ;;  %3106 = vmatpush1.bf16.msra.mxu1 %v6269_v62  ;;  %v2133_v24 = vld [vmem:[%s9368_s9 + $0x2b8] sm:$0xff] }
 0x27c   :  { %3066 = vmatprep.subr.bf16.mxu0 %v6252_v25  ;;  %3107 = vmatprep.subr.bf16.mxu1 %v6254_v26  ;;  %v2141_v62 = vld [vmem:[%s9368_s9 + $0x2f8] sm:$0xff] }
 0x27d   :  { %v6258_v35 = vcombine.high %v2133_v24, %v2141_v62 }
 0x27f   :  { %3067 = vmatpush1.bf16.msra.mxu0 %v6251_v32  ;;  %3108 = vmatpush1.bf16.msra.mxu1 %v6253_v33 }
 0x280   :  { %3068 = vmatprep.subr.bf16.mxu0 %v6236_v36  ;;  %3109 = vmatprep.subr.bf16.mxu1 %v6238_v37  ;;  %v2117_v36 = vld [vmem:[%s9368_s9 + $0x238] sm:$0xff] }
 0x281   :  { %v2125_v37 = vld [vmem:[%s9368_s9 + $0x278] sm:$0xff] }
 0x282   :  { %v6242_v47 = vcombine.high %v2117_v36, %v2125_v37  ;;  %v6241_v50 = vcombine.low %v2117_v36, %v2125_v37  ;;  %v7090_v37 = vld [vmem:[%s9369_s12 + $0xa8] sm:$0xff]  }
 0x283   :  { %3069 = vmatpush1.bf16.msra.mxu0 %v6235_v40  ;;  %3110 = vmatpush1.bf16.msra.mxu1 %v6237_v41  ;;  %v6255_v40 = vcombine.low %v2132_v20, %v2140_v21  ;;  %v6257_v41 = vcombine.low %v2133_v24, %v2141_v62  ;;  %v7082_v20 = vld [vmem:[%s9369_s12 + $0xb8] sm:$0xff]   ;;  %v7083_v21 = vld [vmem:[%s9369_s12 + $0x70] sm:$0xff]  }
 0x284   :  { %3070 = vmatprep.subr.bf16.mxu0 %v6220_v44  ;;  %3111 = vmatprep.subr.bf16.mxu1 %v6222_v45 }
 0x287   :  { %3071 = vmatpush1.bf16.msra.mxu0 %v6219_v48  ;;  %3112 = vmatpush1.bf16.msra.mxu1 %v6221_v49  ;;  %v2109_v48 = vld [vmem:[%s9368_s9 + $0x1f8] sm:$0xff]  ;;  %v6239_v49 = vcombine.low %v2116_v29, %v2124_v30 }
 0x288   :  { %3072 = vmatprep.subr.bf16.mxu0 %v6204_v52  ;;  %3113 = vmatprep.subr.bf16.mxu1 %v6206_v53  ;;  %v2092_v52 = vld [vmem:[%s9368_s9 + $0x170] sm:$0xff]  ;;  %v6224_v53 = vcombine.high %v2100_v42, %v2108_v43 }
 0x28b   :  { %3073 = vmatpush1.bf16.msra.mxu0 %v6203_v57  ;;  %3114 = vmatpush1.bf16.msra.mxu1 %v6205_v58  ;;  %v2093_v57 = vld [vmem:[%s9368_s9 + $0x178] sm:$0xff]  ;;  %v6223_v58 = vcombine.low %v2100_v42, %v2108_v43  ;;  %v7093_v42 = vld [vmem:[%s9369_s12 + $0x20] sm:$0xff]  }
 0x28c   :  { %3074 = vmatprep.subr.bf16.mxu0 %v6188_v61  ;;  %3115 = vmatprep.subr.bf16.mxu1 %v6190_v63  ;;  %v2076_v61 = vld [vmem:[%s9368_s9 + $0xf0] sm:$0xff]  ;;  %v6208_v63 = vcombine.high %v2084_v51, %v2092_v52  ;;  %v6210_v0 = vcombine.high %v2085_v56, %v2093_v57  ;;  %v6209_v4 = vcombine.low %v2085_v56, %v2093_v57  ;;  %v7094_v43 = vld [vmem:[%s9369_s12 + $0xa0] sm:$0xff]   ;;  %v7106_v56 = vld [vmem:[%s9369_s12 + $0x88] sm:$0xff]  }
 0x28d   :  { %v7107_v57 = vld [vmem:[%s9369_s12 + $0x40] sm:$0xff]  }
 0x28f   :  { %3075 = vmatpush1.bf16.msra.mxu0 %v6187_v2  ;;  %3116 = vmatpush1.bf16.msra.mxu1 %v6189_v3  ;;  %v2077_v2 = vld [vmem:[%s9368_s9 + $0xf8] sm:$0xff]  ;;  %v6207_v3 = vcombine.low %v2084_v51, %v2092_v52  ;;  %v7103_v51 = vld [vmem:[%s9369_s12 + $0x48] sm:$0xff]  }
 0x290   :  { %3076 = vmatprep.subr.bf16.mxu0 %v6172_v6  ;;  %3117 = vmatprep.subr.bf16.mxu1 %v6174_v7  ;;  %v2060_v6 = vld [vmem:[%s9368_s9 + $0x70] sm:$0xff]  ;;  %v6192_v7 = vcombine.high %v2068_v60, %v2076_v61  ;;  %v6194_v8 = vcombine.high %v2069_v1, %v2077_v2  ;;  %v6193_v31 = vcombine.low %v2069_v1, %v2077_v2  ;;  %v7104_v52 = vld [vmem:[%s9369_s12 + $0xc8] sm:$0xff]   ;;  %v7112_v1 = vld [vmem:[%s9369_s12 + $0x1f8] sm:$0xff]  }
 0x291   :  { %v6176_v12 = vcombine.high %v2052_v5, %v2060_v6 }
 0x293   :  { %3077 = vmatpush1.bf16.msra.mxu0 %v6171_v10  ;;  %3118 = vmatpush1.bf16.msra.mxu1 %v6173_v11  ;;  %v2061_v10 = vld [vmem:[%s9368_s9 + $0x78] sm:$0xff]  ;;  %v6191_v11 = vcombine.low %v2068_v60, %v2076_v61  ;;  %v7109_v60 = vld [vmem:[%s9369_s12] sm:$0xff]   ;;  %v994_v61 = vld [vmem:[%s9370_s8 + $0x8] sm:$0xff] }
 0x294   :  { %3144 = vmatprep.subr.bf16.mxu0 %v6288_v14  ;;  %3185 = vmatprep.subr.bf16.mxu1 %v6290_v15  ;;  %v6178_v14 = vcombine.high %v2053_v9, %v2061_v10  ;;  %v6175_v15 = vcombine.low %v2052_v5, %v2060_v6  ;;  %v6177_v16 = vcombine.low %v2053_v9, %v2061_v10 }
 0x296   :  { %3095 = vmatmul.mubr.bf16.vlgmr.msra.gmra.mxu0 %v8157_v13  ;;  %3136 = vmatmul.mubr.bf16.vlgmr.msra.gmra.mxu1 %v8157_v13  ;;  %v8373_v25 = vpop.f32.mrf.mxu0  ;;  %v8375_v26 = vpop.f32.mrf.mxu1 }
 0x297   :  { %3145 = vmatpush1.bf16.msra.mxu0 %v6287_v18  ;;  %3186 = vmatpush1.bf16.msra.mxu1 %v6289_v19  ;;  %v7080_v18 = vld [vmem:[%s9369_s12 + $0xf8] sm:$0xff]  }
 0x298   :  { %v8383_v32 = vpop.f32.mrf.mxu0  ;;  %v8385_v33 = vpop.f32.mrf.mxu1  ;;  %3146 = vmatprep.subr.bf16.mxu0 %v6272_v22  ;;  %3187 = vmatprep.subr.bf16.mxu1 %v6274_v23  ;;  %v7081_v19 = vld [vmem:[%s9369_s12 + $0x38] sm:$0xff]   ;;  %v7084_v22 = vld [vmem:[%s9369_s12 + $0xf0] sm:$0xff]  }
 0x299   :  { %3176 = vmatprep.mubr.bf16.mxu0 %v7337_v54  ;;  %3217 = vmatprep.mubr.bf16.mxu1 %v7337_v54  ;;  %v2101_v54 = vld [vmem:[%s9368_s9 + $0x1b8] sm:$0xff]  ;;  %v7085_v23 = vld [vmem:[%s9369_s12 + $0x30] sm:$0xff]  }
 0x29a   :  { %v1755_v38 = vpop.f32.mrf.mxu0  ;;  %v1796_v39 = vpop.f32.mrf.mxu1  ;;  %v6226_v55 = vcombine.high %v2101_v54, %v2109_v48  ;;  %v6225_v59 = vcombine.low %v2101_v54, %v2109_v48  ;;  %v7099_v54 = vld [vmem:[%s9369_s12 + $0x50] sm:$0xff]  }
 0x29b   :  { %3147 = vmatpush1.bf16.msra.mxu0 %v6271_v27  ;;  %3188 = vmatpush1.bf16.msra.mxu1 %v6273_v28  ;;  %v7086_v27 = vld [vmem:[%s9369_s12 + $0xb0] sm:$0xff]   ;;  %v7087_v28 = vld [vmem:[%s9369_s12 + $0x68] sm:$0xff]   ;;  %v7091_v38 = vld [vmem:[%s9369_s12 + $0x60] sm:$0xff]  }
 0x29c   :  { %v1756_v44 = vpop.f32.mrf.mxu0  ;;  %v1797_v45 = vpop.f32.mrf.mxu1  ;;  %3148 = vmatprep.subr.bf16.mxu0 %v6256_v34  ;;  %3189 = vmatprep.subr.bf16.mxu1 %v6258_v35  ;;  %v7089_v34 = vld [vmem:[%s9369_s12 + $0x28] sm:$0xff]   ;;  %v7100_v48 = vld [vmem:[%s9369_s12 + $0xd0] sm:$0xff]  }
 0x29d   :  { %v7095_v44 = vld [vmem:[%s9369_s12 + $0x58] sm:$0xff]  }
 0x29e   :  { %v7096_v45 = vld [vmem:[%s9369_s12 + $0xd8] sm:$0xff]  }
 0x29f   :  { %3149 = vmatpush1.bf16.msra.mxu0 %v6255_v40  ;;  %3190 = vmatpush1.bf16.msra.mxu1 %v6257_v41  ;;  %v7092_v41 = vld [vmem:[%s9369_s12 + $0xe0] sm:$0xff]  }
 0x2a0   :  { %3150 = vmatprep.subr.bf16.mxu0 %v6240_v46  ;;  %3191 = vmatprep.subr.bf16.mxu1 %v6242_v47  ;;  %v7097_v46 = vld [vmem:[%s9369_s12 + $0x18] sm:$0xff]  }
 0x2a1   :  { %v7098_v47 = vld [vmem:[%s9369_s12 + $0x98] sm:$0xff]  }
 0x2a3   :  { %3151 = vmatpush1.bf16.msra.mxu0 %v6239_v49  ;;  %3192 = vmatpush1.bf16.msra.mxu1 %v6241_v50  ;;  %v7101_v49 = vld [vmem:[%s9369_s12 + $0x10] sm:$0xff]  }
 0x2a4   :  { %3152 = vmatprep.subr.bf16.mxu0 %v6224_v53  ;;  %3193 = vmatprep.subr.bf16.mxu1 %v6226_v55  ;;  %v7102_v50 = vld [vmem:[%s9369_s12 + $0x90] sm:$0xff]   ;;  %v997_v53 = vlaneseq  ;;  %v7105_v55 = vld [vmem:[%s9369_s12 + $0x8] sm:$0xff]  }
 0x2a7   :  { %3153 = vmatpush1.bf16.msra.mxu0 %v6223_v58  ;;  %3194 = vmatpush1.bf16.msra.mxu1 %v6225_v59  ;;  %v7108_v58 = vld [vmem:[%s9369_s12 + $0xc0] sm:$0xff]   ;;  %v998_v59 = vshrl.u32 %v997_v53, 7 }
 0x2a8   :  { %3154 = vmatprep.subr.bf16.mxu0 %v6208_v63  ;;  %3195 = vmatprep.subr.bf16.mxu1 %v6210_v0  ;;  %v7110_v63 = vld [vmem:[%s9369_s12 + $0x80] sm:$0xff]   ;;  %v7111_v0 = vld [vmem:[%s9369_s12 + $0x178] sm:$0xff]  }
 0x2a9   :  { %v8558_v2 = vsub.s32 0, %v998_v59  ;;  %v8564_v5 = vsub.s32 3, %v998_v59 }
 0x2ab   :  { %3155 = vmatpush1.bf16.msra.mxu0 %v6207_v3  ;;  %3196 = vmatpush1.bf16.msra.mxu1 %v6209_v4  ;;  %v8560_v3 = vsub.s32 2, %v998_v59  ;;  %v8562_v4 = vsub.s32 1, %v998_v59  ;;  %v1032_v6 = vrot.slane %v994_v61, %v8558_v2  ;;  %v1044_v9 = vrot.slane %v994_v61, %v8564_v5 }
 0x2ac   :  { %3156 = vmatprep.subr.bf16.mxu0 %v6192_v7  ;;  %3197 = vmatprep.subr.bf16.mxu1 %v6194_v8 }
 0x2ad   :  { %v1040_v7 = vrot.slane %v994_v61, %v8560_v3  ;;  %v1036_v8 = vrot.slane %v994_v61, %v8562_v4 }
 0x2af   :  { %3157 = vmatpush1.bf16.msra.mxu0 %v6191_v11  ;;  %3198 = vmatpush1.bf16.msra.mxu1 %v6193_v31 }
 0x2b0   :  { %3158 = vmatprep.subr.bf16.mxu0 %v6176_v12  ;;  %3199 = vmatprep.subr.bf16.mxu1 %v6178_v14 }
 0x2b3   :  { %3159 = vmatpush1.bf16.msra.mxu0 %v6175_v15  ;;  %3200 = vmatpush1.bf16.msra.mxu1 %v6177_v16 }
 0x2b4   :  { %6640 = vmatprep.subr.bf16.mxu0 %v7079_v17  ;;  %6662 = vmatprep.subr.bf16.mxu1 %v7080_v18 }
 0x2b6   :  { %v8464_v24 = vpop.f32.mrf.mxu0  ;;  %v8466_v62 = vpop.f32.mrf.mxu1  ;;  %3177 = vmatmul.mubr.bf16.vlgmr.msra.gmra.mxu0 %v8157_v13  ;;  %3218 = vmatmul.mubr.bf16.vlgmr.msra.gmra.mxu1 %v8157_v13  ;;  %v7088_v13 = vld [vmem:[%s9369_s12 + $0xe8] sm:$0xff]  }
 0x2b7   :  { %6641 = vmatpush3.bf16.msra.mxu0 %v7081_v19  ;;  %6663 = vmatpush3.bf16.msra.mxu1 %v7082_v20 }
 0x2b8   :  { %v8476_v29 = vpop.f32.mrf.mxu0  ;;  %v8478_v30 = vpop.f32.mrf.mxu1  ;;  %6642 = vmatprep.subr.bf16.mxu0 %v7083_v21  ;;  %6664 = vmatprep.subr.bf16.mxu1 %v7084_v22  ;;  %v8578_v22 = vsub.s32 4, %v998_v59 }
 0x2ba   :  { %v1837_v35 = vpop.f32.mrf.mxu0  ;;  %v1878_v36 = vpop.f32.mrf.mxu1 }
 0x2bb   :  { %6643 = vmatpush3.bf16.msra.mxu0 %v7085_v23  ;;  %6665 = vmatpush3.bf16.msra.mxu1 %v7086_v27  ;;  %v8580_v23 = vsub.s32 6, %v998_v59  ;;  %v8582_v27 = vsub.s32 5, %v998_v59 }
 0x2bc   :  { %v1838_v39 = vpop.f32.mrf.mxu0  ;;  %v1879_v40 = vpop.f32.mrf.mxu1  ;;  %6644 = vmatprep.subr.bf16.mxu0 %v7087_v28  ;;  %6666 = vmatprep.subr.bf16.mxu1 %v7088_v13  ;;  %v8584_v28 = vsub.s32 7, %v998_v59  ;;  %v1048_v13 = vrot.slane %v994_v61, %v8578_v22 }
 0x2bd   :  { %v1052_v35 = vrot.slane %v994_v61, %v8582_v27 }
 0x2be   :  { %v1060_v36 = vrot.slane %v994_v61, %v8584_v28 }
 0x2bf   :  { %6645 = vmatpush3.bf16.msra.mxu0 %v7089_v34  ;;  %6667 = vmatpush3.bf16.msra.mxu1 %v7090_v37  ;;  %v1056_v34 = vrot.slane %v994_v61, %v8580_v23 }
 0x2c0   :  { %6646 = vmatprep.subr.bf16.mxu0 %v7091_v38  ;;  %6668 = vmatprep.subr.bf16.mxu1 %v7092_v41 }
 0x2c3   :  { %6647 = vmatpush3.bf16.msra.mxu0 %v7093_v42  ;;  %6669 = vmatpush3.bf16.msra.mxu1 %v7094_v43 }
 0x2c4   :  { %6648 = vmatprep.subr.bf16.mxu0 %v7095_v44  ;;  %6670 = vmatprep.subr.bf16.mxu1 %v7096_v45 }
 0x2c7   :  { %6649 = vmatpush3.bf16.msra.mxu0 %v7097_v46  ;;  %6671 = vmatpush3.bf16.msra.mxu1 %v7098_v47 }
 0x2c8   :  { %6650 = vmatprep.subr.bf16.mxu0 %v7099_v54  ;;  %6672 = vmatprep.subr.bf16.mxu1 %v7100_v48  ;;  %v8601_v48 = vld [vmem:[%s9372_s10] sm:$0xff] }
 0x2cb   :  { %6651 = vmatpush3.bf16.msra.mxu0 %v7101_v49  ;;  %6673 = vmatpush3.bf16.msra.mxu1 %v7102_v50  ;;  %v2181_v49 = vrot.slane %v8601_v48, %v8558_v2  ;;  %v2189_v50 = vrot.slane %v8601_v48, %v8560_v3 }
 0x2cc   :  { %6652 = vmatprep.subr.bf16.mxu0 %v7103_v51  ;;  %6674 = vmatprep.subr.bf16.mxu1 %v7104_v52  ;;  %v2185_v51 = vrot.slane %v8601_v48, %v8562_v4  ;;  %v2193_v52 = vrot.slane %v8601_v48, %v8564_v5 }
 0x2cf   :  { %6653 = vmatpush3.bf16.msra.mxu0 %v7105_v55  ;;  %6675 = vmatpush3.bf16.msra.mxu1 %v7106_v56 }
 0x2d0   :  { %6654 = vmatprep.subr.bf16.mxu0 %v7107_v57  ;;  %6676 = vmatprep.subr.bf16.mxu1 %v7108_v58 }
 0x2d3   :  { %6655 = vmatpush3.bf16.msra.mxu0 %v7109_v60  ;;  %6677 = vmatpush3.bf16.msra.mxu1 %v7110_v63  ;;  %v7113_v63 = vld [vmem:[%s9369_s12 + $0x138] sm:$0xff]  }
 0x2d4   :  { %6684 = vmatprep.subr.bf16.mxu0 %v7111_v0  ;;  %6706 = vmatprep.subr.bf16.mxu1 %v7112_v1 }
 0x2d6   :  { %v1915_v10 = vpop.f32.mrf.mxu0  ;;  %v1956_v11 = vpop.f32.mrf.mxu1 }
 0x2d7   :  { %v8570_v31 = vadd.f32 %v1915_v10, %v1032_v6  ;;  %v8572_v12 = vadd.f32 %v1956_v11, %v1040_v7  ;;  %v7114_v6 = vld [vmem:[%s9369_s12 + $0x1b8] sm:$0xff]  }
 0x2d8   :  { %v1917_v14 = vpop.f32.mrf.mxu0  ;;  %v1958_v15 = vpop.f32.mrf.mxu1 }
 0x2d9   :  { %v8574_v16 = vadd.f32 %v1917_v14, %v1036_v8  ;;  %v8576_v17 = vadd.f32 %v1958_v15, %v1044_v9  ;;  %v7115_v9 = vld [vmem:[%s9369_s12 + $0x170] sm:$0xff]  }
 0x2da   :  { %v1919_v18 = vpop.f32.mrf.mxu0  ;;  %v1960_v19 = vpop.f32.mrf.mxu1 }
 0x2db   :  { %v7116_v18 = vld [vmem:[%s9369_s12 + $0x1f0] sm:$0xff]  }
 0x2dc   :  { %v1920_v20 = vpop.f32.mrf.mxu0  ;;  %v1961_v21 = vpop.f32.mrf.mxu1  ;;  %v7117_v19 = vld [vmem:[%s9369_s12 + $0x130] sm:$0xff]  }
 0x2dd   :  { %v7118_v20 = vld [vmem:[%s9369_s12 + $0x1b0] sm:$0xff]   ;;  %v7119_v21 = vld [vmem:[%s9369_s12 + $0x168] sm:$0xff]  }
 0x2f6   :  { %v1997_v37 = vpop.f32.mrf.mxu0  ;;  %v2038_v38 = vpop.f32.mrf.mxu1 }
 0x2f7   :  { %v8590_v39 = vadd.f32 %v1997_v37, %v1048_v13  ;;  %v8592_v40 = vadd.f32 %v2038_v38, %v1056_v34  ;;  %v7120_v13 = vld [vmem:[%s9369_s12 + $0x1e8] sm:$0xff]   ;;  %v7124_v37 = vld [vmem:[%s9369_s12 + $0x1e0] sm:$0xff]  }
 0x2f8   :  { %v1999_v41 = vpop.f32.mrf.mxu0  ;;  %v2040_v42 = vpop.f32.mrf.mxu1  ;;  %v7121_v34 = vld [vmem:[%s9369_s12 + $0x128] sm:$0xff]   ;;  %v7125_v38 = vld [vmem:[%s9369_s12 + $0x120] sm:$0xff]  }
 0x2f9   :  { %v8594_v43 = vadd.f32 %v1999_v41, %v1052_v35  ;;  %v8596_v44 = vadd.f32 %v2040_v42, %v1060_v36  ;;  %v7122_v35 = vld [vmem:[%s9369_s12 + $0x1a8] sm:$0xff]   ;;  %v7123_v36 = vld [vmem:[%s9369_s12 + $0x160] sm:$0xff]   ;;  %v7127_v42 = vld [vmem:[%s9369_s12 + $0x158] sm:$0xff]  }
 0x2fa   :  { %v2001_v45 = vpop.f32.mrf.mxu0  ;;  %v2042_v46 = vpop.f32.mrf.mxu1  ;;  %v7126_v41 = vld [vmem:[%s9369_s12 + $0x1a0] sm:$0xff]  }
 0x2fb   :  { %v7128_v45 = vld [vmem:[%s9369_s12 + $0x1d8] sm:$0xff]  }
 0x2fc   :  { %v2002_v47 = vpop.f32.mrf.mxu0  ;;  %v2043_v54 = vpop.f32.mrf.mxu1  ;;  %v7129_v46 = vld [vmem:[%s9369_s12 + $0x118] sm:$0xff]  }
 0x2fd   :  { %v7130_v47 = vld [vmem:[%s9369_s12 + $0x198] sm:$0xff]   ;;  %v7131_v54 = vld [vmem:[%s9369_s12 + $0x150] sm:$0xff]  }
 0x316   :  { %v2932_v53 = vpop.f32.mrf.mxu0  ;;  %v2973_v55 = vpop.f32.mrf.mxu1 }
 0x317   :  { %v2933_v56 = vadd.f32 %v2932_v53, %v2181_v49  ;;  %v2974_v57 = vadd.f32 %v2973_v55, %v2189_v50  ;;  %v7132_v49 = vld [vmem:[%s9369_s12 + $0x1d0] sm:$0xff]   ;;  %v7136_v53 = vld [vmem:[%s9369_s12 + $0x1c8] sm:$0xff]  }
 0x318   :  { %v2934_v58 = vpop.f32.mrf.mxu0  ;;  %v2975_v59 = vpop.f32.mrf.mxu1  ;;  %v7133_v50 = vld [vmem:[%s9369_s12 + $0x110] sm:$0xff]   ;;  %v7137_v55 = vld [vmem:[%s9369_s12 + $0x108] sm:$0xff]  }
 0x319   :  { %v2935_v60 = vadd.f32 %v2934_v58, %v2185_v51  ;;  %v2976_v61 = vadd.f32 %v2975_v59, %v2193_v52  ;;  %v3498_v10 = vpack.c.bf16 %v2933_v56, %v2933_v56  ;;  %v3500_v11 = vpack.c.bf16 %v2974_v57, %v2974_v57  ;;  %v7134_v51 = vld [vmem:[%s9369_s12 + $0x190] sm:$0xff]   ;;  %v7135_v52 = vld [vmem:[%s9369_s12 + $0x148] sm:$0xff]   ;;  %v7139_v57 = vld [vmem:[%s9369_s12 + $0x140] sm:$0xff]  }
 0x31a   :  { %v2936_v0 = vpop.f32.mrf.mxu0  ;;  %v2977_v1 = vpop.f32.mrf.mxu1  ;;  %v7138_v56 = vld [vmem:[%s9369_s12 + $0x188] sm:$0xff]   ;;  %v2197_v58 = vrot.slane %v8601_v48, %v8578_v22  ;;  %v2205_v59 = vrot.slane %v8601_v48, %v8580_v23 }
 0x31b   :  { %v3499_v7 = vpack.c.bf16 %v2935_v60, %v2935_v60  ;;  %v3501_v8 = vpack.c.bf16 %v2976_v61, %v2976_v61  ;;  %v7140_v60 = vld [vmem:[%s9369_s12 + $0x1c0] sm:$0xff]   ;;  %v2201_v61 = vrot.slane %v8601_v48, %v8582_v27 }
 0x31c   :  { %v2937_v14 = vpop.f32.mrf.mxu0  ;;  %v2978_v15 = vpop.f32.mrf.mxu1  ;;  %v7141_v0 = vld [vmem:[%s9369_s12 + $0x100] sm:$0xff]  }
 0x31d   :  { %4570 = vmatprep.mubr.bf16.mxu0 %v3499_v7  ;;  %4610 = vmatprep.mubr.bf16.mxu1 %v3501_v8  ;;  %v7142_v7 = vld [vmem:[%s9369_s12 + $0x180] sm:$0xff]   ;;  %v7143_v8 = vld [vmem:[%s9369_s12 + $0x278] sm:$0xff]  }
 0x31e   :  { %4571 = vmatmul.mubr.bf16.vlgmr.msra.gmra.mxu0 %v3498_v10  ;;  %4611 = vmatmul.mubr.bf16.vlgmr.msra.gmra.mxu1 %v3500_v11  ;;  %v7144_v14 = vld [vmem:[%s9369_s12 + $0x2f8] sm:$0xff]  }
 0x31f   :  { %6685 = vmatpush3.bf16.msra.mxu0 %v7113_v63  ;;  %6707 = vmatpush3.bf16.msra.mxu1 %v7114_v6  ;;  %v2209_v63 = vrot.slane %v8601_v48, %v8584_v28 }
 0x320   :  { %6686 = vmatprep.subr.bf16.mxu0 %v7115_v9  ;;  %6708 = vmatprep.subr.bf16.mxu1 %v7116_v18 }
 0x323   :  { %6687 = vmatpush3.bf16.msra.mxu0 %v7117_v19  ;;  %6709 = vmatpush3.bf16.msra.mxu1 %v7118_v20  ;;  %v7145_v19 = vld [vmem:[%s9369_s12 + $0x238] sm:$0xff]  }
 0x324   :  { %6688 = vmatprep.subr.bf16.mxu0 %v7119_v21  ;;  %6710 = vmatprep.subr.bf16.mxu1 %v7120_v13  ;;  %v7146_v20 = vld [vmem:[%s9369_s12 + $0x2b8] sm:$0xff]  }
 0x327   :  { %6689 = vmatpush3.bf16.msra.mxu0 %v7121_v34  ;;  %6711 = vmatpush3.bf16.msra.mxu1 %v7122_v35  ;;  %v7147_v34 = vld [vmem:[%s9369_s12 + $0x270] sm:$0xff]  }
 0x328   :  { %6690 = vmatprep.subr.bf16.mxu0 %v7123_v36  ;;  %6712 = vmatprep.subr.bf16.mxu1 %v7124_v37  ;;  %v7148_v37 = vld [vmem:[%s9369_s12 + $0x2f0] sm:$0xff]  }
 0x32b   :  { %6691 = vmatpush3.bf16.msra.mxu0 %v7125_v38  ;;  %6713 = vmatpush3.bf16.msra.mxu1 %v7126_v41 }
 0x32c   :  { %6692 = vmatprep.subr.bf16.mxu0 %v7127_v42  ;;  %6714 = vmatprep.subr.bf16.mxu1 %v7128_v45 }
 0x32f   :  { %6693 = vmatpush3.bf16.msra.mxu0 %v7129_v46  ;;  %6715 = vmatpush3.bf16.msra.mxu1 %v7130_v47  ;;  %v7149_v46 = vld [vmem:[%s9369_s12 + $0x230] sm:$0xff]  }
 0x330   :  { %6694 = vmatprep.subr.bf16.mxu0 %v7131_v54  ;;  %6716 = vmatprep.subr.bf16.mxu1 %v7132_v49  ;;  %v7150_v47 = vld [vmem:[%s9369_s12 + $0x2b0] sm:$0xff]   ;;  %v7151_v54 = vld [vmem:[%s9369_s12 + $0x268] sm:$0xff]  }
 0x331   :  { %v7152_v49 = vld [vmem:[%s9369_s12 + $0x2e8] sm:$0xff]  }
 0x333   :  { %6695 = vmatpush3.bf16.msra.mxu0 %v7133_v50  ;;  %6717 = vmatpush3.bf16.msra.mxu1 %v7134_v51  ;;  %v7153_v50 = vld [vmem:[%s9369_s12 + $0x228] sm:$0xff]  }
 0x334   :  { %6696 = vmatprep.subr.bf16.mxu0 %v7135_v52  ;;  %6718 = vmatprep.subr.bf16.mxu1 %v7136_v53  ;;  %v7154_v51 = vld [vmem:[%s9369_s12 + $0x2a8] sm:$0xff]   ;;  %v7155_v52 = vld [vmem:[%s9369_s12 + $0x260] sm:$0xff]  }
 0x335   :  { %v7156_v53 = vld [vmem:[%s9369_s12 + $0x2e0] sm:$0xff]  }
 0x336   :  { %v3014_v1 = vpop.f32.mrf.mxu0  ;;  %v3055_v6 = vpop.f32.mrf.mxu1 }
 0x337   :  { %6697 = vmatpush3.bf16.msra.mxu0 %v7137_v55  ;;  %6719 = vmatpush3.bf16.msra.mxu1 %v7138_v56  ;;  %v3015_v9 = vadd.f32 %v3014_v1, %v2197_v58  ;;  %v3056_v10 = vadd.f32 %v3055_v6, %v2205_v59  ;;  %v7157_v55 = vld [vmem:[%s9369_s12 + $0x220] sm:$0xff]   ;;  %v7160_v58 = vld [vmem:[%s9369_s12 + $0x2d8] sm:$0xff]   ;;  %v7166_v1 = vld [vmem:[%s9369_s12 + $0x290] sm:$0xff]  }
 0x338   :  { %v3016_v11 = vpop.f32.mrf.mxu0  ;;  %v3057_v48 = vpop.f32.mrf.mxu1  ;;  %6698 = vmatprep.subr.bf16.mxu0 %v7139_v57  ;;  %6720 = vmatprep.subr.bf16.mxu1 %v7140_v60  ;;  %v7158_v56 = vld [vmem:[%s9369_s12 + $0x2a0] sm:$0xff]   ;;  %v7159_v57 = vld [vmem:[%s9369_s12 + $0x258] sm:$0xff]   ;;  %v7167_v6 = vld [vmem:[%s9369_s12 + $0x248] sm:$0xff]  }
 0x339   :  { %v3017_v15 = vadd.f32 %v3016_v11, %v2201_v61  ;;  %v3058_v18 = vadd.f32 %v3057_v48, %v2209_v63  ;;  %v3502_v38 = vpack.c.bf16 %v3015_v9, %v3015_v9  ;;  %v3504_v41 = vpack.c.bf16 %v3056_v10, %v3056_v10  ;;  %v7161_v59 = vld [vmem:[%s9369_s12 + $0x218] sm:$0xff]   ;;  %v7163_v61 = vld [vmem:[%s9369_s12 + $0x250] sm:$0xff]   ;;  %v7169_v9 = vld [vmem:[%s9369_s12 + $0x208] sm:$0xff]  }
 0x33a   :  { %v3018_v21 = vpop.f32.mrf.mxu0  ;;  %v3059_v13 = vpop.f32.mrf.mxu1  ;;  %v7162_v60 = vld [vmem:[%s9369_s12 + $0x298] sm:$0xff]   ;;  %v7164_v63 = vld [vmem:[%s9369_s12 + $0x2d0] sm:$0xff]   ;;  %v7170_v10 = vld [vmem:[%s9369_s12 + $0x288] sm:$0xff]  }
 0x33b   :  { %v3503_v35 = vpack.c.bf16 %v3017_v15, %v3017_v15  ;;  %v3505_v36 = vpack.c.bf16 %v3058_v18, %v3058_v18  ;;  %6699 = vmatpush3.bf16.msra.mxu0 %v7141_v0  ;;  %6721 = vmatpush3.bf16.msra.mxu1 %v7142_v7  ;;  %v7165_v0 = vld [vmem:[%s9369_s12 + $0x210] sm:$0xff]   ;;  %v7168_v7 = vld [vmem:[%s9369_s12 + $0x2c8] sm:$0xff]   ;;  %v7171_v11 = vld [vmem:[%s9369_s12 + $0x240] sm:$0xff]  }
 0x33c   :  { %v3019_v42 = vpop.f32.mrf.mxu0  ;;  %v3060_v45 = vpop.f32.mrf.mxu1  ;;  %6728 = vmatprep.subr.bf16.mxu0 %v7143_v8  ;;  %6750 = vmatprep.subr.bf16.mxu1 %v7144_v14  ;;  %v8790_v8 = vld [vmem:[%s9372_s10 + $0x8] sm:$0xff]  ;;  %v7172_v15 = vld [vmem:[%s9369_s12 + $0x2c0] sm:$0xff]  }
 0x33d   :  { %4650 = vmatprep.mubr.bf16.mxu0 %v3503_v35  ;;  %4690 = vmatprep.mubr.bf16.mxu1 %v3505_v36  ;;  %v2213_v48 = vrot.slane %v8790_v8, %v8558_v2  ;;  %v2221_v14 = vrot.slane %v8790_v8, %v8560_v3  ;;  %v2217_v18 = vrot.slane %v8790_v8, %v8562_v4  ;;  %v7175_v35 = vld [vmem:[%s9369_s12 + $0x378] sm:$0xff]  }
 0x33e   :  { %4651 = vmatmul.mubr.bf16.vlgmr.msra.gmra.mxu0 %v3502_v38  ;;  %4691 = vmatmul.mubr.bf16.vlgmr.msra.gmra.mxu1 %v3504_v41  ;;  %v7176_v42 = vld [vmem:[%s9369_s12 + $0x3f8] sm:$0xff]  }
 0x33f   :  { %6729 = vmatpush3.bf16.msra.mxu0 %v7145_v19  ;;  %6751 = vmatpush3.bf16.msra.mxu1 %v7146_v20  ;;  %v2225_v19 = vrot.slane %v8790_v8, %v8564_v5  ;;  %v7173_v20 = vld [vmem:[%s9369_s12 + $0x200] sm:$0xff]  }
 0x340   :  { %6730 = vmatprep.subr.bf16.mxu0 %v7147_v34  ;;  %6752 = vmatprep.subr.bf16.mxu1 %v7148_v37  ;;  %v7174_v34 = vld [vmem:[%s9369_s12 + $0x280] sm:$0xff]  }
 0x343   :  { %6731 = vmatpush3.bf16.msra.mxu0 %v7149_v46  ;;  %6753 = vmatpush3.bf16.msra.mxu1 %v7150_v47  ;;  %v7177_v47 = vld [vmem:[%s9369_s12 + $0x338] sm:$0xff]  }
 0x344   :  { %6732 = vmatprep.subr.bf16.mxu0 %v7151_v54  ;;  %6754 = vmatprep.subr.bf16.mxu1 %v7152_v49  ;;  %v7178_v54 = vld [vmem:[%s9369_s12 + $0x3b8] sm:$0xff]  }
 0x347   :  { %6733 = vmatpush3.bf16.msra.mxu0 %v7153_v50  ;;  %6755 = vmatpush3.bf16.msra.mxu1 %v7154_v51  ;;  %v7179_v51 = vld [vmem:[%s9369_s12 + $0x370] sm:$0xff]  }
 0x348   :  { %6734 = vmatprep.subr.bf16.mxu0 %v7155_v52  ;;  %6756 = vmatprep.subr.bf16.mxu1 %v7156_v53 }
 0x34b   :  { %6735 = vmatpush3.bf16.msra.mxu0 %v7157_v55  ;;  %6757 = vmatpush3.bf16.msra.mxu1 %v7158_v56  ;;  %v7180_v55 = vld [vmem:[%s9369_s12 + $0x3f0] sm:$0xff]  }
 0x34c   :  { %6736 = vmatprep.subr.bf16.mxu0 %v7159_v57  ;;  %6758 = vmatprep.subr.bf16.mxu1 %v7160_v58 }
 0x34f   :  { %6737 = vmatpush3.bf16.msra.mxu0 %v7161_v59  ;;  %6759 = vmatpush3.bf16.msra.mxu1 %v7162_v60  ;;  %v7181_v60 = vld [vmem:[%s9369_s12 + $0x330] sm:$0xff]  }
 0x350   :  { %6738 = vmatprep.subr.bf16.mxu0 %v7163_v61  ;;  %6760 = vmatprep.subr.bf16.mxu1 %v7164_v63  ;;  %v7182_v61 = vld [vmem:[%s9369_s12 + $0x3b0] sm:$0xff]   ;;  %v7183_v63 = vld [vmem:[%s9369_s12 + $0x368] sm:$0xff]  }
 0x353   :  { %6739 = vmatpush3.bf16.msra.mxu0 %v7165_v0  ;;  %6761 = vmatpush3.bf16.msra.mxu1 %v7166_v1  ;;  %v7184_v0 = vld [vmem:[%s9369_s12 + $0x3e8] sm:$0xff]  }
 0x354   :  { %6740 = vmatprep.subr.bf16.mxu0 %v7167_v6  ;;  %6762 = vmatprep.subr.bf16.mxu1 %v7168_v7  ;;  %v7185_v1 = vld [vmem:[%s9369_s12 + $0x328] sm:$0xff]   ;;  %v7187_v7 = vld [vmem:[%s9369_s12 + $0x360] sm:$0xff]  }
 0x355   :  { %v7186_v6 = vld [vmem:[%s9369_s12 + $0x3a8] sm:$0xff]  }
 0x356   :  { %v3096_v21 = vpop.f32.mrf.mxu0  ;;  %v3137_v13 = vpop.f32.mrf.mxu1 }
 0x357   :  { %6741 = vmatpush3.bf16.msra.mxu0 %v7169_v9  ;;  %6763 = vmatpush3.bf16.msra.mxu1 %v7170_v10  ;;  %v3097_v36 = vadd.f32 %v3096_v21, %v2213_v48  ;;  %v3138_v37 = vadd.f32 %v3137_v13, %v2221_v14  ;;  %v7188_v9 = vld [vmem:[%s9369_s12 + $0x3e0] sm:$0xff]   ;;  %v7191_v48 = vld [vmem:[%s9369_s12 + $0x358] sm:$0xff]   ;;  %v7197_v21 = vld [vmem:[%s9369_s12 + $0x310] sm:$0xff]  }
 0x358   :  { %v3098_v38 = vpop.f32.mrf.mxu0  ;;  %v3139_v41 = vpop.f32.mrf.mxu1  ;;  %6742 = vmatprep.subr.bf16.mxu0 %v7171_v11  ;;  %6764 = vmatprep.subr.bf16.mxu1 %v7172_v15  ;;  %v7189_v10 = vld [vmem:[%s9369_s12 + $0x320] sm:$0xff]   ;;  %v7192_v14 = vld [vmem:[%s9369_s12 + $0x3d8] sm:$0xff]   ;;  %v7198_v13 = vld [vmem:[%s9369_s12 + $0x390] sm:$0xff]  }
 0x359   :  { %v3099_v45 = vadd.f32 %v3098_v38, %v2217_v18  ;;  %v3140_v46 = vadd.f32 %v3139_v41, %v2225_v19  ;;  %v3506_v56 = vpack.c.bf16 %v3097_v36, %v3097_v36  ;;  %v3508_v57 = vpack.c.bf16 %v3138_v37, %v3138_v37  ;;  %v7190_v11 = vld [vmem:[%s9369_s12 + $0x3a0] sm:$0xff]   ;;  %v7193_v15 = vld [vmem:[%s9369_s12 + $0x318] sm:$0xff]   ;;  %v7195_v19 = vld [vmem:[%s9369_s12 + $0x350] sm:$0xff]  }
 0x35a   :  { %v3100_v49 = vpop.f32.mrf.mxu0  ;;  %v3141_v50 = vpop.f32.mrf.mxu1  ;;  %v7194_v18 = vld [vmem:[%s9369_s12 + $0x398] sm:$0xff]   ;;  %v7201_v36 = vld [vmem:[%s9369_s12 + $0x308] sm:$0xff]   ;;  %v8905_v38 = vld [vmem:[%s9370_s8] sm:$0xff] }
 0x35b   :  { %v3507_v52 = vpack.c.bf16 %v3099_v45, %v3099_v45  ;;  %v3509_v53 = vpack.c.bf16 %v3140_v46, %v3140_v46  ;;  %6743 = vmatpush3.bf16.msra.mxu0 %v7173_v20  ;;  %6765 = vmatpush3.bf16.msra.mxu1 %v7174_v34  ;;  %v7196_v20 = vld [vmem:[%s9369_s12 + $0x3d0] sm:$0xff]   ;;  %v7199_v34 = vld [vmem:[%s9369_s12 + $0x348] sm:$0xff]   ;;  %v7203_v41 = vld [vmem:[%s9369_s12 + $0x340] sm:$0xff]   ;;  %v2237_v45 = vrot.slane %v8790_v8, %v8580_v23 }
 0x35c   :  { %v3101_v58 = vpop.f32.mrf.mxu0  ;;  %v3142_v59 = vpop.f32.mrf.mxu1  ;;  %6772 = vmatprep.subr.bf16.mxu0 %v7175_v35  ;;  %6794 = vmatprep.subr.bf16.mxu1 %v7176_v42  ;;  %v7200_v35 = vld [vmem:[%s9369_s12 + $0x3c8] sm:$0xff]   ;;  %v2229_v42 = vrot.slane %v8790_v8, %v8578_v22  ;;  %v7204_v46 = vld [vmem:[%s9369_s12 + $0x3c0] sm:$0xff]   ;;  %v1004_v50 = vrot.slane %v8905_v38, %v8562_v4  ;;  %v7208_v4 = vld [vmem:[%s9371_s11 + $0xf8] sm:$0xff]  }
 0x35d   :  { %4730 = vmatprep.mubr.bf16.mxu0 %v3507_v52  ;;  %4770 = vmatprep.mubr.bf16.mxu1 %v3509_v53  ;;  %v7202_v37 = vld [vmem:[%s9369_s12 + $0x388] sm:$0xff]   ;;  %v7205_v49 = vld [vmem:[%s9369_s12 + $0x300] sm:$0xff]  }
 0x35e   :  { %4731 = vmatmul.mubr.bf16.vlgmr.msra.gmra.mxu0 %v3506_v56  ;;  %4771 = vmatmul.mubr.bf16.vlgmr.msra.gmra.mxu1 %v3508_v57 }
 0x35f   :  { %6773 = vmatpush3.bf16.msra.mxu0 %v7177_v47  ;;  %6795 = vmatpush3.bf16.msra.mxu1 %v7178_v54  ;;  %v2233_v47 = vrot.slane %v8790_v8, %v8582_v27  ;;  %v2241_v54 = vrot.slane %v8790_v8, %v8584_v28  ;;  %v7207_v8 = vld [vmem:[%s9371_s11 + $0x78] sm:$0xff]  }
 0x360   :  { %6774 = vmatprep.subr.bf16.mxu0 %v7179_v51  ;;  %6796 = vmatprep.subr.bf16.mxu1 %v7180_v55  ;;  %v1012_v51 = vrot.slane %v8905_v38, %v8564_v5  ;;  %v7206_v55 = vld [vmem:[%s9369_s12 + $0x380] sm:$0xff]  }
 0x363   :  { %6775 = vmatpush3.bf16.msra.mxu0 %v7181_v60  ;;  %6797 = vmatpush3.bf16.msra.mxu1 %v7182_v61  ;;  %v1754_v61 = vadd.f32 %v8383_v32, %v1004_v50  ;;  %v7227_v50 = vld [vmem:[%s9371_s11 + $0x50] sm:$0xff]  }
 0x364   :  { %6776 = vmatprep.subr.bf16.mxu0 %v7183_v63  ;;  %6798 = vmatprep.subr.bf16.mxu1 %v7184_v0  ;;  %v1795_v63 = vadd.f32 %v8385_v33, %v1012_v51  ;;  %v7211_v33 = vld [vmem:[%s9371_s11 + $0x70] sm:$0xff]  }
 0x365   :  { %v7228_v51 = vld [vmem:[%s9371_s11 + $0xd0] sm:$0xff]  }
 0x367   :  { %6777 = vmatpush3.bf16.msra.mxu0 %v7185_v1  ;;  %6799 = vmatpush3.bf16.msra.mxu1 %v7186_v6  ;;  %v7209_v6 = vld [vmem:[%s9371_s11 + $0x38] sm:$0xff]  }
 0x368   :  { %6778 = vmatprep.subr.bf16.mxu0 %v7187_v7  ;;  %6800 = vmatprep.subr.bf16.mxu1 %v7188_v9 }
 0x36b   :  { %6779 = vmatpush3.bf16.msra.mxu0 %v7189_v10  ;;  %6801 = vmatpush3.bf16.msra.mxu1 %v7190_v11  ;;  %v7210_v10 = vld [vmem:[%s9371_s11 + $0xb8] sm:$0xff]  }
 0x36c   :  { %6780 = vmatprep.subr.bf16.mxu0 %v7191_v48  ;;  %6802 = vmatprep.subr.bf16.mxu1 %v7192_v14 }
 0x36f   :  { %6781 = vmatpush3.bf16.msra.mxu0 %v7193_v15  ;;  %6803 = vmatpush3.bf16.msra.mxu1 %v7194_v18  ;;  %v7212_v15 = vld [vmem:[%s9371_s11 + $0xf0] sm:$0xff]   ;;  %v3227_v18 = vpack.c.bf16 %v1754_v61, %v1754_v61  ;;  %v1028_v61 = vrot.slane %v8905_v38, %v8584_v28  ;;  %v7240_v28 = vld [vmem:[%s9371_s11 + $0x1f8] sm:$0xff]  }
 0x370   :  { %6782 = vmatprep.subr.bf16.mxu0 %v7195_v19  ;;  %6804 = vmatprep.subr.bf16.mxu1 %v7196_v20  ;;  %v3229_v19 = vpack.c.bf16 %v1795_v63, %v1795_v63  ;;  %v7213_v20 = vld [vmem:[%s9371_s11 + $0x30] sm:$0xff]  }
 0x373   :  { %6783 = vmatpush3.bf16.msra.mxu0 %v7197_v21  ;;  %6805 = vmatpush3.bf16.msra.mxu1 %v7198_v13  ;;  %v7214_v21 = vld [vmem:[%s9371_s11 + $0xb0] sm:$0xff]   ;;  %v7215_v13 = vld [vmem:[%s9371_s11 + $0x68] sm:$0xff]  }
 0x374   :  { %6784 = vmatprep.subr.bf16.mxu0 %v7199_v34  ;;  %6806 = vmatprep.subr.bf16.mxu1 %v7200_v35  ;;  %v7216_v34 = vld [vmem:[%s9371_s11 + $0xe8] sm:$0xff]  }
 0x375   :  { %v7217_v35 = vld [vmem:[%s9371_s11 + $0x28] sm:$0xff]  }
 0x376   :  { %v3178_v52 = vpop.f32.mrf.mxu0  ;;  %v3219_v53 = vpop.f32.mrf.mxu1 }
 0x377   :  { %6785 = vmatpush3.bf16.msra.mxu0 %v7201_v36  ;;  %6807 = vmatpush3.bf16.msra.mxu1 %v7202_v37  ;;  %v3179_v56 = vadd.f32 %v3178_v52, %v2229_v42  ;;  %v3220_v57 = vadd.f32 %v3219_v53, %v2237_v45  ;;  %v7218_v36 = vld [vmem:[%s9371_s11 + $0xa8] sm:$0xff]   ;;  %v7219_v37 = vld [vmem:[%s9371_s11 + $0x60] sm:$0xff]   ;;  %v7229_v52 = vld [vmem:[%s9371_s11 + $0x10] sm:$0xff]  }
 0x378   :  { %v3180_v58 = vpop.f32.mrf.mxu0  ;;  %v3221_v59 = vpop.f32.mrf.mxu1  ;;  %6786 = vmatprep.subr.bf16.mxu0 %v7203_v41  ;;  %6808 = vmatprep.subr.bf16.mxu1 %v7204_v46  ;;  %v7220_v41 = vld [vmem:[%s9371_s11 + $0xe0] sm:$0xff]   ;;  %v7223_v46 = vld [vmem:[%s9371_s11 + $0x58] sm:$0xff]   ;;  %v7230_v53 = vld [vmem:[%s9371_s11 + $0x90] sm:$0xff]  }
 0x379   :  { %v3181_v5 = vadd.f32 %v3180_v58, %v2233_v47  ;;  %v3222_v60 = vadd.f32 %v3221_v59, %v2241_v54  ;;  %v3510_v11 = vpack.c.bf16 %v3179_v56, %v3179_v56  ;;  %v3512_v48 = vpack.c.bf16 %v3220_v57, %v3220_v57  ;;  %v7221_v42 = vld [vmem:[%s9371_s11 + $0x20] sm:$0xff]   ;;  %v7224_v47 = vld [vmem:[%s9371_s11 + $0xd8] sm:$0xff]   ;;  %v7233_v56 = vld [vmem:[%s9371_s11 + $0x8] sm:$0xff]  }
 0x37a   :  { %v3182_v0 = vpop.f32.mrf.mxu0  ;;  %v3223_v1 = vpop.f32.mrf.mxu1  ;;  %v7222_v45 = vld [vmem:[%s9371_s11 + $0xa0] sm:$0xff]   ;;  %v7225_v54 = vld [vmem:[%s9371_s11 + $0x18] sm:$0xff]   ;;  %v7234_v57 = vld [vmem:[%s9371_s11 + $0x88] sm:$0xff]   ;;  %v1000_v58 = vrot.slane %v8905_v38, %v8558_v2  ;;  %v1008_v59 = vrot.slane %v8905_v38, %v8560_v3 }
 0x37b   :  { %v3511_v7 = vpack.c.bf16 %v3181_v5, %v3181_v5  ;;  %v3513_v9 = vpack.c.bf16 %v3222_v60, %v3222_v60  ;;  %6787 = vmatpush3.bf16.msra.mxu0 %v7205_v49  ;;  %6809 = vmatpush3.bf16.msra.mxu1 %v7206_v55  ;;  %v7226_v49 = vld [vmem:[%s9371_s11 + $0x98] sm:$0xff]   ;;  %v7231_v55 = vld [vmem:[%s9371_s11 + $0x48] sm:$0xff]   ;;  %v7236_v5 = vld [vmem:[%s9371_s11 + $0xc0] sm:$0xff]   ;;  %v1020_v60 = vrot.slane %v8905_v38, %v8582_v27 }
 0x37c   :  { %v3183_v14 = vpop.f32.mrf.mxu0  ;;  %v3224_v32 = vpop.f32.mrf.mxu1  ;;  %6816 = vmatprep.subr.bf16.mxu0 %v7207_v8  ;;  %6838 = vmatprep.subr.bf16.mxu1 %v7208_v4  ;;  %v7232_v8 = vld [vmem:[%s9371_s11 + $0xc8] sm:$0xff]   ;;  %v7235_v4 = vld [vmem:[%s9371_s11 + $0x40] sm:$0xff]   ;;  %v1752_v63 = vadd.f32 %v8373_v25, %v1000_v58  ;;  %v1793_v0 = vadd.f32 %v8375_v26, %v1008_v59  ;;  %v7239_v27 = vld [vmem:[%s9371_s11 + $0x178] sm:$0xff]  }
 0x37d   :  { %4810 = vmatprep.mubr.bf16.mxu0 %v3511_v7  ;;  %4850 = vmatprep.mubr.bf16.mxu1 %v3513_v9  ;;  %v7237_v2 = vld [vmem:[%s9371_s11] sm:$0xff]   ;;  %v1836_v1 = vadd.f32 %v8476_v29, %v1020_v60  ;;  %v7241_v25 = vld [vmem:[%s9371_s11 + $0x138] sm:$0xff]   ;;  %v7243_v29 = vld [vmem:[%s9371_s11 + $0x170] sm:$0xff]  }
 0x37e   :  { %4811 = vmatmul.mubr.bf16.vlgmr.msra.gmra.mxu0 %v3510_v11  ;;  %4851 = vmatmul.mubr.bf16.vlgmr.msra.gmra.mxu1 %v3512_v48  ;;  %v7238_v3 = vld [vmem:[%s9371_s11 + $0x80] sm:$0xff]   ;;  %v3226_v26 = vpack.c.bf16 %v1752_v63, %v1752_v63  ;;  %v3228_v7 = vpack.c.bf16 %v1793_v0, %v1793_v0  ;;  %v7242_v9 = vld [vmem:[%s9371_s11 + $0x1b8] sm:$0xff]   ;;  %v7245_v48 = vld [vmem:[%s9371_s11 + $0x130] sm:$0xff]  }
 0x37f   :  { %6817 = vmatpush3.bf16.msra.mxu0 %v7209_v6  ;;  %6839 = vmatpush3.bf16.msra.mxu1 %v7210_v10  ;;  %v1877_v6 = vadd.f32 %v8478_v30, %v1028_v61  ;;  %v3231_v10 = vpack.c.bf16 %v1836_v1, %v1836_v1  ;;  %v7244_v30 = vld [vmem:[%s9371_s11 + $0x1f0] sm:$0xff]   ;;  %v7247_v32 = vld [vmem:[%s9371_s11 + $0x168] sm:$0xff]   ;;  %v7274_v59 = vld [vmem:[%s9371_s11 + $0x2b8] sm:$0xff]   ;;  %v3237_v61 = vpack.c.bf16 %v8576_v17, %v8576_v17 }
 0x380   :  { %5658 = vmatprep.mubr.bf16.mxu0 %v3227_v18  ;;  %5698 = vmatprep.mubr.bf16.mxu1 %v3229_v19  ;;  %v7246_v14 = vld [vmem:[%s9371_s11 + $0x1b0] sm:$0xff]   ;;  %v7250_v18 = vld [vmem:[%s9371_s11 + $0x1a8] sm:$0xff]   ;;  %v7251_v19 = vld [vmem:[%s9371_s11 + $0x160] sm:$0xff]  }
 0x381   :  { %6818 = vmatprep.subr.bf16.mxu0 %v7211_v33  ;;  %6840 = vmatprep.subr.bf16.mxu1 %v7212_v15  ;;  %v3233_v11 = vpack.c.bf16 %v1877_v6, %v1877_v6  ;;  %v7248_v33 = vld [vmem:[%s9371_s11 + $0x1e8] sm:$0xff]   ;;  %v7276_v60 = vld [vmem:[%s9371_s11 + $0x2f0] sm:$0xff]   ;;  %v7285_v1 = vld [vmem:[%s9371_s11 + $0x220] sm:$0xff]  }
 0x382   :  { %v7249_v15 = vld [vmem:[%s9371_s11 + $0x128] sm:$0xff]   ;;  %v7286_v6 = vld [vmem:[%s9371_s11 + $0x2a0] sm:$0xff]  }
 0x383   :  { %6819 = vmatpush3.bf16.msra.mxu0 %v7213_v20  ;;  %6841 = vmatpush3.bf16.msra.mxu1 %v7214_v21  ;;  %v7252_v20 = vld [vmem:[%s9371_s11 + $0x1e0] sm:$0xff]   ;;  %v7280_v17 = vld [vmem:[%s9371_s11 + $0x2e8] sm:$0xff]  }
 0x384   :  { %6820 = vmatprep.subr.bf16.mxu0 %v7215_v13  ;;  %6842 = vmatprep.subr.bf16.mxu1 %v7216_v34  ;;  %v7253_v21 = vld [vmem:[%s9371_s11 + $0x120] sm:$0xff]   ;;  %v7255_v34 = vld [vmem:[%s9371_s11 + $0x158] sm:$0xff]   ;;  %v7281_v63 = vld [vmem:[%s9371_s11 + $0x228] sm:$0xff]  }
 0x385   :  { %v7254_v13 = vld [vmem:[%s9371_s11 + $0x1a0] sm:$0xff]   ;;  %v7282_v0 = vld [vmem:[%s9371_s11 + $0x2a8] sm:$0xff]  }
 0x387   :  { %6821 = vmatpush3.bf16.msra.mxu0 %v7217_v35  ;;  %6843 = vmatpush3.bf16.msra.mxu1 %v7218_v36  ;;  %v7256_v35 = vld [vmem:[%s9371_s11 + $0x1d8] sm:$0xff]  }
 0x388   :  { %6822 = vmatprep.subr.bf16.mxu0 %v7219_v37  ;;  %6844 = vmatprep.subr.bf16.mxu1 %v7220_v41  ;;  %v7257_v36 = vld [vmem:[%s9371_s11 + $0x118] sm:$0xff]   ;;  %v7259_v41 = vld [vmem:[%s9371_s11 + $0x150] sm:$0xff]  }
 0x389   :  { %v7258_v37 = vld [vmem:[%s9371_s11 + $0x198] sm:$0xff]  }
 0x38b   :  { %6823 = vmatpush3.bf16.msra.mxu0 %v7221_v42  ;;  %6845 = vmatpush3.bf16.msra.mxu1 %v7222_v45  ;;  %v7260_v42 = vld [vmem:[%s9371_s11 + $0x1d0] sm:$0xff]  }
 0x38c   :  { %6824 = vmatprep.subr.bf16.mxu0 %v7223_v46  ;;  %6846 = vmatprep.subr.bf16.mxu1 %v7224_v47  ;;  %v7261_v45 = vld [vmem:[%s9371_s11 + $0x110] sm:$0xff]   ;;  %v7263_v47 = vld [vmem:[%s9371_s11 + $0x148] sm:$0xff]  }
 0x38d   :  { %v7262_v46 = vld [vmem:[%s9371_s11 + $0x190] sm:$0xff]  }
 0x38f   :  { %6825 = vmatpush3.bf16.msra.mxu0 %v7225_v54  ;;  %6847 = vmatpush3.bf16.msra.mxu1 %v7226_v49  ;;  %v7264_v54 = vld [vmem:[%s9371_s11 + $0x1c8] sm:$0xff]  }
 0x390   :  { %6826 = vmatprep.subr.bf16.mxu0 %v7227_v50  ;;  %6848 = vmatprep.subr.bf16.mxu1 %v7228_v51  ;;  %v7265_v49 = vld [vmem:[%s9371_s11 + $0x108] sm:$0xff]   ;;  %v1016_v50 = vrot.slane %v8905_v38, %v8578_v22  ;;  %v7269_v22 = vld [vmem:[%s9371_s11 + $0x100] sm:$0xff]  }
 0x391   :  { %v7266_v51 = vld [vmem:[%s9371_s11 + $0x188] sm:$0xff]  }
 0x393   :  { %6827 = vmatpush3.bf16.msra.mxu0 %v7229_v52  ;;  %6849 = vmatpush3.bf16.msra.mxu1 %v7230_v53  ;;  %v7267_v52 = vld [vmem:[%s9371_s11 + $0x140] sm:$0xff]   ;;  %v1024_v53 = vrot.slane %v8905_v38, %v8580_v23  ;;  %v7271_v23 = vld [vmem:[%s9371_s11 + $0x278] sm:$0xff]  }
 0x394   :  { %6828 = vmatprep.subr.bf16.mxu0 %v7231_v55  ;;  %6850 = vmatprep.subr.bf16.mxu1 %v7232_v8  ;;  %v7268_v55 = vld [vmem:[%s9371_s11 + $0x1c0] sm:$0xff]   ;;  %v1834_v8 = vadd.f32 %v8464_v24, %v1016_v50  ;;  %v7273_v24 = vld [vmem:[%s9371_s11 + $0x238] sm:$0xff]   ;;  %v7311_v50 = vld [vmem:[%s9371_s11 + $0x368] sm:$0xff]  }
 0x395   :  { %v1875_v38 = vadd.f32 %v8466_v62, %v1024_v53  ;;  %v7275_v62 = vld [vmem:[%s9371_s11 + $0x270] sm:$0xff]  }
 0x396   :  { %v3230_v58 = vpack.c.bf16 %v1834_v8, %v1834_v8  ;;  %v7313_v8 = vld [vmem:[%s9371_s11 + $0x328] sm:$0xff]  }
 0x397   :  { %6829 = vmatpush3.bf16.msra.mxu0 %v7233_v56  ;;  %6851 = vmatpush3.bf16.msra.mxu1 %v7234_v57  ;;  %v7270_v56 = vld [vmem:[%s9371_s11 + $0x180] sm:$0xff]   ;;  %v7272_v57 = vld [vmem:[%s9371_s11 + $0x2f8] sm:$0xff]  }
 0x398   :  { %6830 = vmatprep.subr.bf16.mxu0 %v7235_v4  ;;  %6852 = vmatprep.subr.bf16.mxu1 %v7236_v5  ;;  %v3232_v4 = vpack.c.bf16 %v1875_v38, %v1875_v38  ;;  %v3235_v5 = vpack.c.bf16 %v8574_v16, %v8574_v16  ;;  %v7278_v16 = vld [vmem:[%s9371_s11 + $0x2b0] sm:$0xff]   ;;  %v7314_v38 = vld [vmem:[%s9371_s11 + $0x3a8] sm:$0xff]  }
 0x39b   :  { %6831 = vmatpush3.bf16.msra.mxu0 %v7237_v2  ;;  %6853 = vmatpush3.bf16.msra.mxu1 %v7238_v3  ;;  %v7277_v2 = vld [vmem:[%s9371_s11 + $0x230] sm:$0xff]   ;;  %v7279_v3 = vld [vmem:[%s9371_s11 + $0x268] sm:$0xff]  }
 0x39c   :  { %6860 = vmatprep.subr.bf16.mxu0 %v7239_v27  ;;  %6882 = vmatprep.subr.bf16.mxu1 %v7240_v28  ;;  %v7283_v27 = vld [vmem:[%s9371_s11 + $0x260] sm:$0xff]  }
 0x39d   :  { %v7284_v28 = vld [vmem:[%s9371_s11 + $0x2e0] sm:$0xff]  }
 0x39e   :  { %5659 = vmatmul.mubr.bf16.vlgmr.msra.gmra.mxu0 %v3226_v26  ;;  %5699 = vmatmul.mubr.bf16.vlgmr.msra.gmra.mxu1 %v3228_v7  ;;  %v7288_v26 = vld [vmem:[%s9371_s11 + $0x2d8] sm:$0xff]  }
 0x39f   :  { %6861 = vmatpush3.bf16.msra.mxu0 %v7241_v25  ;;  %5738 = vmatprep.mubr.bf16.mxu0 %v3231_v10  ;;  %v7287_v25 = vld [vmem:[%s9371_s11 + $0x258] sm:$0xff]   ;;  %v7291_v10 = vld [vmem:[%s9371_s11 + $0x250] sm:$0xff]  }
 0x3a0   :  { %6883 = vmatpush3.bf16.msra.mxu1 %v7242_v9  ;;  %5778 = vmatprep.mubr.bf16.mxu1 %v3233_v11  ;;  %v7289_v7 = vld [vmem:[%s9371_s11 + $0x218] sm:$0xff]   ;;  %v7294_v11 = vld [vmem:[%s9371_s11 + $0x290] sm:$0xff]  }
 0x3a1   :  { %6862 = vmatprep.subr.bf16.mxu0 %v7243_v29  ;;  %6884 = vmatprep.subr.bf16.mxu1 %v7244_v30  ;;  %v7290_v9 = vld [vmem:[%s9371_s11 + $0x298] sm:$0xff]   ;;  %v7292_v29 = vld [vmem:[%s9371_s11 + $0x2d0] sm:$0xff]  }
 0x3a2   :  { %v7293_v30 = vld [vmem:[%s9371_s11 + $0x210] sm:$0xff]  }
 0x3a3   :  { %6863 = vmatpush3.bf16.msra.mxu0 %v7245_v48  ;;  %v7295_v48 = vld [vmem:[%s9371_s11 + $0x248] sm:$0xff]  }
 0x3a4   :  { %6885 = vmatpush3.bf16.msra.mxu1 %v7246_v14  ;;  %6864 = vmatprep.subr.bf16.mxu0 %v7247_v32  ;;  %v7296_v14 = vld [vmem:[%s9371_s11 + $0x2c8] sm:$0xff]  }
 0x3a5   :  { %6886 = vmatprep.subr.bf16.mxu1 %v7248_v33  ;;  %v7297_v32 = vld [vmem:[%s9371_s11 + $0x208] sm:$0xff]  }
 0x3a6   :  { %v7298_v33 = vld [vmem:[%s9371_s11 + $0x288] sm:$0xff]  }
 0x3a7   :  { %6865 = vmatpush3.bf16.msra.mxu0 %v7249_v15  ;;  %v7299_v15 = vld [vmem:[%s9371_s11 + $0x240] sm:$0xff]  }
 0x3a8   :  { %6887 = vmatpush3.bf16.msra.mxu1 %v7250_v18  ;;  %6866 = vmatprep.subr.bf16.mxu0 %v7251_v19  ;;  %v7300_v18 = vld [vmem:[%s9371_s11 + $0x2c0] sm:$0xff]  }
 0x3a9   :  { %6888 = vmatprep.subr.bf16.mxu1 %v7252_v20  ;;  %v7301_v19 = vld [vmem:[%s9371_s11 + $0x200] sm:$0xff]  }
 0x3aa   :  { %v7302_v20 = vld [vmem:[%s9371_s11 + $0x280] sm:$0xff]  }
 0x3ab   :  { %6867 = vmatpush3.bf16.msra.mxu0 %v7253_v21  ;;  %v7303_v21 = vld [vmem:[%s9371_s11 + $0x378] sm:$0xff]  }
 0x3ac   :  { %6889 = vmatpush3.bf16.msra.mxu1 %v7254_v13  ;;  %6868 = vmatprep.subr.bf16.mxu0 %v7255_v34  ;;  %v7304_v13 = vld [vmem:[%s9371_s11 + $0x3f8] sm:$0xff]  }
 0x3ad   :  { %6890 = vmatprep.subr.bf16.mxu1 %v7256_v35  ;;  %v7305_v34 = vld [vmem:[%s9371_s11 + $0x338] sm:$0xff]   ;;  %v3234_v35 = vpack.c.bf16 %v8570_v31, %v8570_v31 }
 0x3af   :  { %6869 = vmatpush3.bf16.msra.mxu0 %v7257_v36  ;;  %v7306_v36 = vld [vmem:[%s9371_s11 + $0x3b8] sm:$0xff]  }
 0x3b0   :  { %6891 = vmatpush3.bf16.msra.mxu1 %v7258_v37  ;;  %6870 = vmatprep.subr.bf16.mxu0 %v7259_v41  ;;  %v3236_v37 = vpack.c.bf16 %v8572_v12, %v8572_v12  ;;  %v7307_v41 = vld [vmem:[%s9371_s11 + $0x370] sm:$0xff]  }
 0x3b1   :  { %6892 = vmatprep.subr.bf16.mxu1 %v7260_v42  ;;  %v3239_v42 = vpack.c.bf16 %v8594_v43, %v8594_v43  ;;  %v7309_v12 = vld [vmem:[%s9371_s11 + $0x330] sm:$0xff]  }
 0x3b3   :  { %6871 = vmatpush3.bf16.msra.mxu0 %v7261_v45 }
 0x3b4   :  { %6893 = vmatpush3.bf16.msra.mxu1 %v7262_v46  ;;  %6872 = vmatprep.subr.bf16.mxu0 %v7263_v47  ;;  %v7308_v46 = vld [vmem:[%s9371_s11 + $0x3f0] sm:$0xff]   ;;  %v3241_v47 = vpack.c.bf16 %v8596_v44, %v8596_v44 }
 0x3b5   :  { %6894 = vmatprep.subr.bf16.mxu1 %v7264_v54 }
 0x3b7   :  { %6873 = vmatpush3.bf16.msra.mxu0 %v7265_v49  ;;  %v7310_v49 = vld [vmem:[%s9371_s11 + $0x3b0] sm:$0xff]  }
 0x3b8   :  { %6895 = vmatpush3.bf16.msra.mxu1 %v7266_v51  ;;  %6874 = vmatprep.subr.bf16.mxu0 %v7267_v52  ;;  %v7312_v52 = vld [vmem:[%s9371_s11 + $0x3e8] sm:$0xff]  }
 0x3b9   :  { %6896 = vmatprep.subr.bf16.mxu1 %v7268_v55 }
 0x3bb   :  { %6875 = vmatpush3.bf16.msra.mxu0 %v7269_v22 }
 0x3bc   :  { %6897 = vmatpush3.bf16.msra.mxu1 %v7270_v56  ;;  %6904 = vmatprep.subr.bf16.mxu0 %v7271_v23 }
 0x3bd   :  { %6926 = vmatprep.subr.bf16.mxu1 %v7272_v57  ;;  %v7315_v57 = vld [vmem:[%s9371_s11 + $0x360] sm:$0xff]  }
 0x3be   :  { %5739 = vmatmul.mubr.bf16.vlgmr.msra.gmra.mxu0 %v3230_v58  ;;  %v7317_v58 = vld [vmem:[%s9371_s11 + $0x320] sm:$0xff]  }
 0x3bf   :  { %5779 = vmatmul.mubr.bf16.vlgmr.msra.gmra.mxu1 %v3232_v4  ;;  %6905 = vmatpush3.bf16.msra.mxu0 %v7273_v24  ;;  %v7316_v24 = vld [vmem:[%s9371_s11 + $0x3e0] sm:$0xff]   ;;  %v7319_v4 = vld [vmem:[%s9371_s11 + $0x358] sm:$0xff]  }
 0x3c0   :  { %5818 = vmatprep.mubr.bf16.mxu0 %v3235_v5  ;;  %6927 = vmatpush3.bf16.msra.mxu1 %v7274_v59  ;;  %v7318_v59 = vld [vmem:[%s9371_s11 + $0x3a0] sm:$0xff]   ;;  %v7321_v5 = vld [vmem:[%s9371_s11 + $0x318] sm:$0xff]  }
 0x3c1   :  { %5858 = vmatprep.mubr.bf16.mxu1 %v3237_v61  ;;  %6906 = vmatprep.subr.bf16.mxu0 %v7275_v62  ;;  %v7320_v62 = vld [vmem:[%s9371_s11 + $0x3d8] sm:$0xff]   ;;  %v7323_v61 = vld [vmem:[%s9371_s11 + $0x350] sm:$0xff]  }
 0x3c2   :  { %6928 = vmatprep.subr.bf16.mxu1 %v7276_v60  ;;  %v7322_v60 = vld [vmem:[%s9371_s11 + $0x398] sm:$0xff]  }
 0x3c3   :  { %6907 = vmatpush3.bf16.msra.mxu0 %v7277_v2  ;;  %v7324_v2 = vld [vmem:[%s9371_s11 + $0x3d0] sm:$0xff]  }
 0x3c4   :  { %6929 = vmatpush3.bf16.msra.mxu1 %v7278_v16  ;;  %6908 = vmatprep.subr.bf16.mxu0 %v7279_v3  ;;  %v7325_v16 = vld [vmem:[%s9371_s11 + $0x310] sm:$0xff]  }
 0x3c5   :  { %6930 = vmatprep.subr.bf16.mxu1 %v7280_v17  ;;  %v7326_v3 = vld [vmem:[%s9371_s11 + $0x390] sm:$0xff]   ;;  %v7327_v17 = vld [vmem:[%s9371_s11 + $0x348] sm:$0xff]  }
 0x3c7   :  { %6909 = vmatpush3.bf16.msra.mxu0 %v7281_v63  ;;  %v7328_v63 = vld [vmem:[%s9371_s11 + $0x3c8] sm:$0xff]  }
 0x3c8   :  { %6931 = vmatpush3.bf16.msra.mxu1 %v7282_v0  ;;  %6910 = vmatprep.subr.bf16.mxu0 %v7283_v27  ;;  %v7329_v0 = vld [vmem:[%s9371_s11 + $0x308] sm:$0xff]  }
 0x3c9   :  { %6932 = vmatprep.subr.bf16.mxu1 %v7284_v28  ;;  %v7330_v27 = vld [vmem:[%s9371_s11 + $0x388] sm:$0xff]   ;;  %v7331_v28 = vld [vmem:[%s9371_s11 + $0x340] sm:$0xff]  }
 0x3cb   :  { %6911 = vmatpush3.bf16.msra.mxu0 %v7285_v1  ;;  %v7332_v1 = vld [vmem:[%s9371_s11 + $0x3c0] sm:$0xff]  }
 0x3cc   :  { %6933 = vmatpush3.bf16.msra.mxu1 %v7286_v6  ;;  %6912 = vmatprep.subr.bf16.mxu0 %v7287_v25  ;;  %v7333_v6 = vld [vmem:[%s9371_s11 + $0x300] sm:$0xff]  }
 0x3cd   :  { %6934 = vmatprep.subr.bf16.mxu1 %v7288_v26  ;;  %v7334_v25 = vld [vmem:[%s9371_s11 + $0x380] sm:$0xff]   ;;  %v3238_v26 = vpack.c.bf16 %v8590_v39, %v8590_v39 }
 0x3cf   :  { %6913 = vmatpush3.bf16.msra.mxu0 %v7289_v7  ;;  %v3240_v7 = vpack.c.bf16 %v8592_v40, %v8592_v40 }
 0x3d0   :  { %6935 = vmatpush3.bf16.msra.mxu1 %v7290_v9  ;;  %6914 = vmatprep.subr.bf16.mxu0 %v7291_v10 }
 0x3d1   :  { %6936 = vmatprep.subr.bf16.mxu1 %v7292_v29 }
 0x3d3   :  { %6915 = vmatpush3.bf16.msra.mxu0 %v7293_v30 }
 0x3d4   :  { %6937 = vmatpush3.bf16.msra.mxu1 %v7294_v11  ;;  %6916 = vmatprep.subr.bf16.mxu0 %v7295_v48 }
 0x3d5   :  { %6938 = vmatprep.subr.bf16.mxu1 %v7296_v14 }
 0x3d7   :  { %6917 = vmatpush3.bf16.msra.mxu0 %v7297_v32 }
 0x3d8   :  { %6939 = vmatpush3.bf16.msra.mxu1 %v7298_v33  ;;  %6918 = vmatprep.subr.bf16.mxu0 %v7299_v15 }
 0x3d9   :  { %6940 = vmatprep.subr.bf16.mxu1 %v7300_v18 }
 0x3db   :  { %6919 = vmatpush3.bf16.msra.mxu0 %v7301_v19 }
 0x3dc   :  { %6941 = vmatpush3.bf16.msra.mxu1 %v7302_v20  ;;  %6948 = vmatprep.subr.bf16.mxu0 %v7303_v21 }
 0x3dd   :  { %6970 = vmatprep.subr.bf16.mxu1 %v7304_v13 }
 0x3de   :  { %5819 = vmatmul.mubr.bf16.vlgmr.msra.gmra.mxu0 %v3234_v35  ;;  %v6656_v45 = vpop.f32.mrf.mxu0  ;;  %v6678_v31 = vpop.f32.mrf.mxu1 }
 0x3df   :  { %5859 = vmatmul.mubr.bf16.vlgmr.msra.gmra.mxu1 %v3236_v37  ;;  %6949 = vmatpush3.bf16.msra.mxu0 %v7305_v34 }
 0x3e0   :  { %5898 = vmatprep.mubr.bf16.mxu0 %v3239_v42  ;;  %6971 = vmatpush3.bf16.msra.mxu1 %v7306_v36  ;;  %v6657_v54 = vpop.f32.mrf.mxu0  ;;  %v6679_v43 = vpop.f32.mrf.mxu1 }
 0x3e1   :  { %5938 = vmatprep.mubr.bf16.mxu1 %v3241_v47  ;;  %v6658_v44 = vadd.f32 %v6657_v54, %v6656_v45  ;;  %v6680_v51 = vadd.f32 %v6679_v43, %v6678_v31  ;;  %6950 = vmatprep.subr.bf16.mxu0 %v7307_v41 }
 0x3e2   :  { %6972 = vmatprep.subr.bf16.mxu1 %v7308_v46  ;;  %v6659_v53 = vpop.f32.mrf.mxu0  ;;  %v6681_v55 = vpop.f32.mrf.mxu1 }
 0x3e3   :  { %v9281_v22 = vadd.f32 %v6680_v51, %v6658_v44  ;;  %6951 = vmatpush3.bf16.msra.mxu0 %v7309_v12 }
 0x3e4   :  { %6973 = vmatpush3.bf16.msra.mxu1 %v7310_v49  ;;  %v6660_v56 = vpop.f32.mrf.mxu0  ;;  %v6682_v23 = vpop.f32.mrf.mxu1  ;;  %6952 = vmatprep.subr.bf16.mxu0 %v7311_v50 }
 0x3e5   :  { %6974 = vmatprep.subr.bf16.mxu1 %v7312_v52 }
 0x3e7   :  { %6953 = vmatpush3.bf16.msra.mxu0 %v7313_v8 }
 0x3e8   :  { %6975 = vmatpush3.bf16.msra.mxu1 %v7314_v38  ;;  %6954 = vmatprep.subr.bf16.mxu0 %v7315_v57 }
 0x3e9   :  { %6976 = vmatprep.subr.bf16.mxu1 %v7316_v24 }
 0x3eb   :  { %6955 = vmatpush3.bf16.msra.mxu0 %v7317_v58 }
 0x3ec   :  { %6977 = vmatpush3.bf16.msra.mxu1 %v7318_v59  ;;  %6956 = vmatprep.subr.bf16.mxu0 %v7319_v4 }
 0x3ed   :  { %6978 = vmatprep.subr.bf16.mxu1 %v7320_v62 }
 0x3ef   :  { %6957 = vmatpush3.bf16.msra.mxu0 %v7321_v5 }
 0x3f0   :  { %6979 = vmatpush3.bf16.msra.mxu1 %v7322_v60  ;;  %6958 = vmatprep.subr.bf16.mxu0 %v7323_v61 }
 0x3f1   :  { %6980 = vmatprep.subr.bf16.mxu1 %v7324_v2 }
 0x3f3   :  { %6959 = vmatpush3.bf16.msra.mxu0 %v7325_v16 }
 0x3f4   :  { %6981 = vmatpush3.bf16.msra.mxu1 %v7326_v3  ;;  %6960 = vmatprep.subr.bf16.mxu0 %v7327_v17 }
 0x3f5   :  { %6982 = vmatprep.subr.bf16.mxu1 %v7328_v63 }
 0x3f7   :  { %6961 = vmatpush3.bf16.msra.mxu0 %v7329_v0 }
 0x3f8   :  { %6983 = vmatpush3.bf16.msra.mxu1 %v7330_v27  ;;  %6962 = vmatprep.subr.bf16.mxu0 %v7331_v28 }
 0x3f9   :  { %6984 = vmatprep.subr.bf16.mxu1 %v7332_v1 }
 0x3fb   :  { %6963 = vmatpush3.bf16.msra.mxu0 %v7333_v6 }
 0x3fc   :  { %6985 = vmatpush3.bf16.msra.mxu1 %v7334_v25 }
 0x3fe   :  { %5899 = vmatmul.mubr.bf16.vlgmr.msra.gmra.mxu0 %v3238_v26  ;;  %v6700_v9 = vpop.f32.mrf.mxu0  ;;  %v6722_v10 = vpop.f32.mrf.mxu1 }
 0x3ff   :  { %5939 = vmatmul.mubr.bf16.vlgmr.msra.gmra.mxu1 %v3240_v7 }
 0x400   :  { %v6701_v29 = vpop.f32.mrf.mxu0  ;;  %v6723_v30 = vpop.f32.mrf.mxu1 }
 0x401   :  { %v6702_v11 = vadd.f32 %v6701_v29, %v6700_v9  ;;  %v6724_v48 = vadd.f32 %v6723_v30, %v6722_v10 }
 0x402   :  { %v6703_v14 = vpop.f32.mrf.mxu0  ;;  %v6725_v32 = vpop.f32.mrf.mxu1 }
 0x403   :  { %v4653_v33 = vadd.f32 %v6702_v11, %v9281_v22 }
 0x404   :  { %v6704_v15 = vpop.f32.mrf.mxu0  ;;  %v6726_v18 = vpop.f32.mrf.mxu1 }
 0x405   :  { %v4693_v19 = vadd.f32 %v6724_v48, %v4653_v33 }
 0x41e   :  { %v6744_v39 = vpop.f32.mrf.mxu0  ;;  %v6766_v20 = vpop.f32.mrf.mxu1 }
 0x420   :  { %v6745_v21 = vpop.f32.mrf.mxu0  ;;  %v6767_v13 = vpop.f32.mrf.mxu1 }
 0x421   :  { %v6746_v40 = vadd.f32 %v6745_v21, %v6744_v39  ;;  %v6768_v34 = vadd.f32 %v6767_v13, %v6766_v20 }
 0x422   :  { %v6747_v35 = vpop.f32.mrf.mxu0  ;;  %v6769_v36 = vpop.f32.mrf.mxu1 }
 0x423   :  { %v4733_v37 = vadd.f32 %v6746_v40, %v4693_v19 }
 0x424   :  { %v6748_v41 = vpop.f32.mrf.mxu0  ;;  %v6770_v42 = vpop.f32.mrf.mxu1 }
 0x425   :  { %v4773_v45 = vadd.f32 %v6768_v34, %v4733_v37  ;;  %v6547_v34 = vld [vmem:[%s9373_s13] ss:$0 sm:$0xff] }
 0x43e   :  { %v6788_v31 = vpop.f32.mrf.mxu0  ;;  %v6810_v46 = vpop.f32.mrf.mxu1 }
 0x440   :  { %v6789_v47 = vpop.f32.mrf.mxu0  ;;  %v6811_v12 = vpop.f32.mrf.mxu1 }
 0x441   :  { %v6790_v54 = vadd.f32 %v6789_v47, %v6788_v31  ;;  %v6812_v43 = vadd.f32 %v6811_v12, %v6810_v46 }
 0x442   :  { %v6791_v49 = vpop.f32.mrf.mxu0  ;;  %v6813_v50 = vpop.f32.mrf.mxu1 }
 0x443   :  { %v4813_v44 = vadd.f32 %v6790_v54, %v4773_v45 }
 0x444   :  { %v6792_v51 = vpop.f32.mrf.mxu0  ;;  %v6814_v52 = vpop.f32.mrf.mxu1 }
 0x445   :  { %v4853_v53 = vadd.f32 %v6812_v43, %v4813_v44 }
 0x45e   :  { %v6832_v55 = vpop.f32.mrf.mxu0  ;;  %v6854_v22 = vpop.f32.mrf.mxu1 }
 0x460   :  { %v6833_v8 = vpop.f32.mrf.mxu0  ;;  %v6855_v56 = vpop.f32.mrf.mxu1 }
 0x461   :  { %v6834_v23 = vadd.f32 %v6833_v8, %v6832_v55  ;;  %v6856_v38 = vadd.f32 %v6855_v56, %v6854_v22 }
 0x462   :  { %v6835_v57 = vpop.f32.mrf.mxu0  ;;  %v6857_v24 = vpop.f32.mrf.mxu1 }
 0x463   :  { %v5661_v58 = vadd.f32 %v6834_v23, %v4853_v53 }
 0x464   :  { %v6836_v59 = vpop.f32.mrf.mxu0  ;;  %v6858_v4 = vpop.f32.mrf.mxu1 }
 0x465   :  { %v5701_v62 = vadd.f32 %v6856_v38, %v5661_v58 }
 0x47e   :  { %v6876_v5 = vpop.f32.mrf.mxu0 }
 0x47f   :  { %v6898_v60 = vpop.f32.mrf.mxu1 }
 0x480   :  { %v6877_v61 = vpop.f32.mrf.mxu0 }
 0x481   :  { %v6899_v2 = vpop.f32.mrf.mxu1  ;;  %v6878_v9 = vadd.f32 %v6877_v61, %v6876_v5 }
 0x482   :  { %v6879_v16 = vpop.f32.mrf.mxu0  ;;  %v6900_v29 = vadd.f32 %v6899_v2, %v6898_v60 }
 0x483   :  { %v6901_v3 = vpop.f32.mrf.mxu1  ;;  %v5741_v10 = vadd.f32 %v6878_v9, %v5701_v62 }
 0x484   :  { %v6880_v17 = vpop.f32.mrf.mxu0 }
 0x485   :  { %v6902_v63 = vpop.f32.mrf.mxu1  ;;  %v5781_v11 = vadd.f32 %v6900_v29, %v5741_v10 }
 0x49e   :  { %v6920_v0 = vpop.f32.mrf.mxu0 }
 0x49f   :  { %v6942_v27 = vpop.f32.mrf.mxu1 }
 0x4a0   :  { %v6921_v28 = vpop.f32.mrf.mxu0 }
 0x4a1   :  { %v6943_v1 = vpop.f32.mrf.mxu1  ;;  %v6922_v30 = vadd.f32 %v6921_v28, %v6920_v0 }
 0x4a2   :  { %v6923_v6 = vpop.f32.mrf.mxu0  ;;  %v6944_v32 = vadd.f32 %v6943_v1, %v6942_v27 }
 0x4a3   :  { %v6945_v25 = vpop.f32.mrf.mxu1  ;;  %v5821_v48 = vadd.f32 %v6922_v30, %v5781_v11 }
 0x4a4   :  { %v6924_v26 = vpop.f32.mrf.mxu0 }
 0x4a5   :  { %v6946_v7 = vpop.f32.mrf.mxu1  ;;  %v5861_v18 = vadd.f32 %v6944_v32, %v5821_v48 }
 0x4be   :  { %v6964_v14 = vpop.f32.mrf.mxu0 }
 0x4bf   :  { %v6986_v33 = vpop.f32.mrf.mxu1 }
 0x4c0   :  { %v6965_v15 = vpop.f32.mrf.mxu0 }
 0x4c1   :  { %v6966_v19 = vadd.f32 %v6965_v15, %v6964_v14  ;;  %v6987_v39 = vpop.f32.mrf.mxu1 }
 0x4c2   :  { %v6967_v20 = vpop.f32.mrf.mxu0  ;;  %v6988_v13 = vadd.f32 %v6987_v39, %v6986_v33 }
 0x4c3   :  { %v5901_v21 = vadd.f32 %v6966_v19, %v5861_v18  ;;  %v6989_v40 = vpop.f32.mrf.mxu1 }
 0x4c4   :  { %v6968_v35 = vpop.f32.mrf.mxu0 }
 0x4c5   :  { %v5941_v36 = vadd.f32 %v6988_v13, %v5901_v21  ;;  %v6990_v37 = vpop.f32.mrf.mxu1 }
 0x4c7   :  { %v5953_v41 = vadd.f32 %v6547_v34, %v5941_v36 }
 0x4c9   :  { %5954 = vst [vmem:[%s9374_s14] sm:$0x3] %v5953_v41 }

</bundles_post_ra>
